<compile_context>
chip_gen: v5e
topology: v5e:2x2
jax: 0.10.0
libtpu: 0.0.40
codegen_flags: <defaults>
</compile_context>

<pallas_src>
import jax
import jax.numpy as jnp
from jax.experimental import pallas as pl
from jax.experimental.pallas import tpu as pltpu

PREF_DIM, CITY_DIM, DISTRICT_DIM, STATION_DIM = 10, 100, 100, 100
EMB_DIM = PREF_DIM + CITY_DIM + DISTRICT_DIM + STATION_DIM  # 310
H1 = 100          # sq1 hidden width (PyTorch)
H1P = 128         # sq1 hidden width padded to full lanes
H2 = 1024
H3 = 512
LN_EPS = 1e-5

MIN_TILE_B = 16
MAX_TILE_B = 512


def _round_up(n, m):
    return ((n + m - 1) // m) * m


def _prelu(h, a):
    return jnp.where(h > 0, h, a * h)


def _layernorm(h, gamma, beta):
    # One-pass LayerNorm: both moments from a single read of h (var = E[x^2]-mu^2).
    mu = jnp.mean(h, axis=-1, keepdims=True)
    msq = jnp.mean(h * h, axis=-1, keepdims=True)
    var = msq - mu * mu
    return (h - mu) * jax.lax.rsqrt(var + LN_EPS) * gamma + beta


def _layernorm_100(h, gamma, beta):
    # LayerNorm over the first H1=100 lanes of a 128-lane-padded tensor.
    # Relies on padded lanes of h, gamma, beta being exactly zero (asserted in
    # prepare_params): sums over 128 lanes then equal the 100-lane statistics,
    # and the padded output lanes stay exactly zero ((0-mu)*rsqrt*0 + 0 == 0).
    inv_n = 1.0 / H1
    mu = jnp.sum(h, axis=-1, keepdims=True) * inv_n
    msq = jnp.sum(h * h, axis=-1, keepdims=True) * inv_n
    var = msq - mu * mu
    return (h - mu) * jax.lax.rsqrt(var + LN_EPS) * gamma + beta


def mlp_kernel(a1_ref, a2_ref, b5_ref,                     # SMEM scalars
               h0_ref, x_ref,                              # batch-tiled activations
               b1_ref, g1_ref, be1_ref,                    # sq1 layer 1 (linear folded)
               w2_ref, b2_ref, g2_ref, be2_ref,            # sq1 layer 2
               w3x_ref, w3y_ref, b3_ref, g3_ref, be3_ref,  # sq2 layer 1 (split W)
               w4_ref, b4_ref, g4_ref, be4_ref,            # sq2 layer 2
               w5_ref,                                     # sq2 layer 3 (row vector)
               out_ref):
    # --- sq1: [Linear(310->100) pre-folded into the gathers] -> PReLU -> LN -> (Dropout=id)
    h = h0_ref[...] + b1_ref[...]
    h = _prelu(h, a1_ref[0, 0])
    h = _layernorm_100(h, g1_ref[...], be1_ref[...])

    #          Linear(100->100) -> PReLU -> LN -> (Dropout=id)
    h = jnp.dot(h.astype(jnp.bfloat16), w2_ref[...],
                preferred_element_type=jnp.float32) + b2_ref[...]
    h = _prelu(h, a2_ref[0, 0])
    y = _layernorm_100(h, g2_ref[...], be2_ref[...])

    # --- sq2: Linear(input_dim+100 -> 1024) on concat(x, y), fused as split matmuls
    z = (jnp.dot(x_ref[...], w3x_ref[...], preferred_element_type=jnp.float32)
         + jnp.dot(y.astype(jnp.bfloat16), w3y_ref[...],
                   preferred_element_type=jnp.float32)
         + b3_ref[...])
    z = _layernorm(z, g3_ref[...], be3_ref[...])
    z = jnp.maximum(z, 0.0)                      # LN -> (Dropout=id) -> ReLU

    #          Linear(1024 -> 512) -> LN -> (Dropout=id) -> ReLU
    z = jnp.dot(z.astype(jnp.bfloat16), w4_ref[...],
                preferred_element_type=jnp.float32) + b4_ref[...]
    z = _layernorm(z, g4_ref[...], be4_ref[...])
    z = jnp.maximum(z, 0.0)

    #          Linear(512 -> 1): N=1 -> VPU multiply + lane reduction (f32)
    out_ref[...] = (jnp.sum(z * w5_ref[...], axis=-1, keepdims=True)
                    + b5_ref[0, 0])


def init_params(key, input_dim):
    """Raw parameters, matching PyTorch layouts/initializers (weights transposed)."""
    ks = jax.random.split(key, 16)
    u = lambda k, shape, fan_in: jax.random.uniform(
        k, shape, jnp.float32, -1.0 / jnp.sqrt(fan_in), 1.0 / jnp.sqrt(fan_in))
    return {
        # embedding tables (PyTorch nn.Embedding init ~ N(0,1))
        "emb_pref": jax.random.normal(ks[0], (48, PREF_DIM), jnp.float32),
        "emb_city": jax.random.normal(ks[1], (619, CITY_DIM), jnp.float32),
        "emb_district": jax.random.normal(ks[2], (15457, DISTRICT_DIM), jnp.float32),
        "emb_station": jax.random.normal(ks[3], (3844, STATION_DIM), jnp.float32),
        # sq1
        "w1": u(ks[4], (EMB_DIM, H1), EMB_DIM), "b1": u(ks[5], (1, H1), EMB_DIM),
        "a1": jnp.full((1, 1), 0.25, jnp.float32),
        "g1": jnp.ones((1, H1), jnp.float32), "be1": jnp.zeros((1, H1), jnp.float32),
        "w2": u(ks[6], (H1, H1), H1), "b2": u(ks[7], (1, H1), H1),
        "a2": jnp.full((1, 1), 0.25, jnp.float32),
        "g2": jnp.ones((1, H1), jnp.float32), "be2": jnp.zeros((1, H1), jnp.float32),
        # sq2
        "w3": u(ks[8], (input_dim + H1, H2), input_dim + H1),
        "b3": u(ks[9], (1, H2), input_dim + H1),
        "g3": jnp.ones((1, H2), jnp.float32), "be3": jnp.zeros((1, H2), jnp.float32),
        "w4": u(ks[10], (H2, H3), H2), "b4": u(ks[11], (1, H3), H2),
        "g4": jnp.ones((1, H3), jnp.float32), "be4": jnp.zeros((1, H3), jnp.float32),
        "w5": u(ks[12], (H3, 1), H3), "b5": u(ks[13], (1, 1), H3),
    }


def _assert_zero(arr, what):
    # One-time eager check of the lane/row padding invariant the kernel relies on.
    assert float(jnp.max(jnp.abs(arr))) == 0.0, f"padding invariant violated: {what}"


def prepare_params(params, input_dim):
    """One-time offline prep: fold w1 into the tables, pad H1->128, split/pad w3,
    cast matmul weights to bf16. Done once, outside the per-call jit path."""
    w1 = params["w1"]                                         # (310, 100) f32
    pad_n = lambda v: jnp.pad(v, ((0, 0), (0, H1P - H1)))

    def fold(table, lo, hi):
        # Fold the first Linear into the embedding table:  table @ w1[lo:hi]
        return pad_n(table @ w1[lo:hi, :])                    # (num_emb, 128) f32

    o0 = 0
    o1 = PREF_DIM
    o2 = o1 + CITY_DIM
    o3 = o2 + DISTRICT_DIM
    o4 = EMB_DIM
    w3 = params["w3"]                                         # (input_dim+100, 1024)
    prepared = {
        "t_pref": fold(params["emb_pref"], o0, o1),
        "t_city": fold(params["emb_city"], o1, o2),
        "t_district": fold(params["emb_district"], o2, o3),
        "t_station": fold(params["emb_station"], o3, o4),
        "a1": params["a1"], "a2": params["a2"], "b5": params["b5"],
        "b1": pad_n(params["b1"]), "g1": pad_n(params["g1"]), "be1": pad_n(params["be1"]),
        "w2": jnp.pad(params["w2"], ((0, H1P - H1), (0, H1P - H1))).astype(jnp.bfloat16),
        "b2": pad_n(params["b2"]), "g2": pad_n(params["g2"]), "be2": pad_n(params["be2"]),
        "w3x": w3[:input_dim, :].astype(jnp.bfloat16),
        "w3y": jnp.pad(w3[input_dim:, :], ((0, H1P - H1), (0, 0))).astype(jnp.bfloat16),
        "b3": params["b3"], "g3": params["g3"], "be3": params["be3"],
        "w4": params["w4"].astype(jnp.bfloat16),
        "b4": params["b4"], "g4": params["g4"], "be4": params["be4"],
        "w5": params["w5"].reshape(1, H3),                    # f32, used on the VPU
    }
    # The mask-free 100-lane LayerNorms and the split w3 matmuls are exact only
    # if every padded lane / row is exactly zero.  Check once, eagerly.
    for name in ("t_pref", "t_city", "t_district", "t_station",
                 "b1", "g1", "be1", "b2", "g2", "be2"):
        _assert_zero(prepared[name][:, H1:], f"{name} lanes >= {H1}")
    _assert_zero(prepared["w2"][H1:, :], "w2 rows >= 100")
    _assert_zero(prepared["w2"][:, H1:], "w2 cols >= 100")
    _assert_zero(prepared["w3y"][H1:, :], "w3y rows >= 100")
    return prepared


@jax.jit
def mlp_forward(prepared, x, pref, city, district, station):
    B, input_dim = x.shape

    # Embedding gathers on the pre-folded (w1-projected) tables; their sum is
    # the pre-bias activation of sq1's first Linear.            -> (B, 128) f32
    # TODO(synk): measure fusing this gather+sum into the kernel (scalar-prefetch
    # the index vectors, keep the ~5 MiB bf16 folded tables VMEM-resident).
    h0 = (jnp.take(prepared["t_pref"], pref.reshape(-1), axis=0)
          + jnp.take(prepared["t_city"], city.reshape(-1), axis=0)
          + jnp.take(prepared["t_district"], district.reshape(-1), axis=0)
          + jnp.take(prepared["t_station"], station.reshape(-1), axis=0))

    # --- batch tiling -------------------------------------------------------
    tile_b = min(MAX_TILE_B, _round_up(B, MIN_TILE_B))
    if _round_up(B, tile_b) // tile_b < 2 and B >= 2 * MIN_TILE_B:
        # Force >= 2 grid steps so dimension_semantics=("parallel",) can shard
        # the batch axis across both v7x TensorCores (v5e/v6e: single TC, no-op).
        tile_b = _round_up(-(-B // 2), MIN_TILE_B)
    bp = _round_up(B, tile_b)
    n_tiles = bp // tile_b

    h0 = jnp.pad(h0.astype(jnp.float32), ((0, bp - B), (0, 0)))
    # x fed the MXU as bf16 anyway -> streaming it as bf16 is exact and halves DMA.
    xp = jnp.pad(x, ((0, bp - B), (0, 0))).astype(jnp.bfloat16)

    smem = pl.BlockSpec((1, 1), lambda i: (0, 0),
                        memory_space=pltpu.MemorySpace.SMEM)
    tiled = lambda d: pl.BlockSpec((tile_b, d), lambda i: (i, 0))
    resident = lambda shape: pl.BlockSpec(shape, lambda i: (0, 0))  # stays in VMEM

    p = prepared
    resident_arrays = (p["b1"], p["g1"], p["be1"], p["w2"], p["b2"], p["g2"], p["be2"],
                       p["w3x"], p["w3y"], p["b3"], p["g3"], p["be3"],
                       p["w4"], p["b4"], p["g4"], p["be4"], p["w5"])
    param_bytes = sum(int(a.size) * a.dtype.itemsize for a in resident_arrays)

    # VMEM budget: double-buffered streamed tiles + (conservatively) double-
    # buffered resident params + the widest f32/bf16 per-tile intermediates,
    # plus fixed headroom for compiler temporaries.  Floor at 32 MiB (>= every
    # generation's scoped default), cap at v7x's 64 MiB physical.
    stream_bytes = 2 * tile_b * (H1P * 4 + input_dim * 2 + 1 * 4)
    interm_bytes = tile_b * (2 * H2 * 4 + H2 * 2 + H3 * 4 + 4 * H1P * 4)
    vmem_limit = min(max(2 * param_bytes + stream_bytes + interm_bytes + (8 << 20),
                         32 << 20), 64 << 20)

    cost = pl.CostEstimate(
        flops=2 * bp * (H1P * H1P + input_dim * H2 + H1P * H2 + H2 * H3 + H3),
        transcendentals=4 * bp,                               # one rsqrt per LN row
        bytes_accessed=bp * (H1P * 4 + input_dim * 2 + 4) + param_bytes)

    out = pl.pallas_call(
        mlp_kernel,
        out_shape=jax.ShapeDtypeStruct((bp, 1), jnp.float32),
        grid=(n_tiles,),
        in_specs=[
            smem, smem, smem,                                         # a1, a2, b5
            tiled(H1P), tiled(input_dim),                             # h0, x
            resident((1, H1P)), resident((1, H1P)), resident((1, H1P)),           # b1,g1,be1
            resident((H1P, H1P)), resident((1, H1P)),
            resident((1, H1P)), resident((1, H1P)),                               # w2,b2,g2,be2
            resident((input_dim, H2)), resident((H1P, H2)),
            resident((1, H2)), resident((1, H2)), resident((1, H2)),              # w3x,w3y,b3,g3,be3
            resident((H2, H3)), resident((1, H3)),
            resident((1, H3)), resident((1, H3)),                                 # w4,b4,g4,be4
            resident((1, H3)),                                                    # w5
        ],
        out_specs=pl.BlockSpec((tile_b, 1), lambda i: (i, 0)),
        compiler_params=pltpu.CompilerParams(
            dimension_semantics=("parallel",),
            vmem_limit_bytes=vmem_limit),
        cost_estimate=cost,
    )(p["a1"], p["a2"], p["b5"],
      h0, xp,
      p["b1"], p["g1"], p["be1"],
      p["w2"], p["b2"], p["g2"], p["be2"],
      p["w3x"], p["w3y"], p["b3"], p["g3"], p["be3"],
      p["w4"], p["b4"], p["g4"], p["be4"],
      p["w5"])
    return out[:B]


def mlp_reference(params, x, pref, city, district, station):
    """Plain-JAX f32 reference (mirrors the PyTorch forward exactly)."""
    y1 = jnp.take(params["emb_pref"], pref.reshape(-1), axis=0)
    y2 = jnp.take(params["emb_city"], city.reshape(-1), axis=0)
    y3 = jnp.take(params["emb_district"], district.reshape(-1), axis=0)
    y4 = jnp.take(params["emb_station"], station.reshape(-1), axis=0)
    y = jnp.concatenate([y1, y2, y3, y4], axis=1)

    def ln(h, g, b):
        mu = jnp.mean(h, axis=-1, keepdims=True)
        var = jnp.mean((h - mu) ** 2, axis=-1, keepdims=True)
        return (h - mu) / jnp.sqrt(var + LN_EPS) * g + b

    prelu = lambda h, a: jnp.where(h > 0, h, a * h)

    h = y @ params["w1"] + params["b1"]
    h = prelu(h, params["a1"][0, 0])
    h = ln(h, params["g1"], params["be1"])
    h = h @ params["w2"] + params["b2"]
    h = prelu(h, params["a2"][0, 0])
    h = ln(h, params["g2"], params["be2"])

    z = jnp.concatenate([x, h], axis=1) @ params["w3"] + params["b3"]
    z = ln(z, params["g3"], params["be3"])
    z = jnp.maximum(z, 0.0)
    z = z @ params["w4"] + params["b4"]
    z = ln(z, params["g4"], params["be4"])
    z = jnp.maximum(z, 0.0)
    return z @ params["w5"] + params["b5"]


def _run_case(prepared, params, key, batch, input_dim):
    kx, kp, kc, kd, ks = jax.random.split(key, 5)
    x = jax.random.normal(kx, (batch, input_dim), jnp.float32)
    pref = jax.random.randint(kp, (batch, 1), 0, 48, jnp.int32)
    city = jax.random.randint(kc, (batch, 1), 0, 619, jnp.int32)
    district = jax.random.randint(kd, (batch, 1), 0, 15457, jnp.int32)
    station = jax.random.randint(ks, (batch, 1), 0, 3844, jnp.int32)

    out = mlp_forward(prepared, x, pref, city, district, station)
    out = jax.block_until_ready(out)
    assert out.shape == (batch, 1), out.shape

    ref = mlp_reference(params, x, pref, city, district, station)
    # bf16 MXU operands -> relaxed tolerance vs the f32 reference (LayerNorms
    # after every matmul keep the drift small; only the final un-normalized
    # 512->1 reduction, done in f32, carries it through).
    max_err = float(jnp.max(jnp.abs(out - ref)))
    assert jnp.allclose(out, ref, atol=5e-2, rtol=5e-2), (batch, max_err)


if __name__ == "__main__":
    INPUT_DIM = 32
    key = jax.random.PRNGKey(0)
    k_param, k_case1, k_case2 = jax.random.split(key, 3)

    params = init_params(k_param, INPUT_DIM)
    prepared = prepare_params(params, INPUT_DIM)

    # Small single-tile case (batch=2) and a multi-tile case that exercises the
    # >= 2-grid-step (megacore) path plus batch padding/slicing.
    _run_case(prepared, params, k_case1, batch=2, input_dim=INPUT_DIM)
    _run_case(prepared, params, k_case2, batch=40, input_dim=INPUT_DIM)

    print("KERNEL_OK")
</pallas_src>

<mosaic_0001>
module attributes {stable_mosaic.version = 11 : i64} {
  func.func @mlp_kernel(%arg0: i32, %arg1: memref<1x1xf32, #tpu.memory_space<smem>>, %arg2: memref<1x1xf32, #tpu.memory_space<smem>>, %arg3: memref<1x1xf32, #tpu.memory_space<smem>>, %arg4: memref<16x128xf32, #tpu.memory_space<vmem>>, %arg5: memref<16x32xbf16, #tpu.memory_space<vmem>>, %arg6: memref<1x128xf32, #tpu.memory_space<vmem>>, %arg7: memref<1x128xf32, #tpu.memory_space<vmem>>, %arg8: memref<1x128xf32, #tpu.memory_space<vmem>>, %arg9: memref<128x128xbf16, #tpu.memory_space<vmem>>, %arg10: memref<1x128xf32, #tpu.memory_space<vmem>>, %arg11: memref<1x128xf32, #tpu.memory_space<vmem>>, %arg12: memref<1x128xf32, #tpu.memory_space<vmem>>, %arg13: memref<32x1024xbf16, #tpu.memory_space<vmem>>, %arg14: memref<128x1024xbf16, #tpu.memory_space<vmem>>, %arg15: memref<1x1024xf32, #tpu.memory_space<vmem>>, %arg16: memref<1x1024xf32, #tpu.memory_space<vmem>>, %arg17: memref<1x1024xf32, #tpu.memory_space<vmem>>, %arg18: memref<1024x512xbf16, #tpu.memory_space<vmem>>, %arg19: memref<1x512xf32, #tpu.memory_space<vmem>>, %arg20: memref<1x512xf32, #tpu.memory_space<vmem>>, %arg21: memref<1x512xf32, #tpu.memory_space<vmem>>, %arg22: memref<1x512xf32, #tpu.memory_space<vmem>>, %arg23: memref<16x1xf32, #tpu.memory_space<vmem>>) attributes {dimension_semantics = [#tpu.dimension_semantics<parallel>], iteration_bounds = array<i64: 1>, scalar_prefetch = 0 : i64, scratch_operands = 0 : i64, tpu.core_type = #tpu.core_type<tc>, window_params = [{transform_indices = @transform_0, window_bounds = array<i64: 1, 1>}, {transform_indices = @transform_1, window_bounds = array<i64: 1, 1>}, {transform_indices = @transform_2, window_bounds = array<i64: 1, 1>}, {transform_indices = @transform_3, window_bounds = array<i64: 16, 128>}, {transform_indices = @transform_4, window_bounds = array<i64: 16, 32>}, {pipeline_mode = #tpu.pipeline_mode<synchronous>, transform_indices = @transform_5, window_bounds = array<i64: 1, 128>}, {pipeline_mode = #tpu.pipeline_mode<synchronous>, transform_indices = @transform_6, window_bounds = array<i64: 1, 128>}, {pipeline_mode = #tpu.pipeline_mode<synchronous>, transform_indices = @transform_7, window_bounds = array<i64: 1, 128>}, {pipeline_mode = #tpu.pipeline_mode<synchronous>, transform_indices = @transform_8, window_bounds = array<i64: 128, 128>}, {pipeline_mode = #tpu.pipeline_mode<synchronous>, transform_indices = @transform_9, window_bounds = array<i64: 1, 128>}, {pipeline_mode = #tpu.pipeline_mode<synchronous>, transform_indices = @transform_10, window_bounds = array<i64: 1, 128>}, {pipeline_mode = #tpu.pipeline_mode<synchronous>, transform_indices = @transform_11, window_bounds = array<i64: 1, 128>}, {pipeline_mode = #tpu.pipeline_mode<synchronous>, transform_indices = @transform_12, window_bounds = array<i64: 32, 1024>}, {pipeline_mode = #tpu.pipeline_mode<synchronous>, transform_indices = @transform_13, window_bounds = array<i64: 128, 1024>}, {pipeline_mode = #tpu.pipeline_mode<synchronous>, transform_indices = @transform_14, window_bounds = array<i64: 1, 1024>}, {pipeline_mode = #tpu.pipeline_mode<synchronous>, transform_indices = @transform_15, window_bounds = array<i64: 1, 1024>}, {pipeline_mode = #tpu.pipeline_mode<synchronous>, transform_indices = @transform_16, window_bounds = array<i64: 1, 1024>}, {pipeline_mode = #tpu.pipeline_mode<synchronous>, transform_indices = @transform_17, window_bounds = array<i64: 1024, 512>}, {pipeline_mode = #tpu.pipeline_mode<synchronous>, transform_indices = @transform_18, window_bounds = array<i64: 1, 512>}, {pipeline_mode = #tpu.pipeline_mode<synchronous>, transform_indices = @transform_19, window_bounds = array<i64: 1, 512>}, {pipeline_mode = #tpu.pipeline_mode<synchronous>, transform_indices = @transform_20, window_bounds = array<i64: 1, 512>}, {pipeline_mode = #tpu.pipeline_mode<synchronous>, transform_indices = @transform_21, window_bounds = array<i64: 1, 512>}, {transform_indices = @transform_22, window_bounds = array<i64: 16, 1>}]} {
    %c0 = arith.constant 0 : index
    %c0_0 = arith.constant 0 : index
    %0 = vector.load %arg4[%c0, %c0_0] : memref<16x128xf32, #tpu.memory_space<vmem>>, vector<16x128xf32>
    %c0_1 = arith.constant 0 : index
    %c0_2 = arith.constant 0 : index
    %1 = vector.load %arg6[%c0_1, %c0_2] : memref<1x128xf32, #tpu.memory_space<vmem>>, vector<1x128xf32>
    %2 = vector.broadcast %1 : vector<1x128xf32> to vector<16x128xf32>
    %3 = arith.addf %0, %2 : vector<16x128xf32>
    %c0_3 = arith.constant 0 : index
    %c0_4 = arith.constant 0 : index
    %4 = memref.load %arg1[%c0_3, %c0_4] : memref<1x1xf32, #tpu.memory_space<smem>>
    %cst = arith.constant 0.000000e+00 : f32
    %5 = vector.broadcast %cst : f32 to vector<16x128xf32>
    %6 = arith.cmpf ogt, %3, %5 : vector<16x128xf32>
    %7 = vector.broadcast %4 : f32 to vector<16x128xf32>
    %8 = arith.mulf %7, %3 : vector<16x128xf32>
    %9 = arith.select %6, %3, %8 : vector<16x128xi1>, vector<16x128xf32>
    %c0_5 = arith.constant 0 : index
    %c0_6 = arith.constant 0 : index
    %10 = vector.load %arg7[%c0_5, %c0_6] : memref<1x128xf32, #tpu.memory_space<vmem>>, vector<1x128xf32>
    %c0_7 = arith.constant 0 : index
    %c0_8 = arith.constant 0 : index
    %11 = vector.load %arg8[%c0_7, %c0_8] : memref<1x128xf32, #tpu.memory_space<vmem>>, vector<1x128xf32>
    %cst_9 = arith.constant dense<0.000000e+00> : vector<16xf32>
    %12 = vector.multi_reduction <add>, %9, %cst_9 [1] : vector<16x128xf32> to vector<16xf32>
    %13 = vector.shape_cast %12 : vector<16xf32> to vector<16x1xf32>
    %cst_10 = arith.constant 0.00999999977 : f32
    %14 = vector.broadcast %cst_10 : f32 to vector<16x1xf32>
    %15 = arith.mulf %13, %14 : vector<16x1xf32>
    %16 = arith.mulf %9, %9 : vector<16x128xf32>
    %cst_11 = arith.constant dense<0.000000e+00> : vector<16xf32>
    %17 = vector.multi_reduction <add>, %16, %cst_11 [1] : vector<16x128xf32> to vector<16xf32>
    %18 = vector.shape_cast %17 : vector<16xf32> to vector<16x1xf32>
    %cst_12 = arith.constant 0.00999999977 : f32
    %19 = vector.broadcast %cst_12 : f32 to vector<16x1xf32>
    %20 = arith.mulf %18, %19 : vector<16x1xf32>
    %21 = arith.mulf %15, %15 : vector<16x1xf32>
    %22 = arith.subf %20, %21 : vector<16x1xf32>
    %23 = vector.broadcast %15 : vector<16x1xf32> to vector<16x128xf32>
    %24 = arith.subf %9, %23 : vector<16x128xf32>
    %cst_13 = arith.constant 9.99999974E-6 : f32
    %25 = vector.broadcast %cst_13 : f32 to vector<16x1xf32>
    %26 = arith.addf %22, %25 : vector<16x1xf32>
    %27 = math.rsqrt %26 : vector<16x1xf32>
    %28 = vector.broadcast %27 : vector<16x1xf32> to vector<16x128xf32>
    %29 = arith.mulf %24, %28 : vector<16x128xf32>
    %30 = vector.broadcast %10 : vector<1x128xf32> to vector<16x128xf32>
    %31 = arith.mulf %29, %30 : vector<16x128xf32>
    %32 = vector.broadcast %11 : vector<1x128xf32> to vector<16x128xf32>
    %33 = arith.addf %31, %32 : vector<16x128xf32>
    %34 = arith.truncf %33 : vector<16x128xf32> to vector<16x128xbf16>
    %c0_14 = arith.constant 0 : index
    %c0_15 = arith.constant 0 : index
    %35 = vector.load %arg9[%c0_14, %c0_15] : memref<128x128xbf16, #tpu.memory_space<vmem>>, vector<128x128xbf16>
    %cst_16 = arith.constant dense<0.000000e+00> : vector<16x128xf32>
    %36 = tpu.matmul %34, %35, %cst_16 {dimension_numbers = #tpu.dot_dimension_numbers<[1], [0], [0], [1], [0, 0, 1, 1], [], []>} : vector<16x128xbf16>, vector<128x128xbf16>, vector<16x128xf32> -> vector<16x128xf32>
    %c0_17 = arith.constant 0 : index
    %c0_18 = arith.constant 0 : index
    %37 = vector.load %arg10[%c0_17, %c0_18] : memref<1x128xf32, #tpu.memory_space<vmem>>, vector<1x128xf32>
    %38 = vector.broadcast %37 : vector<1x128xf32> to vector<16x128xf32>
    %39 = arith.addf %36, %38 : vector<16x128xf32>
    %c0_19 = arith.constant 0 : index
    %c0_20 = arith.constant 0 : index
    %40 = memref.load %arg2[%c0_19, %c0_20] : memref<1x1xf32, #tpu.memory_space<smem>>
    %cst_21 = arith.constant 0.000000e+00 : f32
    %41 = vector.broadcast %cst_21 : f32 to vector<16x128xf32>
    %42 = arith.cmpf ogt, %39, %41 : vector<16x128xf32>
    %43 = vector.broadcast %40 : f32 to vector<16x128xf32>
    %44 = arith.mulf %43, %39 : vector<16x128xf32>
    %45 = arith.select %42, %39, %44 : vector<16x128xi1>, vector<16x128xf32>
    %c0_22 = arith.constant 0 : index
    %c0_23 = arith.constant 0 : index
    %46 = vector.load %arg11[%c0_22, %c0_23] : memref<1x128xf32, #tpu.memory_space<vmem>>, vector<1x128xf32>
    %c0_24 = arith.constant 0 : index
    %c0_25 = arith.constant 0 : index
    %47 = vector.load %arg12[%c0_24, %c0_25] : memref<1x128xf32, #tpu.memory_space<vmem>>, vector<1x128xf32>
    %cst_26 = arith.constant dense<0.000000e+00> : vector<16xf32>
    %48 = vector.multi_reduction <add>, %45, %cst_26 [1] : vector<16x128xf32> to vector<16xf32>
    %49 = vector.shape_cast %48 : vector<16xf32> to vector<16x1xf32>
    %cst_27 = arith.constant 0.00999999977 : f32
    %50 = vector.broadcast %cst_27 : f32 to vector<16x1xf32>
    %51 = arith.mulf %49, %50 : vector<16x1xf32>
    %52 = arith.mulf %45, %45 : vector<16x128xf32>
    %cst_28 = arith.constant dense<0.000000e+00> : vector<16xf32>
    %53 = vector.multi_reduction <add>, %52, %cst_28 [1] : vector<16x128xf32> to vector<16xf32>
    %54 = vector.shape_cast %53 : vector<16xf32> to vector<16x1xf32>
    %cst_29 = arith.constant 0.00999999977 : f32
    %55 = vector.broadcast %cst_29 : f32 to vector<16x1xf32>
    %56 = arith.mulf %54, %55 : vector<16x1xf32>
    %57 = arith.mulf %51, %51 : vector<16x1xf32>
    %58 = arith.subf %56, %57 : vector<16x1xf32>
    %59 = vector.broadcast %51 : vector<16x1xf32> to vector<16x128xf32>
    %60 = arith.subf %45, %59 : vector<16x128xf32>
    %cst_30 = arith.constant 9.99999974E-6 : f32
    %61 = vector.broadcast %cst_30 : f32 to vector<16x1xf32>
    %62 = arith.addf %58, %61 : vector<16x1xf32>
    %63 = math.rsqrt %62 : vector<16x1xf32>
    %64 = vector.broadcast %63 : vector<16x1xf32> to vector<16x128xf32>
    %65 = arith.mulf %60, %64 : vector<16x128xf32>
    %66 = vector.broadcast %46 : vector<1x128xf32> to vector<16x128xf32>
    %67 = arith.mulf %65, %66 : vector<16x128xf32>
    %68 = vector.broadcast %47 : vector<1x128xf32> to vector<16x128xf32>
    %69 = arith.addf %67, %68 : vector<16x128xf32>
    %c0_31 = arith.constant 0 : index
    %c0_32 = arith.constant 0 : index
    %70 = vector.load %arg5[%c0_31, %c0_32] : memref<16x32xbf16, #tpu.memory_space<vmem>>, vector<16x32xbf16>
    %c0_33 = arith.constant 0 : index
    %c0_34 = arith.constant 0 : index
    %71 = vector.load %arg13[%c0_33, %c0_34] : memref<32x1024xbf16, #tpu.memory_space<vmem>>, vector<32x1024xbf16>
    %cst_35 = arith.constant dense<0.000000e+00> : vector<16x1024xf32>
    %72 = tpu.matmul %70, %71, %cst_35 {dimension_numbers = #tpu.dot_dimension_numbers<[1], [0], [0], [1], [0, 0, 1, 1], [], []>} : vector<16x32xbf16>, vector<32x1024xbf16>, vector<16x1024xf32> -> vector<16x1024xf32>
    %73 = arith.truncf %69 : vector<16x128xf32> to vector<16x128xbf16>
    %c0_36 = arith.constant 0 : index
    %c0_37 = arith.constant 0 : index
    %74 = vector.load %arg14[%c0_36, %c0_37] : memref<128x1024xbf16, #tpu.memory_space<vmem>>, vector<128x1024xbf16>
    %cst_38 = arith.constant dense<0.000000e+00> : vector<16x1024xf32>
    %75 = tpu.matmul %73, %74, %cst_38 {dimension_numbers = #tpu.dot_dimension_numbers<[1], [0], [0], [1], [0, 0, 1, 1], [], []>} : vector<16x128xbf16>, vector<128x1024xbf16>, vector<16x1024xf32> -> vector<16x1024xf32>
    %76 = arith.addf %72, %75 : vector<16x1024xf32>
    %c0_39 = arith.constant 0 : index
    %c0_40 = arith.constant 0 : index
    %77 = vector.load %arg15[%c0_39, %c0_40] : memref<1x1024xf32, #tpu.memory_space<vmem>>, vector<1x1024xf32>
    %78 = vector.broadcast %77 : vector<1x1024xf32> to vector<16x1024xf32>
    %79 = arith.addf %76, %78 : vector<16x1024xf32>
    %c0_41 = arith.constant 0 : index
    %c0_42 = arith.constant 0 : index
    %80 = vector.load %arg16[%c0_41, %c0_42] : memref<1x1024xf32, #tpu.memory_space<vmem>>, vector<1x1024xf32>
    %c0_43 = arith.constant 0 : index
    %c0_44 = arith.constant 0 : index
    %81 = vector.load %arg17[%c0_43, %c0_44] : memref<1x1024xf32, #tpu.memory_space<vmem>>, vector<1x1024xf32>
    %cst_45 = arith.constant dense<0.000000e+00> : vector<16xf32>
    %82 = vector.multi_reduction <add>, %79, %cst_45 [1] : vector<16x1024xf32> to vector<16xf32>
    %83 = vector.shape_cast %82 : vector<16xf32> to vector<16x1xf32>
    %cst_46 = arith.constant 1.024000e+03 : f32
    %84 = vector.broadcast %cst_46 : f32 to vector<16x1xf32>
    %85 = arith.divf %83, %84 : vector<16x1xf32>
    %86 = arith.mulf %79, %79 : vector<16x1024xf32>
    %cst_47 = arith.constant dense<0.000000e+00> : vector<16xf32>
    %87 = vector.multi_reduction <add>, %86, %cst_47 [1] : vector<16x1024xf32> to vector<16xf32>
    %88 = vector.shape_cast %87 : vector<16xf32> to vector<16x1xf32>
    %cst_48 = arith.constant 1.024000e+03 : f32
    %89 = vector.broadcast %cst_48 : f32 to vector<16x1xf32>
    %90 = arith.divf %88, %89 : vector<16x1xf32>
    %91 = arith.mulf %85, %85 : vector<16x1xf32>
    %92 = arith.subf %90, %91 : vector<16x1xf32>
    %93 = vector.broadcast %85 : vector<16x1xf32> to vector<16x1024xf32>
    %94 = arith.subf %79, %93 : vector<16x1024xf32>
    %cst_49 = arith.constant 9.99999974E-6 : f32
    %95 = vector.broadcast %cst_49 : f32 to vector<16x1xf32>
    %96 = arith.addf %92, %95 : vector<16x1xf32>
    %97 = math.rsqrt %96 : vector<16x1xf32>
    %98 = vector.broadcast %97 : vector<16x1xf32> to vector<16x1024xf32>
    %99 = arith.mulf %94, %98 : vector<16x1024xf32>
    %100 = vector.broadcast %80 : vector<1x1024xf32> to vector<16x1024xf32>
    %101 = arith.mulf %99, %100 : vector<16x1024xf32>
    %102 = vector.broadcast %81 : vector<1x1024xf32> to vector<16x1024xf32>
    %103 = arith.addf %101, %102 : vector<16x1024xf32>
    %cst_50 = arith.constant 0.000000e+00 : f32
    %104 = vector.broadcast %cst_50 : f32 to vector<16x1024xf32>
    %105 = arith.maximumf %103, %104 : vector<16x1024xf32>
    %106 = arith.truncf %105 : vector<16x1024xf32> to vector<16x1024xbf16>
    %c0_51 = arith.constant 0 : index
    %c0_52 = arith.constant 0 : index
    %107 = vector.load %arg18[%c0_51, %c0_52] : memref<1024x512xbf16, #tpu.memory_space<vmem>>, vector<1024x512xbf16>
    %cst_53 = arith.constant dense<0.000000e+00> : vector<16x512xf32>
    %108 = tpu.matmul %106, %107, %cst_53 {dimension_numbers = #tpu.dot_dimension_numbers<[1], [0], [0], [1], [0, 0, 1, 1], [], []>} : vector<16x1024xbf16>, vector<1024x512xbf16>, vector<16x512xf32> -> vector<16x512xf32>
    %c0_54 = arith.constant 0 : index
    %c0_55 = arith.constant 0 : index
    %109 = vector.load %arg19[%c0_54, %c0_55] : memref<1x512xf32, #tpu.memory_space<vmem>>, vector<1x512xf32>
    %110 = vector.broadcast %109 : vector<1x512xf32> to vector<16x512xf32>
    %111 = arith.addf %108, %110 : vector<16x512xf32>
    %c0_56 = arith.constant 0 : index
    %c0_57 = arith.constant 0 : index
    %112 = vector.load %arg20[%c0_56, %c0_57] : memref<1x512xf32, #tpu.memory_space<vmem>>, vector<1x512xf32>
    %c0_58 = arith.constant 0 : index
    %c0_59 = arith.constant 0 : index
    %113 = vector.load %arg21[%c0_58, %c0_59] : memref<1x512xf32, #tpu.memory_space<vmem>>, vector<1x512xf32>
    %cst_60 = arith.constant dense<0.000000e+00> : vector<16xf32>
    %114 = vector.multi_reduction <add>, %111, %cst_60 [1] : vector<16x512xf32> to vector<16xf32>
    %115 = vector.shape_cast %114 : vector<16xf32> to vector<16x1xf32>
    %cst_61 = arith.constant 5.120000e+02 : f32
    %116 = vector.broadcast %cst_61 : f32 to vector<16x1xf32>
    %117 = arith.divf %115, %116 : vector<16x1xf32>
    %118 = arith.mulf %111, %111 : vector<16x512xf32>
    %cst_62 = arith.constant dense<0.000000e+00> : vector<16xf32>
    %119 = vector.multi_reduction <add>, %118, %cst_62 [1] : vector<16x512xf32> to vector<16xf32>
    %120 = vector.shape_cast %119 : vector<16xf32> to vector<16x1xf32>
    %cst_63 = arith.constant 5.120000e+02 : f32
    %121 = vector.broadcast %cst_63 : f32 to vector<16x1xf32>
    %122 = arith.divf %120, %121 : vector<16x1xf32>
    %123 = arith.mulf %117, %117 : vector<16x1xf32>
    %124 = arith.subf %122, %123 : vector<16x1xf32>
    %125 = vector.broadcast %117 : vector<16x1xf32> to vector<16x512xf32>
    %126 = arith.subf %111, %125 : vector<16x512xf32>
    %cst_64 = arith.constant 9.99999974E-6 : f32
    %127 = vector.broadcast %cst_64 : f32 to vector<16x1xf32>
    %128 = arith.addf %124, %127 : vector<16x1xf32>
    %129 = math.rsqrt %128 : vector<16x1xf32>
    %130 = vector.broadcast %129 : vector<16x1xf32> to vector<16x512xf32>
    %131 = arith.mulf %126, %130 : vector<16x512xf32>
    %132 = vector.broadcast %112 : vector<1x512xf32> to vector<16x512xf32>
    %133 = arith.mulf %131, %132 : vector<16x512xf32>
    %134 = vector.broadcast %113 : vector<1x512xf32> to vector<16x512xf32>
    %135 = arith.addf %133, %134 : vector<16x512xf32>
    %cst_65 = arith.constant 0.000000e+00 : f32
    %136 = vector.broadcast %cst_65 : f32 to vector<16x512xf32>
    %137 = arith.maximumf %135, %136 : vector<16x512xf32>
    %c0_66 = arith.constant 0 : index
    %c0_67 = arith.constant 0 : index
    %138 = vector.load %arg22[%c0_66, %c0_67] : memref<1x512xf32, #tpu.memory_space<vmem>>, vector<1x512xf32>
    %139 = vector.broadcast %138 : vector<1x512xf32> to vector<16x512xf32>
    %140 = arith.mulf %137, %139 : vector<16x512xf32>
    %cst_68 = arith.constant dense<0.000000e+00> : vector<16xf32>
    %141 = vector.multi_reduction <add>, %140, %cst_68 [1] : vector<16x512xf32> to vector<16xf32>
    %142 = vector.shape_cast %141 : vector<16xf32> to vector<16x1xf32>
    %c0_69 = arith.constant 0 : index
    %c0_70 = arith.constant 0 : index
    %143 = memref.load %arg3[%c0_69, %c0_70] : memref<1x1xf32, #tpu.memory_space<smem>>
    %144 = vector.broadcast %143 : f32 to vector<16x1xf32>
    %145 = arith.addf %142, %144 : vector<16x1xf32>
    %c0_71 = arith.constant 0 : index
    %c0_72 = arith.constant 0 : index
    %146 = vector.load %arg23[%c0_71, %c0_72] : memref<16x1xf32, #tpu.memory_space<vmem>>, vector<16x1xf32>
    tpu.vector_store %arg23[%c0_71, %c0_72], %145 {strides = array<i32>} : memref<16x1xf32, #tpu.memory_space<vmem>>, vector<16x1xf32>,
    return
  }
  func.func @transform_0(%arg0: i32) -> (i32, i32) {
    %c0_i32 = arith.constant 0 : i32
    %c0_i32_0 = arith.constant 0 : i32
    %c0_i32_1 = arith.constant 0 : i32
    return %c0_i32, %c0_i32_0 : i32, i32
  }
  func.func @transform_1(%arg0: i32) -> (i32, i32) {
    %c0_i32 = arith.constant 0 : i32
    %c0_i32_0 = arith.constant 0 : i32
    %c0_i32_1 = arith.constant 0 : i32
    return %c0_i32, %c0_i32_0 : i32, i32
  }
  func.func @transform_2(%arg0: i32) -> (i32, i32) {
    %c0_i32 = arith.constant 0 : i32
    %c0_i32_0 = arith.constant 0 : i32
    %c0_i32_1 = arith.constant 0 : i32
    return %c0_i32, %c0_i32_0 : i32, i32
  }
  func.func @transform_3(%arg0: i32) -> (i32, i32) {
    %c0_i32 = arith.constant 0 : i32
    %c0_i32_0 = arith.constant 0 : i32
    return %arg0, %c0_i32 : i32, i32
  }
  func.func @transform_4(%arg0: i32) -> (i32, i32) {
    %c0_i32 = arith.constant 0 : i32
    %c0_i32_0 = arith.constant 0 : i32
    return %arg0, %c0_i32 : i32, i32
  }
  func.func @transform_5(%arg0: i32) -> (i32, i32) {
    %c0_i32 = arith.constant 0 : i32
    %c0_i32_0 = arith.constant 0 : i32
    %c0_i32_1 = arith.constant 0 : i32
    return %c0_i32, %c0_i32_0 : i32, i32
  }
  func.func @transform_6(%arg0: i32) -> (i32, i32) {
    %c0_i32 = arith.constant 0 : i32
    %c0_i32_0 = arith.constant 0 : i32
    %c0_i32_1 = arith.constant 0 : i32
    return %c0_i32, %c0_i32_0 : i32, i32
  }
  func.func @transform_7(%arg0: i32) -> (i32, i32) {
    %c0_i32 = arith.constant 0 : i32
    %c0_i32_0 = arith.constant 0 : i32
    %c0_i32_1 = arith.constant 0 : i32
    return %c0_i32, %c0_i32_0 : i32, i32
  }
  func.func @transform_8(%arg0: i32) -> (i32, i32) {
    %c0_i32 = arith.constant 0 : i32
    %c0_i32_0 = arith.constant 0 : i32
    %c0_i32_1 = arith.constant 0 : i32
    return %c0_i32, %c0_i32_0 : i32, i32
  }
  func.func @transform_9(%arg0: i32) -> (i32, i32) {
    %c0_i32 = arith.constant 0 : i32
    %c0_i32_0 = arith.constant 0 : i32
    %c0_i32_1 = arith.constant 0 : i32
    return %c0_i32, %c0_i32_0 : i32, i32
  }
  func.func @transform_10(%arg0: i32) -> (i32, i32) {
    %c0_i32 = arith.constant 0 : i32
    %c0_i32_0 = arith.constant 0 : i32
    %c0_i32_1 = arith.constant 0 : i32
    return %c0_i32, %c0_i32_0 : i32, i32
  }
  func.func @transform_11(%arg0: i32) -> (i32, i32) {
    %c0_i32 = arith.constant 0 : i32
    %c0_i32_0 = arith.constant 0 : i32
    %c0_i32_1 = arith.constant 0 : i32
    return %c0_i32, %c0_i32_0 : i32, i32
  }
  func.func @transform_12(%arg0: i32) -> (i32, i32) {
    %c0_i32 = arith.constant 0 : i32
    %c0_i32_0 = arith.constant 0 : i32
    %c0_i32_1 = arith.constant 0 : i32
    return %c0_i32, %c0_i32_0 : i32, i32
  }
  func.func @transform_13(%arg0: i32) -> (i32, i32) {
    %c0_i32 = arith.constant 0 : i32
    %c0_i32_0 = arith.constant 0 : i32
    %c0_i32_1 = arith.constant 0 : i32
    return %c0_i32, %c0_i32_0 : i32, i32
  }
  func.func @transform_14(%arg0: i32) -> (i32, i32) {
    %c0_i32 = arith.constant 0 : i32
    %c0_i32_0 = arith.constant 0 : i32
    %c0_i32_1 = arith.constant 0 : i32
    return %c0_i32, %c0_i32_0 : i32, i32
  }
  func.func @transform_15(%arg0: i32) -> (i32, i32) {
    %c0_i32 = arith.constant 0 : i32
    %c0_i32_0 = arith.constant 0 : i32
    %c0_i32_1 = arith.constant 0 : i32
    return %c0_i32, %c0_i32_0 : i32, i32
  }
  func.func @transform_16(%arg0: i32) -> (i32, i32) {
    %c0_i32 = arith.constant 0 : i32
    %c0_i32_0 = arith.constant 0 : i32
    %c0_i32_1 = arith.constant 0 : i32
    return %c0_i32, %c0_i32_0 : i32, i32
  }
  func.func @transform_17(%arg0: i32) -> (i32, i32) {
    %c0_i32 = arith.constant 0 : i32
    %c0_i32_0 = arith.constant 0 : i32
    %c0_i32_1 = arith.constant 0 : i32
    return %c0_i32, %c0_i32_0 : i32, i32
  }
  func.func @transform_18(%arg0: i32) -> (i32, i32) {
    %c0_i32 = arith.constant 0 : i32
    %c0_i32_0 = arith.constant 0 : i32
    %c0_i32_1 = arith.constant 0 : i32
    return %c0_i32, %c0_i32_0 : i32, i32
  }
  func.func @transform_19(%arg0: i32) -> (i32, i32) {
    %c0_i32 = arith.constant 0 : i32
    %c0_i32_0 = arith.constant 0 : i32
    %c0_i32_1 = arith.constant 0 : i32
    return %c0_i32, %c0_i32_0 : i32, i32
  }
  func.func @transform_20(%arg0: i32) -> (i32, i32) {
    %c0_i32 = arith.constant 0 : i32
    %c0_i32_0 = arith.constant 0 : i32
    %c0_i32_1 = arith.constant 0 : i32
    return %c0_i32, %c0_i32_0 : i32, i32
  }
  func.func @transform_21(%arg0: i32) -> (i32, i32) {
    %c0_i32 = arith.constant 0 : i32
    %c0_i32_0 = arith.constant 0 : i32
    %c0_i32_1 = arith.constant 0 : i32
    return %c0_i32, %c0_i32_0 : i32, i32
  }
  func.func @transform_22(%arg0: i32) -> (i32, i32) {
    %c0_i32 = arith.constant 0 : i32
    %c0_i32_0 = arith.constant 0 : i32
    return %arg0, %c0_i32 : i32, i32
  }
}

</mosaic_0001>

<bundles_post_ra>
// kernel: mlp_forward.1
= control target key start
LH: loop header
LB: loop body
LE: loop exit
PB: predicated region body
PF: predicated region fallthrough
CT: control target
= control target key end

     0   :  { %s6532_s0 = inlined_call_operand.<no memory space> [shape: f32[1,1], index: 0, kind: input, shape index: {}]   ;;  %s6533_s1 = inlined_call_operand.<no memory space> [shape: f32[1,1], index: 1, kind: input, shape index: {}]   ;;  %s6534_s2 = inlined_call_operand.<no memory space> [shape: f32[1,1], index: 2, kind: input, shape index: {}]   ;;  %s6535_s3 = inlined_call_operand.vmem [shape: f32[16,128], index: 3, kind: input, shape index: {}]   ;;  %s6536_s4 = inlined_call_operand.vmem [shape: bf16[16,32], index: 4, kind: input, shape index: {}]   ;;  %s6537_s5 = inlined_call_operand.hbm [shape: f32[1,128], index: 5, kind: input, shape index: {}]   ;;  %s6538_s6 = inlined_call_operand.hbm [shape: f32[1,128], index: 6, kind: input, shape index: {}]   ;;  %s6539_s7 = inlined_call_operand.hbm [shape: f32[1,128], index: 7, kind: input, shape index: {}]   ;;  %s6540_s8 = inlined_call_operand.hbm [shape: bf16[128,128], index: 8, kind: input, shape index: {}]   ;;  %s6541_s9 = inlined_call_operand.hbm [shape: f32[1,128], index: 9, kind: input, shape index: {}]   ;;  %s6542_s10 = inlined_call_operand.hbm [shape: f32[1,128], index: 10, kind: input, shape index: {}]   ;;  %s6543_s11 = inlined_call_operand.hbm [shape: f32[1,128], index: 11, kind: input, shape index: {}]   ;;  %s6544_s12 = inlined_call_operand.hbm [shape: bf16[32,1024], index: 12, kind: input, shape index: {}]   ;;  %s6545_s13 = inlined_call_operand.hbm [shape: bf16[128,1024], index: 13, kind: input, shape index: {}]   ;;  %s6546_s14 = inlined_call_operand.hbm [shape: f32[1,1024], index: 14, kind: input, shape index: {}]   ;;  %s6547_s15 = inlined_call_operand.hbm [shape: f32[1,1024], index: 15, kind: input, shape index: {}]   ;;  %s6548_s16 = inlined_call_operand.hbm [shape: f32[1,1024], index: 16, kind: input, shape index: {}]   ;;  %s6549_s17 = inlined_call_operand.hbm [shape: bf16[1024,512], index: 17, kind: input, shape index: {}]   ;;  %s6550_s18 = inlined_call_operand.hbm [shape: f32[1,512], index: 18, kind: input, shape index: {}]   ;;  %s6551_s19 = inlined_call_operand.hbm [shape: f32[1,512], index: 19, kind: input, shape index: {}]   ;;  %s6552_s20 = inlined_call_operand.hbm [shape: f32[1,512], index: 20, kind: input, shape index: {}]   ;;  %s6553_s21 = inlined_call_operand.hbm [shape: f32[1,512], index: 21, kind: input, shape index: {}]   ;;  %s6554_s22 = inlined_call_operand.vmem [shape: f32[16,1], index: 22, kind: output, shape index: {}]  }
   0x1   :  { %6557 = sst [smem:[#allocation40_spill]] %s6532_s0 }
   0x2   :  { %6558 = sst [smem:[#allocation41_spill]] %s6533_s1 }
   0x3   :  { %6559 = sst [smem:[#allocation42_spill]] %s6534_s2 }
   0x4   :  { %6560 = sst [smem:[#allocation43_spill]] %s6535_s3 }
   0x5   :  { %6561 = sst [smem:[#allocation44_spill]] %s6536_s4 }
   0x6   :  { %6562 = sst [smem:[#allocation45_spill]] %s6537_s5 }
   0x7   :  { %6563 = sst [smem:[#allocation46_spill]] %s6538_s6 }
   0x8   :  { %6564 = sst [smem:[#allocation47_spill]] %s6554_s22 }
   0x9   :  { %30 = vsyncpa [#allocation6], 0 }
   0xa   :  { %31 = vsyncpa [#allocation8], 0 }
   0xb   :  { %32 = vsyncpa [#allocation11], 0 }
   0xc   :  { %33 = vsyncpa [#allocation14], 0 }
   0xd   :  { %34 = vsyncpa [#allocation17], 0 }
   0xe   :  { %35 = vsyncpa [#allocation20], 0 }
   0xf   :  { %36 = vsyncpa [#allocation23], 0 }
  0x10   :  { %37 = vsyncpa [#allocation26], 0  ;;  %s6565_s29 = sld [smem:[#allocation46_spill]] }
  0x16   :  { %s65_s30 = sshll.u32 %s6565_s29, 4  ;;  %s66_s30 = int_to_ptr.hbm [resolvable:$true] %s65_s30 }
  0x17   :  { %38 = vsyncpa [#allocation29], 0  ;;  %s5872_s4 = smov [#allocation7]   ;;  %s86_s5 = sshll.u32 %s6540_s8, 4  ;;  %s87_s5 = int_to_ptr.hbm [resolvable:$true] %s86_s5 }
  0x18   :  { %s67_s0 = sshll.u32 %s5872_s4, 4  ;;  %s5873_s24 = smov [#allocation10]   ;;  %s68_s0 = int_to_ptr.vmem [resolvable:$true] %s67_s0 }
  0x19   :  { %70 = dma.hbm_to_vmem [thread:$0]  %s66_s30, 16, %s68_s0, [#allocation8]  }
  0x1a   :  { %s88_s6 = sshll.u32 %s5873_s24, 4  ;;  %s5874_s25 = smov 64   ;;  %s89_s6 = int_to_ptr.vmem [resolvable:$true] %s88_s6 }
  0x1b   :  { %s5875_s26 = smov 4   ;;  %s111_s3 = sshll.u32 %s6542_s10, 4  ;;  %s112_s3 = int_to_ptr.hbm [resolvable:$true] %s111_s3 }
  0x1c   :  { %94 = dma.hbm_to_vmem [thread:$0]  %s87_s5, 1024, %s89_s6, [#allocation11], %s5874_s25, %s5874_s25, %s5875_s26  }
  0x1d   :  { %s5876_s28 = smov [#allocation13]   ;;  %s132_s8 = sshll.u32 %s6544_s12, 4  ;;  %s133_s8 = int_to_ptr.hbm [resolvable:$true] %s132_s8 }
  0x1e   :  { %s113_s29 = sshll.u32 %s5876_s28, 4  ;;  %s5877_s30 = smov [#allocation16]   ;;  %s114_s29 = int_to_ptr.vmem [resolvable:$true] %s113_s29 }
  0x1f   :  { %116 = dma.hbm_to_vmem [thread:$0]  %s112_s3, 16, %s114_s29, [#allocation14]  }
  0x20   :  { %s134_s0 = sshll.u32 %s5877_s30, 4  ;;  %s5878_s23 = smov 512   ;;  %s135_s0 = int_to_ptr.vmem [resolvable:$true] %s134_s0 }
  0x21   :  { %s5879_s1 = smov 32   ;;  %s159_s24 = sshll.u32 %s6546_s14, 4  ;;  %s160_s24 = int_to_ptr.hbm [resolvable:$true] %s159_s24 }
  0x22   :  { %140 = dma.hbm_to_vmem [thread:$0]  %s133_s8, 2048, %s135_s0, [#allocation17], %s5878_s23, %s5878_s23, %s5879_s1  }
  0x23   :  { %s5880_s6 = smov [#allocation19]   ;;  %s181_s26 = sshll.u32 %s6548_s16, 4  ;;  %s182_s26 = int_to_ptr.hbm [resolvable:$true] %s181_s26 }
  0x24   :  { %s161_s25 = sshll.u32 %s5880_s6, 4  ;;  %s5881_s2 = smov [#allocation22]   ;;  %s162_s25 = int_to_ptr.vmem [resolvable:$true] %s161_s25 }
  0x25   :  { %164 = dma.hbm_to_vmem [thread:$0]  %s160_s24, 128, %s162_s25, [#allocation20]  }
  0x26   :  { %s183_s27 = sshll.u32 %s5881_s2, 4  ;;  %s205_s29 = sshll.u32 %s6550_s18, 4  ;;  %s184_s27 = int_to_ptr.vmem [resolvable:$true] %s183_s27  ;;  %s206_s29 = int_to_ptr.hbm [resolvable:$true] %s205_s29 }
  0x27   :  { %186 = dma.hbm_to_vmem [thread:$0]  %s182_s26, 128, %s184_s27, [#allocation23]  }
  0x28   :  { %s227_s8 = sshll.u32 %s6552_s20, 4  ;;  %s5882_s30 = smov [#allocation25]   ;;  %s228_s8 = int_to_ptr.hbm [resolvable:$true] %s227_s8 }
  0x29   :  { %s207_s0 = sshll.u32 %s5882_s30, 4  ;;  %s5883_s16 = smov [#allocation28]   ;;  %s208_s0 = int_to_ptr.vmem [resolvable:$true] %s207_s0 }
  0x2a   :  { %210 = dma.hbm_to_vmem [thread:$0]  %s206_s29, 64, %s208_s0, [#allocation26]  }
  0x2b   :  { %s229_s10 = sshll.u32 %s5883_s16, 4  ;;  %s6566_s6 = sld [smem:[#allocation45_spill]]  ;;  %s230_s10 = int_to_ptr.vmem [resolvable:$true] %s229_s10 }
  0x2c   :  { %232 = dma.hbm_to_vmem [thread:$0]  %s228_s8, 64, %s230_s10, [#allocation29]  }
  0x2d   :  { %s76_s22 = sshll.u32 %s6539_s7, 4  ;;  %s5884_s26 = smov [#allocation5]   ;;  %s77_s22 = int_to_ptr.hbm [resolvable:$true] %s76_s22 }
  0x2e   :  { %s56_s20 = sshll.u32 %s5884_s26, 4  ;;  %s5885_s2 = smov [#allocation9]   ;;  %s57_s20 = int_to_ptr.vmem [resolvable:$true] %s56_s20 }
  0x2f   :  { %s78_s27 = sshll.u32 %s5885_s2, 4  ;;  %s100_s29 = sshll.u32 %s6541_s9, 4  ;;  %s79_s27 = int_to_ptr.vmem [resolvable:$true] %s78_s27  ;;  %s101_s29 = int_to_ptr.hbm [resolvable:$true] %s100_s29 }
  0x30   :  { %81 = dma.hbm_to_vmem [thread:$0]  %s77_s22, 16, %s79_s27, [#allocation8]  }
  0x31   :  { %s54_s25 = sshll.u32 %s6566_s6, 4  ;;  %s122_s8 = sshll.u32 %s6543_s11, 4  ;;  %s55_s25 = int_to_ptr.hbm [resolvable:$true] %s54_s25  ;;  %s123_s8 = int_to_ptr.hbm [resolvable:$true] %s122_s8 }
  0x32   :  { %59 = dma.hbm_to_vmem [thread:$0]  %s55_s25, 16, %s57_s20, [#allocation6]  }
  0x33   :  { %s5886_s30 = smov [#allocation12]   ;;  %s5887_s0 = smov [#allocation15]  }
  0x34   :  { %s102_s7 = sshll.u32 %s5886_s30, 4  ;;  %s124_s16 = sshll.u32 %s5887_s0, 4  ;;  %s103_s7 = int_to_ptr.vmem [resolvable:$true] %s102_s7  ;;  %s125_s16 = int_to_ptr.vmem [resolvable:$true] %s124_s16 }
  0x35   :  { %105 = dma.hbm_to_vmem [thread:$0]  %s101_s29, 16, %s103_s7, [#allocation11]  }
  0x36   :  { %s145_s24 = sshll.u32 %s6545_s13, 4  ;;  %s170_s25 = sshll.u32 %s6547_s15, 4  ;;  %s146_s24 = int_to_ptr.hbm [resolvable:$true] %s145_s24  ;;  %s171_s25 = int_to_ptr.hbm [resolvable:$true] %s170_s25 }
  0x37   :  { %127 = dma.hbm_to_vmem [thread:$0]  %s123_s8, 16, %s125_s16, [#allocation14]  }
  0x38   :  { %s5888_s18 = smov [#allocation18]   ;;  %s5889_s12 = smov [#allocation21]  }
  0x39   :  { %s147_s11 = sshll.u32 %s5888_s18, 4  ;;  %s172_s22 = sshll.u32 %s5889_s12, 4  ;;  %s148_s11 = int_to_ptr.vmem [resolvable:$true] %s147_s11  ;;  %s173_s22 = int_to_ptr.vmem [resolvable:$true] %s172_s22 }
  0x3a   :  { %153 = dma.hbm_to_vmem [thread:$0]  %s146_s24, 8192, %s148_s11, [#allocation17], %s5878_s23, %s5878_s23, %s5879_s1  }
  0x3b   :  { %s191_s13 = sshll.u32 %s6549_s17, 4  ;;  %s5890_s2 = smov [#allocation24]   ;;  %s192_s13 = int_to_ptr.hbm [resolvable:$true] %s191_s13 }
  0x3c   :  { %175 = dma.hbm_to_vmem [thread:$0]  %s171_s25, 128, %s173_s22, [#allocation20]  }
  0x3d   :  { %s193_s27 = sshll.u32 %s5890_s2, 4  ;;  %s216_s28 = sshll.u32 %s6551_s19, 4  ;;  %s194_s27 = int_to_ptr.vmem [resolvable:$true] %s193_s27  ;;  %s217_s28 = int_to_ptr.hbm [resolvable:$true] %s216_s28 }
  0x3e   :  { %s5891_s29 = smov 256   ;;  %s5892_s14 = smov 16  }
  0x3f   :  { %199 = dma.hbm_to_vmem [thread:$0]  %s192_s13, 32768, %s194_s27, [#allocation23], %s5891_s29, %s5891_s29, %s5892_s14  }
  0x40   :  { %s5893_s23 = smov [#allocation27]   ;;  %s238_s17 = sshll.u32 %s6553_s21, 4  ;;  %s239_s17 = int_to_ptr.hbm [resolvable:$true] %s238_s17 }
  0x41   :  { %s218_s1 = sshll.u32 %s5893_s23, 4  ;;  %s5894_s30 = smov [#allocation30]   ;;  %s219_s1 = int_to_ptr.vmem [resolvable:$true] %s218_s1 }
  0x42   :  { %221 = dma.hbm_to_vmem [thread:$0]  %s217_s28, 64, %s219_s1, [#allocation26]  }
  0x43   :  { %s240_s7 = sshll.u32 %s5894_s30, 4  ;;  %s241_s7 = int_to_ptr.vmem [resolvable:$true] %s240_s7 }
  0x44   :  { %243 = dma.hbm_to_vmem [thread:$0]  %s239_s17, 64, %s241_s7, [#allocation29]  }
  0x45   :  { %5854 = dma.done.wait [#allocation6], 16  }
  0x46   :  { %5855 = vsyncadd [#allocation6], 4294967280 }
  0x47   :  { %5856 = dma.done.wait [#allocation8], 32  }
  0x48   :  { %5857 = vsyncadd [#allocation8], 4294967264 }
  0x49   :  { %5858 = dma.done.wait [#allocation11], 1040  }
  0x4a   :  { %5859 = vsyncadd [#allocation11], 4294966256 }
  0x4b   :  { %5860 = dma.done.wait [#allocation14], 32  }
  0x4c   :  { %5861 = vsyncadd [#allocation14], 4294967264 }
  0x4d   :  { %5862 = dma.done.wait [#allocation17], 10240  }
  0x4e   :  { %5863 = vsyncadd [#allocation17], 4294957056 }
  0x4f   :  { %5864 = dma.done.wait [#allocation20], 256  }
  0x50   :  { %5865 = vsyncadd [#allocation20], 4294967040 }
  0x51   :  { %5866 = dma.done.wait [#allocation23], 32896  }
  0x52   :  { %5867 = vsyncadd [#allocation23], 4294934400 }
  0x53   :  { %5868 = dma.done.wait [#allocation26], 128  }
  0x54   :  { %5869 = vsyncadd [#allocation26], 4294967168 }
  0x55   :  { %5870 = dma.done.wait [#allocation29], 128  }
  0x56   :  { %5871 = vsyncadd [#allocation29], 4294967168  ;;  %s6567_s0 = sld [smem:[#allocation43_spill]]  ;;  %v5420_v1 = vld [vmem:[#allocation5] ss:$0 sm:$0xff]  ;;  %v5056_v13 = vld [vmem:[#allocation10 + $0x30] sm:$0xff] }
  0x57   :  { %s6568_s5 = sld [smem:[#allocation40_spill]]  ;;  %v5057_v12 = vld [vmem:[#allocation10 + $0x38] sm:$0xff]  ;;  %v5055_v14 = vld [vmem:[#allocation10 + $0x28] sm:$0xff]  ;;  %v5054_v15 = vld [vmem:[#allocation10 + $0x20] sm:$0xff] }
  0x58   :  { %454 = vmatpush.bf16.msra.mxu0 %v5057_v12  ;;  %v5053_v16 = vld [vmem:[#allocation10 + $0x18] sm:$0xff]  ;;  %v5052_v17 = vld [vmem:[#allocation10 + $0x10] sm:$0xff]  ;;  %v5051_v19 = vld [vmem:[#allocation10 + $0x8] sm:$0xff]  ;;  %s6569_s18 = sld [smem:[#allocation41_spill]] }
  0x59   :  { %v5050_v24 = vld [vmem:[#allocation10] sm:$0xff]  ;;  %v5421_v48 = vld [vmem:[#allocation7] ss:$0 sm:$0xff]  ;;  %v5422_v54 = vld [vmem:[#allocation9] ss:$0 sm:$0xff]  ;;  %s6570_s22 = sld [smem:[#allocation44_spill]] }
  0x5a   :  { %v3920_v59 = vld [vmem:[#allocation18 + $0x1c0] sm:$0xf]  ;;  %v5131_v61 = vld [vmem:[#allocation18 + $0x1c4] sm:$0xf]  ;;  %s6571_s13 = sld [smem:[#allocation42_spill]] }
  0x5b   :  { %v5135_v60 = vld [vmem:[#allocation18 + $0x1dc] sm:$0xf0]  ;;  %v3922_v63 = vld [vmem:[#allocation18 + $0x1e0] sm:$0xf0]  ;;  %s6572_s15 = sld [smem:[#allocation47_spill]] }
  0x5c   :  { %v313_v0 = vld [vmem:[%s6567_s0] sm:$0xff]  ;;  %v314_v3 = vld [vmem:[%s6567_s0 + $0x8] sm:$0xff]  ;;  %455 = vmatpush.bf16.msra.mxu0 %v5056_v13  ;;  %v3921_v62 = vor.u32 %v5135_v60, %v3920_v59  ;;  %v3794_v59 = vld [vmem:[#allocation18 + $0xe0] sm:$0xf0] }
  0x5d   :  { %v324_v2 = vstv %s6568_s5  ;;  %v319_v4 = vadd.f32 %v5420_v1, %v313_v0  ;;  %v320_v5 = vadd.f32 %v5420_v1, %v314_v3  ;;  %v3928_v0 = vld [vmem:[#allocation18 + $0x1c8] sm:$0xf] }
  0x5e   :  { %v5136_v1 = vld [vmem:[#allocation18 + $0x1e4] sm:$0xf0]  ;;  %935 = vmatpush.bf16.msra.mxu1 %v3921_v62 }
  0x5f   :  { %vm322_vm0 = vcmp.gt.f32.partialorder %v319_v4, 0.0  ;;  %v325_v6 = vmul.f32 %v324_v2, %v319_v4  ;;  %v326_v8 = vmul.f32 %v324_v2, %v320_v5  ;;  %vm323_vm1 = vcmp.gt.f32.partialorder %v320_v5, 0.0  ;;  %v3800_v60 = vld [vmem:[#allocation18 + $0xc8] sm:$0xf] }
  0x60   :  { %456 = vmatpush.bf16.msra.mxu0 %v5055_v14  ;;  %v3925_v2 = vor.u32 %v5131_v61, %v3922_v63  ;;  %v3929_v3 = vor.u32 %v5136_v1, %v3928_v0  ;;  %v5104_v61 = vld [vmem:[#allocation18 + $0xe4] sm:$0xf0]  ;;  %v5100_v0 = vld [vmem:[#allocation18 + $0xcc] sm:$0xf] }
  0x61   :  { %v327_v7 = vsel %vm322_vm0, %v319_v4, %v325_v6  ;;  %v328_v10 = vsel %vm323_vm1, %v320_v5, %v326_v8  ;;  %v5132_v4 = vld [vmem:[#allocation18 + $0x1cc] sm:$0xf]  ;;  %v3801_v63 = vor.u32 %v5104_v61, %v3800_v60  ;;  %v5130_v60 = vld [vmem:[#allocation18 + $0x1b4] sm:$0xf0]  ;;  %v5126_v61 = vld [vmem:[#allocation18 + $0x19c] sm:$0xf] }
  0x62   :  { %331 = vadd.xlane.f32.xlu0 %v327_v7  ;;  %v337_v9 = vmul.f32 %v327_v7, %v327_v7  ;;  %v338_v11 = vmul.f32 %v328_v10, %v328_v10  ;;  %v3930_v5 = vld [vmem:[#allocation18 + $0x1e8] sm:$0xf0]  ;;  %949 = vmatpush.bf16.msra.mxu2 %v3925_v2  ;;  %vm1132_vm0 = vcmask 261120  }
  0x63   :  { %v3933_v6 = vor.u32 %v5132_v4, %v3930_v5  ;;  %963 = vmatpush.bf16.msra.mxu3 %v3929_v3  ;;  %v3802_v1 = vld [vmem:[#allocation18 + $0xe8] sm:$0xf0]  ;;  %v3760_v3 = vld [vmem:[#allocation18 + $0x80] sm:$0xf]  ;;  %v5091_v5 = vld [vmem:[#allocation18 + $0x84] sm:$0xf] }
  0x64   :  { %339 = vadd.xlane.f32.xlu1 %v337_v9  ;;  %457 = vmatpush.bf16.msra.mxu0 %v5054_v15  ;;  %v471_v9 = vstv %s6569_s18  ;;  %v3805_v2 = vor.u32 %v5100_v0, %v3802_v1  ;;  %v5095_v4 = vld [vmem:[#allocation18 + $0x9c] sm:$0xf0] }
  0x68   :  { %458 = vmatpush.bf16.msra.mxu0 %v5053_v16 }
  0x6a   :  { %333 = vadd.xlane.f32.xlu0 %v328_v10 }
  0x6c   :  { %341 = vadd.xlane.f32.xlu1 %v338_v11  ;;  %459 = vmatpush.bf16.msra.mxu0 %v5052_v17 }
  0x70   :  { %460 = vmatpush.bf16.msra.mxu0 %v5051_v19  ;;  %v3888_v19 = vld [vmem:[#allocation18 + $0x180] sm:$0xf] }
  0x74   :  { %461 = vmatpush.bf16.msra.mxu0 %v5050_v24  ;;  %v3896_v24 = vld [vmem:[#allocation18 + $0x188] sm:$0xf] }
  0x78   :  { %977 = vmatpush.bf16.msrb.mxu0 %v3933_v6  ;;  %v3761_v6 = vor.u32 %v5095_v4, %v3760_v3  ;;  %v3872_v3 = vld [vmem:[#allocation18 + $0x150] sm:$0xf] }
  0x79   :  { %v5121_v4 = vld [vmem:[#allocation18 + $0x16c] sm:$0xf0] }
  0xd5   :  { %v332_v18 = vpop.xlane.xlu0 %331 }
  0xd6   :  { %v335_v20 = vmul.f32 0.01, %v332_v18 }
  0xd7   :  { %v340_v21 = vpop.xlane.xlu1 %339 }
  0xd8   :  { %v345_v22 = vmul.f32 %v335_v20, %v335_v20  ;;  %v343_v23 = vmul.f32 0.01, %v340_v21  ;;  %v349_v45 = vsub.f32 %v327_v7, %v335_v20  ;;  %v5423_v7 = vld [vmem:[#allocation12] ss:$0 sm:$0xff]  ;;  %v5127_v20 = vld [vmem:[#allocation18 + $0x19c] sm:$0xf0] }
  0xd9   :  { %v5123_v21 = vld [vmem:[#allocation18 + $0x184] sm:$0xf] }
  0xda   :  { %v347_v25 = vsub.f32 %v343_v23, %v345_v22  ;;  %v3889_v22 = vor.u32 %v5127_v20, %v3888_v19  ;;  %v3890_v23 = vld [vmem:[#allocation18 + $0x1a0] sm:$0xf0] }
  0xdb   :  { %v5083_v19 = vld [vmem:[#allocation18 + $0x44] sm:$0xf] }
  0xdc   :  { %v351_v26 = vadd.f32 1e-05, %v347_v25  ;;  %v5128_v25 = vld [vmem:[#allocation18 + $0x1a4] sm:$0xf0]  ;;  %936 = vmatpush.bf16.msra.mxu1 %v3889_v22 }
  0xdd   :  { %v334_v27 = vpop.xlane.xlu0 %333  ;;  %v3736_v22 = vld [vmem:[#allocation18 + $0x48] sm:$0xf] }
  0xde   :  { %5426 = vrsqrt.f32 %v351_v26  ;;  %v336_v28 = vmul.f32 0.01, %v334_v27  ;;  %vm359_vm3 = vweird.f32 %v351_v26  ;;  %v3897_v27 = vor.u32 %v5128_v25, %v3896_v24 }
  0xdf   :  { %v342_v29 = vpop.xlane.xlu1 %341 }
  0xe0   :  { %v346_v30 = vmul.f32 %v336_v28, %v336_v28  ;;  %v344_v31 = vmul.f32 0.01, %v342_v29  ;;  %v350_v50 = vsub.f32 %v328_v10, %v336_v28  ;;  %v5124_v28 = vld [vmem:[#allocation18 + $0x18c] sm:$0xf]  ;;  %964 = vmatpush.bf16.msra.mxu3 %v3897_v27 }
  0xe1   :  { %v3898_v29 = vld [vmem:[#allocation18 + $0x1a8] sm:$0xf0] }
  0xe2   :  { %v348_v32 = vsub.f32 %v344_v31, %v346_v30  ;;  %v3901_v30 = vor.u32 %v5124_v28, %v3898_v29  ;;  %v3856_v31 = vld [vmem:[#allocation18 + $0x140] sm:$0xf]  ;;  %v3738_v27 = vld [vmem:[#allocation18 + $0x68] sm:$0xf0] }
  0xe3   :  { %v3696_v29 = vld [vmem:[#allocation18] sm:$0xf] }
  0xe4   :  { %v5427_v33 = vpop.eup %5426  ;;  %v352_v34 = vadd.f32 1e-05, %v348_v32  ;;  %v5119_v32 = vld [vmem:[#allocation18 + $0x15c] sm:$0xf0]  ;;  %978 = vmatpush.bf16.msrb.mxu0 %v3901_v30 }
  0xe5   :  { %v354_v35 = vmul.f32 %v5427_v33, %v351_v26  ;;  %vm360_vm2 = vweird.f32 %v5427_v33  ;;  %v3893_v26 = vor.u32 %v5123_v21, %v3890_v23  ;;  %v3730_v21 = vld [vmem:[#allocation18 + $0x60] sm:$0xf0]  ;;  %v5088_v23 = vld [vmem:[#allocation18 + $0x64] sm:$0xf0]  ;;  %v5079_v30 = vld [vmem:[#allocation18 + $0x1c] sm:$0xf0] }
  0xe6   :  { %5428 = vrsqrt.f32 %v352_v34  ;;  %vm361_vm4 = vmor %vm359_vm3, %vm360_vm2  ;;  %vm369_vm6 = vweird.f32 %v352_v34  ;;  %v3733_v24 = vor.u32 %v5083_v19, %v3730_v21  ;;  %v3737_v25 = vor.u32 %v5088_v23, %v3736_v22  ;;  %v3840_v21 = vld [vmem:[#allocation18 + $0x110] sm:$0xf]  ;;  %v5109_v23 = vld [vmem:[#allocation18 + $0x114] sm:$0xf] }
  0xe7   :  { %v355_v36 = vmul.f32 %v5427_v33, %v354_v35  ;;  %950 = vmatpush.bf16.msra.mxu2 %v3893_v26  ;;  %v3858_v35 = vld [vmem:[#allocation18 + $0x160] sm:$0xf0]  ;;  %v5084_v26 = vld [vmem:[#allocation18 + $0x4c] sm:$0xf]  ;;  %v5113_v22 = vld [vmem:[#allocation18 + $0x12c] sm:$0xf0] }
  0xe8   :  { %v3741_v28 = vor.u32 %v5084_v26, %v3738_v27  ;;  %v3848_v26 = vld [vmem:[#allocation18 + $0x118] sm:$0xf] }
  0xe9   :  { %v356_v37 = vmul.f32 0.5, %v355_v36  ;;  %v3864_v36 = vld [vmem:[#allocation18 + $0x148] sm:$0xf]  ;;  %v5114_v27 = vld [vmem:[#allocation18 + $0x134] sm:$0xf0] }
  0xeb   :  { %v357_v38 = vsub.f32 1.5, %v356_v37  ;;  %v5120_v37 = vld [vmem:[#allocation18 + $0x164] sm:$0xf0] }
  0xec   :  { %v5429_v39 = vpop.eup %5428 }
  0xed   :  { %v358_v40 = vmul.f32 %v5427_v33, %v357_v38  ;;  %v364_v41 = vmul.f32 %v5429_v39, %v352_v34  ;;  %vm370_vm5 = vweird.f32 %v5429_v39  ;;  %v3857_v34 = vor.u32 %v5119_v32, %v3856_v31  ;;  %v5075_v31 = vld [vmem:[#allocation18 + $0x4] sm:$0xf] }
  0xee   :  { %vm371_vm7 = vmor %vm369_vm6, %vm370_vm5  ;;  %v3697_v32 = vor.u32 %v5079_v30, %v3696_v29  ;;  %v3849_v30 = vor.u32 %v5114_v27, %v3848_v26  ;;  %v5078_v26 = vld [vmem:[#allocation18 + $0x1c] sm:$0xf] }
  0xef   :  { %v365_v42 = vmul.f32 %v5429_v39, %v364_v41  ;;  %v362_v44 = vsel %vm361_vm4, %v5427_v33, %v358_v40  ;;  %v5115_v33 = vld [vmem:[#allocation18 + $0x144] sm:$0xf]  ;;  %v5116_v40 = vld [vmem:[#allocation18 + $0x14c] sm:$0xf]  ;;  %937 = vmatpush.bf16.msra.mxu1 %v3857_v34  ;;  %v3704_v34 = vld [vmem:[#allocation18 + $0x8] sm:$0xf] }
  0xf0   :  { %v373_v47 = vmul.f32 %v362_v44, %v349_v45  ;;  %v3861_v38 = vor.u32 %v5115_v33, %v3858_v35  ;;  %v3866_v41 = vld [vmem:[#allocation18 + $0x168] sm:$0xf0]  ;;  %v5111_v44 = vld [vmem:[#allocation18 + $0x11c] sm:$0xf0]  ;;  %v5107_v45 = vld [vmem:[#allocation18 + $0x104] sm:$0xf] }
  0xf1   :  { %v366_v43 = vmul.f32 0.5, %v365_v42  ;;  %v3869_v42 = vor.u32 %v5116_v40, %v3866_v41  ;;  %v3698_v33 = vld [vmem:[#allocation18 + $0x20] sm:$0xf0]  ;;  %v5080_v35 = vld [vmem:[#allocation18 + $0x24] sm:$0xf0] }
  0xf2   :  { %v378_v53 = vmul.f32 %v5421_v48, %v373_v47  ;;  %951 = vmatpush.bf16.msra.mxu2 %v3861_v38  ;;  %v3826_v47 = vld [vmem:[#allocation18 + $0x120] sm:$0xf0]  ;;  %v5076_v38 = vld [vmem:[#allocation18 + $0xc] sm:$0xf]  ;;  %v3936_v40 = vld [vmem:[#allocation18 + $0x1d0] sm:$0xf] }
  0xf3   :  { %v367_v46 = vsub.f32 1.5, %v366_v43  ;;  %v3824_v43 = vld [vmem:[#allocation18 + $0x100] sm:$0xf]  ;;  %979 = vmatpush.bf16.msrb.mxu0 %v3869_v42  ;;  %v5137_v42 = vld [vmem:[#allocation18 + $0x1ec] sm:$0xf0] }
  0xf4   :  { %v383_v56 = vadd.f32 %v5422_v54, %v378_v53  ;;  %v3834_v53 = vld [vmem:[#allocation18 + $0x128] sm:$0xf0]  ;;  %v3722_v27 = vld [vmem:[#allocation18 + $0x38] sm:$0xf0] }
  0xf5   :  { %v368_v49 = vmul.f32 %v5429_v39, %v367_v46  ;;  %v3825_v46 = vor.u32 %v5111_v44, %v3824_v43  ;;  %v5133_v43 = vld [vmem:[#allocation18 + $0x1d4] sm:$0xf] }
  0xf6   :  { %v3938_v44 = vld [vmem:[#allocation18 + $0x1f0] sm:$0xf0] }
  0xf7   :  { %v372_v51 = vsel %vm371_vm7, %v5429_v39, %v368_v49  ;;  %v3865_v39 = vor.u32 %v5120_v37, %v3864_v36  ;;  %v5112_v49 = vld [vmem:[#allocation18 + $0x124] sm:$0xf0]  ;;  %938 = vmatpush.bf16.msra.mxu1 %v3825_v46  ;;  %v3701_v36 = vor.u32 %v5075_v31, %v3698_v33  ;;  %v3705_v37 = vor.u32 %v5080_v35, %v3704_v34  ;;  %v5110_v31 = vld [vmem:[#allocation18 + $0x11c] sm:$0xf] }
  0xf8   :  { %v374_v52 = vmul.f32 %v372_v51, %v350_v50  ;;  %v3829_v50 = vor.u32 %v5107_v45, %v3826_v47  ;;  %v3937_v45 = vor.u32 %v5137_v42, %v3936_v40  ;;  %v3941_v46 = vor.u32 %v5133_v43, %v3938_v44  ;;  %v3944_v47 = vld [vmem:[#allocation18 + $0x1d8] sm:$0xf]  ;;  %v3810_v43 = vld [vmem:[#allocation18 + $0xf0] sm:$0xf0] }
  0xf9   :  { %965 = vmatpush.bf16.msra.mxu3 %v3865_v39  ;;  %v3706_v39 = vld [vmem:[#allocation18 + $0x28] sm:$0xf0]  ;;  %v3816_v44 = vld [vmem:[#allocation18 + $0xd8] sm:$0xf] }
  0xfa   :  { %v379_v55 = vmul.f32 %v5421_v48, %v374_v52  ;;  %v3832_v48 = vld [vmem:[#allocation18 + $0x108] sm:$0xf]  ;;  %v5108_v52 = vld [vmem:[#allocation18 + $0x10c] sm:$0xf]  ;;  %952 = vmatpush.bf16.msra.mxu2 %v3829_v50  ;;  %v3709_v41 = vor.u32 %v5076_v38, %v3706_v39  ;;  %v5105_v38 = vld [vmem:[#allocation18 + $0xec] sm:$0xf0] }
  0xfb   :  { %v3833_v51 = vor.u32 %v5112_v49, %v3832_v48  ;;  %v5138_v48 = vld [vmem:[#allocation18 + $0x1f4] sm:$0xf0]  ;;  %v5134_v49 = vld [vmem:[#allocation18 + $0x1dc] sm:$0xf]  ;;  %v5101_v39 = vld [vmem:[#allocation18 + $0xd4] sm:$0xf] }
  0xfc   :  { %v384_v57 = vadd.f32 %v5422_v54, %v379_v55  ;;  %v3837_v54 = vor.u32 %v5108_v52, %v3834_v53  ;;  %v3792_v55 = vld [vmem:[#allocation18 + $0xc0] sm:$0xf]  ;;  %v3945_v50 = vor.u32 %v5138_v48, %v3944_v47  ;;  %v3904_v52 = vld [vmem:[#allocation18 + $0x190] sm:$0xf]  ;;  %v5102_v47 = vld [vmem:[#allocation18 + $0xdc] sm:$0xf] }
  0xfd   :  { %966 = vmatpush.bf16.msra.mxu3 %v3833_v51  ;;  %v3946_v51 = vld [vmem:[#allocation18 + $0x1f8] sm:$0xf0]  ;;  %v5129_v53 = vld [vmem:[#allocation18 + $0x1ac] sm:$0xf0] }
  0xfe   :  { %v385_v58 = vpack.c.bf16 %v384_v57, %v383_v56  ;;  %v5103_v56 = vld [vmem:[#allocation18 + $0xdc] sm:$0xf0]  ;;  %v5099_v57 = vld [vmem:[#allocation18 + $0xc4] sm:$0xf]  ;;  %980 = vmatpush.bf16.msrb.mxu0 %v3837_v54  ;;  %v3949_v54 = vor.u32 %v5134_v49, %v3946_v51  ;;  %v3818_v48 = vld [vmem:[#allocation18 + $0xf8] sm:$0xf0] }
  0xff   :  { %v3797_v62 = vor.u32 %v5099_v57, %v3794_v59  ;;  %v3906_v57 = vld [vmem:[#allocation18 + $0x1b0] sm:$0xf0]  ;;  %v3821_v51 = vor.u32 %v5102_v47, %v3818_v48  ;;  %v5425_v47 = vld [vmem:[#allocation15] ss:$0 sm:$0xff] }
 0x100   :  { %462 = vmatmul.bf16.vlgmr.msra.gmra.mxu0 %v385_v58  ;;  %v3793_v58 = vor.u32 %v5103_v56, %v3792_v55  ;;  %v3905_v55 = vor.u32 %v5129_v53, %v3904_v52  ;;  %v5125_v56 = vld [vmem:[#allocation18 + $0x194] sm:$0xf]  ;;  %v3776_v52 = vld [vmem:[#allocation18 + $0x90] sm:$0xf] }
 0x101   :  { %953 = vmatpush.bf16.msra.mxu2 %v3797_v62  ;;  %967 = vmatpush.bf16.msra.mxu3 %v3801_v63  ;;  %v3909_v59 = vor.u32 %v5125_v56, %v3906_v57  ;;  %v3914_v62 = vld [vmem:[#allocation18 + $0x1b8] sm:$0xf0]  ;;  %v5097_v53 = vld [vmem:[#allocation18 + $0xac] sm:$0xf0]  ;;  %v3778_v56 = vld [vmem:[#allocation18 + $0xb0] sm:$0xf0] }
 0x102   :  { %939 = vmatpush.bf16.msra.mxu1 %v3793_v58  ;;  %981 = vmatpush.bf16.msrb.mxu0 %v3805_v2  ;;  %v3912_v58 = vld [vmem:[#allocation18 + $0x198] sm:$0xf]  ;;  %v3917_v1 = vor.u32 %v5126_v61, %v3914_v62 }
 0x103   :  { %v3913_v0 = vor.u32 %v5130_v60, %v3912_v58  ;;  %v3784_v57 = vld [vmem:[#allocation18 + $0x98] sm:$0xf] }
 0x104   :  { %v5098_v58 = vld [vmem:[#allocation18 + $0xb4] sm:$0xf0] }
 0x105   :  { %v3785_v62 = vor.u32 %v5098_v58, %v3784_v57  ;;  %v4012_v57 = vld [vmem:[#allocation16 + $0x58] sm:$0xf] }
 0x106   :  { %940 = vmatpush.bf16.msra.mxu1 %v3761_v6  ;;  %v3873_v6 = vor.u32 %v5121_v4, %v3872_v3  ;;  %v3744_v4 = vld [vmem:[#allocation18 + $0x50] sm:$0xf]  ;;  %v5074_v58 = vld [vmem:[#allocation16 + $0x74] sm:$0xf0] }
 0x17d   :  { %v463_v8 = vpop.f32.mrf.mxu0 }
 0x17e   :  { %v464_v10 = vadd.f32 %v5423_v7, %v463_v8  ;;  %v3768_v8 = vld [vmem:[#allocation18 + $0x88] sm:$0xf] }
 0x180   :  { %v472_v11 = vmul.f32 %v471_v9, %v464_v10  ;;  %vm469_vm8 = vcmp.gt.f32.partialorder %v464_v10, 0.0 }
 0x182   :  { %v6081_v12 = vsel %vm469_vm8, %v464_v10, %v472_v11 }
 0x183   :  { %478 = vadd.xlane.f32.xlu2 %v6081_v12  ;;  %v484_v13 = vmul.f32 %v6081_v12, %v6081_v12 }
 0x185   :  { %v465_v14 = vpop.f32.mrf.mxu0  ;;  %486 = vadd.xlane.f32.xlu0 %v484_v13  ;;  %v5092_v13 = vld [vmem:[#allocation18 + $0x8c] sm:$0xf] }
 0x186   :  { %v466_v15 = vadd.f32 %v5423_v7, %v465_v14  ;;  %v3762_v7 = vld [vmem:[#allocation18 + $0xa0] sm:$0xf0]  ;;  %v3770_v14 = vld [vmem:[#allocation18 + $0xa8] sm:$0xf0] }
 0x187   :  { %v3765_v10 = vor.u32 %v5091_v5, %v3762_v7  ;;  %v5117_v7 = vld [vmem:[#allocation18 + $0x154] sm:$0xf] }
 0x188   :  { %v473_v16 = vmul.f32 %v471_v9, %v466_v15  ;;  %vm470_vm9 = vcmp.gt.f32.partialorder %v466_v15, 0.0  ;;  %v5096_v9 = vld [vmem:[#allocation18 + $0xa4] sm:$0xf0] }
 0x189   :  { %v3769_v11 = vor.u32 %v5096_v9, %v3768_v8  ;;  %954 = vmatpush.bf16.msra.mxu2 %v3765_v10  ;;  %v3874_v8 = vld [vmem:[#allocation18 + $0x170] sm:$0xf0]  ;;  %v3880_v9 = vld [vmem:[#allocation18 + $0x158] sm:$0xf] }
 0x18a   :  { %v6086_v17 = vsel %vm470_vm9, %v466_v15, %v473_v16  ;;  %v3773_v15 = vor.u32 %v5092_v13, %v3770_v14  ;;  %v3728_v16 = vld [vmem:[#allocation18 + $0x40] sm:$0xf]  ;;  %v3877_v13 = vor.u32 %v5117_v7, %v3874_v8  ;;  %v5122_v14 = vld [vmem:[#allocation18 + $0x174] sm:$0xf0]  ;;  %v3746_v7 = vld [vmem:[#allocation18 + $0x70] sm:$0xf0] }
 0x18b   :  { %480 = vadd.xlane.f32.xlu2 %v6086_v17  ;;  %v485_v18 = vmul.f32 %v6086_v17, %v6086_v17  ;;  %968 = vmatpush.bf16.msra.mxu3 %v3769_v11  ;;  %v3752_v8 = vld [vmem:[#allocation18 + $0x58] sm:$0xf] }
 0x18c   :  { %982 = vmatpush.bf16.msrb.mxu0 %v3773_v15  ;;  %v5118_v15 = vld [vmem:[#allocation18 + $0x15c] sm:$0xf] }
 0x18d   :  { %488 = vadd.xlane.f32.xlu1 %v485_v18  ;;  %v5087_v18 = vld [vmem:[#allocation18 + $0x5c] sm:$0xf0]  ;;  %955 = vmatpush.bf16.msra.mxu2 %v3733_v24  ;;  %v3841_v24 = vor.u32 %v5113_v22, %v3840_v21 }
 0x18e   :  { %v3729_v20 = vor.u32 %v5087_v18, %v3728_v16  ;;  %v3881_v16 = vor.u32 %v5122_v14, %v3880_v9  ;;  %v3882_v18 = vld [vmem:[#allocation18 + $0x178] sm:$0xf0] }
 0x18f   :  { %969 = vmatpush.bf16.msra.mxu3 %v3737_v25  ;;  %v3842_v25 = vld [vmem:[#allocation18 + $0x130] sm:$0xf0]  ;;  %v5086_v14 = vld [vmem:[#allocation18 + $0x5c] sm:$0xf] }
 0x190   :  { %941 = vmatpush.bf16.msra.mxu1 %v3729_v20  ;;  %983 = vmatpush.bf16.msrb.mxu0 %v3741_v28  ;;  %v3885_v20 = vor.u32 %v5118_v15, %v3882_v18  ;;  %v3845_v29 = vor.u32 %v5109_v23, %v3842_v25  ;;  %v3754_v15 = vld [vmem:[#allocation18 + $0x78] sm:$0xf0]  ;;  %v3712_v18 = vld [vmem:[#allocation18 + $0x10] sm:$0xf]  ;;  %v3714_v23 = vld [vmem:[#allocation18 + $0x30] sm:$0xf0] }
 0x191   :  { %956 = vmatpush.bf16.msra.mxu2 %v3701_v36  ;;  %v3757_v22 = vor.u32 %v5086_v14, %v3754_v15  ;;  %v5082_v25 = vld [vmem:[#allocation18 + $0x34] sm:$0xf0]  ;;  %v4004_v14 = vld [vmem:[#allocation16 + $0x50] sm:$0xf] }
 0x192   :  { %v5073_v15 = vld [vmem:[#allocation16 + $0x6c] sm:$0xf0] }
 0x193   :  { %970 = vmatpush.bf16.msra.mxu3 %v3705_v37  ;;  %v3808_v37 = vld [vmem:[#allocation18 + $0xd0] sm:$0xf] }
 0x194   :  { %942 = vmatpush.bf16.msra.mxu1 %v3697_v32  ;;  %984 = vmatpush.bf16.msrb.mxu0 %v3709_v41  ;;  %v3850_v32 = vld [vmem:[#allocation18 + $0x138] sm:$0xf0]  ;;  %v3809_v42 = vor.u32 %v5105_v38, %v3808_v37  ;;  %v3725_v37 = vor.u32 %v5078_v26, %v3722_v27  ;;  %v5061_v26 = vld [vmem:[#allocation16 + $0x14] sm:$0xf] }
 0x195   :  { %1005 = vmatpush.bf16.msrb.mxu2 %v3941_v46  ;;  %v3853_v34 = vor.u32 %v5110_v31, %v3850_v32  ;;  %v5106_v46 = vld [vmem:[#allocation18 + $0xf4] sm:$0xf0]  ;;  %v3974_v27 = vld [vmem:[#allocation16 + $0x30] sm:$0xf0] }
 0x197   :  { %1019 = vmatpush.bf16.msrb.mxu3 %v3945_v50  ;;  %v3817_v50 = vor.u32 %v5106_v46, %v3816_v44 }
 0x198   :  { %991 = vmatpush.bf16.msrb.mxu1 %v3937_v45  ;;  %1033 = vmatpush.bf16.msra.mxu0 %v3949_v54  ;;  %v3813_v45 = vor.u32 %v5101_v39, %v3810_v43  ;;  %v5093_v54 = vld [vmem:[#allocation18 + $0x94] sm:$0xf]  ;;  %v5424_v43 = vld [vmem:[#allocation13] ss:$0 sm:$0xff] }
 0x199   :  { %1006 = vmatpush.bf16.msrb.mxu2 %v3909_v59  ;;  %v3781_v61 = vor.u32 %v5093_v54, %v3778_v56  ;;  %v5072_v56 = vld [vmem:[#allocation16 + $0x64] sm:$0xf0] }
 0x19b   :  { %1020 = vmatpush.bf16.msrb.mxu3 %v3913_v0  ;;  %v3786_v0 = vld [vmem:[#allocation18 + $0xb8] sm:$0xf0] }
 0x19c   :  { %992 = vmatpush.bf16.msrb.mxu1 %v3905_v55  ;;  %1034 = vmatpush.bf16.msra.mxu0 %v3917_v1  ;;  %v3777_v55 = vor.u32 %v5097_v53, %v3776_v52  ;;  %v5071_v52 = vld [vmem:[#allocation16 + $0x5c] sm:$0xf0]  ;;  %v5067_v53 = vld [vmem:[#allocation16 + $0x44] sm:$0xf] }
 0x19d   :  { %1007 = vmatpush.bf16.msrb.mxu2 %v3877_v13  ;;  %v5090_v13 = vld [vmem:[#allocation18 + $0x74] sm:$0xf0] }
 0x19f   :  { %1021 = vmatpush.bf16.msrb.mxu3 %v3881_v16  ;;  %v3753_v16 = vor.u32 %v5090_v13, %v3752_v8  ;;  %v3998_v13 = vld [vmem:[#allocation16 + $0x68] sm:$0xf0] }
 0x1a0   :  { %993 = vmatpush.bf16.msrb.mxu1 %v3873_v6  ;;  %1035 = vmatpush.bf16.msra.mxu0 %v3885_v20  ;;  %v5085_v6 = vld [vmem:[#allocation18 + $0x54] sm:$0xf] }
 0x1a1   :  { %1008 = vmatpush.bf16.msrb.mxu2 %v3845_v29  ;;  %v5077_v20 = vld [vmem:[#allocation18 + $0x14] sm:$0xf] }
 0x1a2   :  { %v3717_v31 = vor.u32 %v5077_v20, %v3714_v23  ;;  %v4005_v20 = vor.u32 %v5073_v15, %v4004_v14  ;;  %v3966_v23 = vld [vmem:[#allocation16 + $0x28] sm:$0xf0] }
 0x1a3   :  { %1022 = vmatpush.bf16.msrb.mxu3 %v3849_v30 }
 0x1a4   :  { %994 = vmatpush.bf16.msrb.mxu1 %v3841_v24  ;;  %1036 = vmatpush.bf16.msra.mxu0 %v3853_v34  ;;  %v3720_v24 = vld [vmem:[#allocation18 + $0x18] sm:$0xf] }
 0x1a5   :  { %1009 = vmatpush.bf16.msrb.mxu2 %v3813_v45 }
 0x1a7   :  { %1023 = vmatpush.bf16.msrb.mxu3 %v3817_v50 }
 0x1a8   :  { %995 = vmatpush.bf16.msrb.mxu1 %v3809_v42  ;;  %1037 = vmatpush.bf16.msra.mxu0 %v3821_v51  ;;  %v3988_v51 = vld [vmem:[#allocation16 + $0x40] sm:$0xf] }
 0x1a9   :  { %1010 = vmatpush.bf16.msrb.mxu2 %v3781_v61 }
 0x1ab   :  { %1024 = vmatpush.bf16.msrb.mxu3 %v3785_v62 }
 0x1ac   :  { %996 = vmatpush.bf16.msrb.mxu1 %v3777_v55 }
 0x1af   :  { %1025 = vmatpush.bf16.msrb.mxu3 %v3753_v16  ;;  %v5069_v16 = vld [vmem:[#allocation16 + $0x54] sm:$0xf] }
 0x1f6   :  { %v479_v63 = vpop.xlane.xlu2 %478 }
 0x1f7   :  { %v6091_v2 = vmul.f32 0.01, %v479_v63  ;;  %v5094_v63 = vld [vmem:[#allocation18 + $0x9c] sm:$0xf] }
 0x1f8   :  { %v487_v5 = vpop.xlane.xlu0 %486  ;;  %v3789_v3 = vor.u32 %v5094_v63, %v3786_v0  ;;  %v4013_v63 = vor.u32 %v5074_v58, %v4012_v57  ;;  %v5059_v0 = vld [vmem:[#allocation16 + $0x4] sm:$0xf] }
 0x1f9   :  { %v492_v10 = vmul.f32 %v6091_v2, %v6091_v2  ;;  %v490_v11 = vmul.f32 0.01, %v487_v5  ;;  %v5089_v5 = vld [vmem:[#allocation18 + $0x6c] sm:$0xf0] }
 0x1fa   :  { %1038 = vmatpush.bf16.msra.mxu0 %v3789_v3  ;;  %v3964_v3 = vld [vmem:[#allocation16 + $0x8] sm:$0xf] }
 0x1fb   :  { %v494_v19 = vsub.f32 %v490_v11, %v492_v10  ;;  %v3745_v10 = vor.u32 %v5089_v5, %v3744_v4  ;;  %v3749_v11 = vor.u32 %v5085_v6, %v3746_v7  ;;  %v5064_v4 = vld [vmem:[#allocation16 + $0x24] sm:$0xf0]  ;;  %v3980_v5 = vld [vmem:[#allocation16 + $0x18] sm:$0xf] }
 0x1fc   :  { %v5066_v6 = vld [vmem:[#allocation16 + $0x34] sm:$0xf0] }
 0x1fd   :  { %v6095_v28 = vadd.f32 1e-05, %v494_v19  ;;  %v5081_v19 = vld [vmem:[#allocation18 + $0x2c] sm:$0xf0]  ;;  %997 = vmatpush.bf16.msrb.mxu1 %v3745_v10  ;;  %1011 = vmatpush.bf16.msrb.mxu2 %v3749_v11  ;;  %v3981_v10 = vor.u32 %v5066_v6, %v3980_v5  ;;  %v5068_v11 = vld [vmem:[#allocation16 + $0x4c] sm:$0xf] }
 0x1fe   :  { %v481_v33 = vpop.xlane.xlu2 %480  ;;  %v3713_v30 = vor.u32 %v5081_v19, %v3712_v18  ;;  %1039 = vmatpush.bf16.msra.mxu0 %v3757_v22  ;;  %v4006_v18 = vld [vmem:[#allocation16 + $0x70] sm:$0xf0]  ;;  %v4001_v19 = vor.u32 %v5068_v11, %v3998_v13 }
 0x1ff   :  { %5430 = vrsqrt.f32 %v6095_v28  ;;  %v6098_v35 = vmul.f32 0.01, %v481_v33  ;;  %v3721_v33 = vor.u32 %v5082_v25, %v3720_v24  ;;  %vm506_vm11 = vweird.f32 %v6095_v28  ;;  %v3972_v24 = vld [vmem:[#allocation16 + $0x10] sm:$0xf] }
 0x200   :  { %v489_v36 = vpop.xlane.xlu1 %488  ;;  %v4009_v22 = vor.u32 %v5069_v16, %v4006_v18  ;;  %v5065_v25 = vld [vmem:[#allocation16 + $0x2c] sm:$0xf0] }
 0x201   :  { %v493_v40 = vmul.f32 %v6098_v35, %v6098_v35  ;;  %v491_v41 = vmul.f32 0.01, %v489_v36  ;;  %998 = vmatpush.bf16.msrb.mxu1 %v3713_v30  ;;  %1012 = vmatpush.bf16.msrb.mxu2 %v3717_v31  ;;  %v3973_v30 = vor.u32 %v5065_v25, %v3972_v24  ;;  %v3977_v31 = vor.u32 %v5061_v26, %v3974_v27  ;;  %v4396_v24 = vld [vmem:[#allocation24 + $0x2e0] sm:$0xf]  ;;  %v5233_v25 = vld [vmem:[#allocation24 + $0x2ec] sm:$0xf0] }
 0x202   :  { %1026 = vmatpush.bf16.msrb.mxu3 %v3721_v33  ;;  %1040 = vmatpush.bf16.msra.mxu0 %v3725_v37  ;;  %v4014_v33 = vld [vmem:[#allocation16 + $0x78] sm:$0xf0] }
 0x203   :  { %v495_v49 = vsub.f32 %v491_v41, %v493_v40  ;;  %v496_v41 = vsub.f32 %v6081_v12, %v6091_v2  ;;  %v3990_v12 = vld [vmem:[#allocation16 + $0x60] sm:$0xf0]  ;;  %v3996_v2 = vld [vmem:[#allocation16 + $0x48] sm:$0xf]  ;;  %v5062_v37 = vld [vmem:[#allocation16 + $0x1c] sm:$0xf] }
 0x204   :  { %v3993_v61 = vor.u32 %v5067_v53, %v3990_v12  ;;  %v3997_v62 = vor.u32 %v5072_v56, %v3996_v2  ;;  %v6137_v2 = vld [vmem:[#allocation19] sm:$0xff] }
 0x205   :  { %v6102_v59 = vpop.eup %5430  ;;  %v6104_v60 = vadd.f32 1e-05, %v495_v49  ;;  %v1251_v57 = vperm.slane %v6137_v2, 1  ;;  %v1253_v6 = vperm.slane %v6137_v2, 3  ;;  %v1255_v11 = vperm.slane %v6137_v2, 5 }
 0x206   :  { %v501_v1 = vmul.f32 %v6102_v59, %v6095_v28  ;;  %vm507_vm10 = vweird.f32 %v6102_v59  ;;  %v497_v28 = vsub.f32 %v6086_v17, %v6098_v35  ;;  %v3956_v17 = vld [vmem:[#allocation16] sm:$0xf] }
 0x207   :  { %5432 = vrsqrt.f32 %v6104_v60  ;;  %vm508_vm12 = vmor %vm506_vm11, %vm507_vm10  ;;  %vm516_vm14 = vweird.f32 %v6104_v60  ;;  %v5063_v35 = vld [vmem:[#allocation16 + $0x1c] sm:$0xf0] }
 0x208   :  { %v502_v9 = vmul.f32 %v6102_v59, %v501_v1  ;;  %v3958_v1 = vld [vmem:[#allocation16 + $0x20] sm:$0xf0]  ;;  %v3957_v7 = vor.u32 %v5063_v35, %v3956_v17 }
 0x209   :  { %v3961_v8 = vor.u32 %v5059_v0, %v3958_v1 }
 0x20a   :  { %v503_v21 = vmul.f32 0.5, %v502_v9  ;;  %v3965_v9 = vor.u32 %v5064_v4, %v3964_v3  ;;  %v1256_v3 = vperm.slane %v6137_v2, 6 }
 0x20c   :  { %v504_v29 = vsub.f32 1.5, %v503_v21  ;;  %v5060_v21 = vld [vmem:[#allocation16 + $0xc] sm:$0xf] }
 0x20d   :  { %v5433_v32 = vpop.eup %5432 }
 0x20e   :  { %v505_v34 = vmul.f32 %v6102_v59, %v504_v29  ;;  %v511_v36 = vmul.f32 %v5433_v32, %v6104_v60  ;;  %vm517_vm13 = vweird.f32 %v5433_v32  ;;  %v3989_v60 = vor.u32 %v5071_v52, %v3988_v51 }
 0x20f   :  { %vm518_vm15 = vmor %vm516_vm14, %vm517_vm13  ;;  %v3969_v29 = vor.u32 %v5060_v21, %v3966_v23  ;;  %v4268_v21 = vld [vmem:[#allocation24 + $0x1e0] sm:$0xf]  ;;  %v5201_v23 = vld [vmem:[#allocation24 + $0x1ec] sm:$0xf0] }
 0x210   :  { %v512_v38 = vmul.f32 %v5433_v32, %v511_v36  ;;  %v509_v39 = vsel %vm508_vm12, %v6102_v59, %v505_v34  ;;  %v5058_v34 = vld [vmem:[%s6570_s22] sm:$0xff] }
 0x211   :  { %v520_v44 = vmul.f32 %v509_v39, %v496_v41 }
 0x212   :  { %v513_v40 = vmul.f32 0.5, %v512_v38  ;;  %v3982_v38 = vld [vmem:[#allocation16 + $0x38] sm:$0xf0] }
 0x213   :  { %v525_v48 = vmul.f32 %v5424_v43, %v520_v44  ;;  %v3985_v39 = vor.u32 %v5062_v37, %v3982_v38  ;;  %v4397_v37 = vor.u32 %v5233_v25, %v4396_v24 }
 0x214   :  { %v514_v42 = vsub.f32 1.5, %v513_v40 }
 0x215   :  { %v530_v54 = vadd.f32 %v5425_v47, %v525_v48 }
 0x216   :  { %v515_v45 = vmul.f32 %v5433_v32, %v514_v42 }
 0x218   :  { %v519_v46 = vsel %vm518_vm15, %v5433_v32, %v515_v45  ;;  %v5070_v32 = vld [vmem:[#allocation16 + $0x5c] sm:$0xf]  ;;  %vm3646_vm15 = vcmask 7168  }
 0x219   :  { %v521_v49 = vmul.f32 %v519_v46, %v497_v28  ;;  %v4017_v36 = vor.u32 %v5070_v32, %v4014_v33  ;;  %v5265_v32 = vld [vmem:[#allocation24 + $0x3ec] sm:$0xf0]  ;;  %v4124_v33 = vld [vmem:[#allocation24 + $0xc0] sm:$0xf] }
 0x21b   :  { %v526_v50 = vmul.f32 %v5424_v43, %v521_v49 }
 0x21d   :  { %v531_v55 = vadd.f32 %v5425_v47, %v526_v50 }
 0x21f   :  { %v550_v59 = vpack.c.bf16 %v531_v55, %v530_v54 }
 0x221   :  { %943 = vmatmul.bf16.vlgmr.msra.gmra.mxu1 %v550_v59  ;;  %957 = vmatmul.bf16.vlgmr.msra.gmra.mxu2 %v550_v59 }
 0x222   :  { %971 = vmatmul.bf16.vlgmr.msra.gmra.mxu3 %v550_v59  ;;  %985 = vmatmul.bf16.vlgmr.msrb.gmra.mxu0 %v550_v59 }
 0x223   :  { %1142 = vmatpush.bf16.msra.mxu1 %v3989_v60  ;;  %1156 = vmatpush.bf16.msra.mxu2 %v3993_v61  ;;  %v1250_v60 = vperm.slane %v6137_v2, 0 }
 0x224   :  { %1170 = vmatpush.bf16.msra.mxu3 %v3997_v62  ;;  %1226 = vmatpush.bf16.msrb.mxu0 %v4013_v63  ;;  %v1252_v63 = vperm.slane %v6137_v2, 2 }
 0x227   :  { %1143 = vmatpush.bf16.msra.mxu1 %v3957_v7  ;;  %1157 = vmatpush.bf16.msra.mxu2 %v3961_v8 }
 0x228   :  { %1171 = vmatpush.bf16.msra.mxu3 %v3965_v9  ;;  %1227 = vmatpush.bf16.msrb.mxu0 %v3981_v10  ;;  %v1254_v10 = vperm.slane %v6137_v2, 4 }
 0x231   :  { %999 = vmatmul.bf16.vlgmr.msrb.gmra.mxu1 %v550_v59  ;;  %1013 = vmatmul.bf16.vlgmr.msrb.gmra.mxu2 %v550_v59 }
 0x232   :  { %1027 = vmatmul.bf16.vlgmr.msrb.gmra.mxu3 %v550_v59  ;;  %1041 = vmatmul.bf16.vlgmr.msra.gmra.mxu0 %v550_v59 }
 0x233   :  { %1184 = vmatpush.bf16.msrb.mxu1 %v4001_v19  ;;  %1198 = vmatpush.bf16.msrb.mxu2 %v4005_v20  ;;  %v4140_v19 = vld [vmem:[#allocation24 + $0xe0] sm:$0xf]  ;;  %v5169_v20 = vld [vmem:[#allocation24 + $0xec] sm:$0xf0] }
 0x234   :  { %1212 = vmatpush.bf16.msrb.mxu3 %v4009_v22  ;;  %v4141_v22 = vor.u32 %v5169_v20, %v4140_v19  ;;  %3069 = vmatpush.bf16.msra.mxu0 %v4397_v37  ;;  %v4348_v37 = vld [vmem:[#allocation24 + $0x280] sm:$0xf] }
 0x237   :  { %1185 = vmatpush.bf16.msrb.mxu1 %v3969_v29  ;;  %1199 = vmatpush.bf16.msrb.mxu2 %v3973_v30  ;;  %v4269_v30 = vor.u32 %v5201_v23, %v4268_v21  ;;  %v4492_v21 = vld [vmem:[#allocation24 + $0x3a0] sm:$0xf] }
 0x238   :  { %1213 = vmatpush.bf16.msrb.mxu3 %v3977_v31  ;;  %v4524_v31 = vld [vmem:[#allocation24 + $0x3e0] sm:$0xf] }
 0x239   :  { %v4525_v38 = vor.u32 %v5265_v32, %v4524_v31 }
 0x241   :  { %4018 = vmatmul.msk.bf16.vlgmr.msra.gmra.mxu1 %vm1132_vm0, %v5058_v34  ;;  %4019 = vmatmul.msk.bf16.vlgmr.msra.gmra.mxu2 %vm1132_vm0, %v5058_v34 }
 0x242   :  { %4020 = vmatmul.msk.bf16.vlgmr.msra.gmra.mxu3 %vm1132_vm0, %v5058_v34  ;;  %4024 = vmatmul.msk.bf16.vlgmr.msrb.gmra.mxu0 %vm1132_vm0, %v5058_v34 }
 0x243   :  { %1240 = vmatpush.bf16.msra.mxu1 %v4017_v36  ;;  %3041 = vmatpush.bf16.msra.mxu2 %v4141_v22  ;;  %v5257_v22 = vld [vmem:[#allocation24 + $0x3ac] sm:$0xf0] }
 0x244   :  { %3055 = vmatpush.bf16.msra.mxu3 %v4269_v30  ;;  %v4220_v30 = vld [vmem:[#allocation24 + $0x180] sm:$0xf]  ;;  %v4493_v32 = vor.u32 %v5257_v22, %v4492_v21 }
 0x247   :  { %1241 = vmatpush.bf16.msra.mxu1 %v3985_v39  ;;  %v5165_v39 = vld [vmem:[#allocation24 + $0xcc] sm:$0xf0] }
 0x251   :  { %4021 = vmatmul.msk.bf16.vlgmr.msrb.gmra.mxu1 %vm1132_vm0, %v5058_v34  ;;  %4022 = vmatmul.msk.bf16.vlgmr.msrb.gmra.mxu2 %vm1132_vm0, %v5058_v34 }
 0x252   :  { %4023 = vmatmul.msk.bf16.vlgmr.msrb.gmra.mxu3 %vm1132_vm0, %v5058_v34  ;;  %3083 = vmatpush.bf16.msrb.mxu1 %v4525_v38  ;;  %v5221_v38 = vld [vmem:[#allocation24 + $0x28c] sm:$0xf0] }
 0x261   :  { %4025 = vmatmul.msk.bf16.vlgmr.msra.gmra.mxu1 %vm1132_vm0, %v5058_v34 }
 0x29e   :  { %v944_v40 = vpop.f32.mrf.mxu1 }
 0x29f   :  { %v986_v44 = vpop.f32.mrf.mxu0 }
 0x2a4   :  { %v958_v41 = vpop.f32.mrf.mxu2 }
 0x2a5   :  { %v972_v42 = vpop.f32.mrf.mxu3 }
 0x2a6   :  { %v946_v43 = vpop.f32.mrf.mxu1 }
 0x2a7   :  { %v6125_v47 = vpop.f32.mrf.mxu0 }
 0x2ac   :  { %v960_v45 = vpop.f32.mrf.mxu2 }
 0x2ad   :  { %v974_v28 = vpop.f32.mrf.mxu3 }
 0x2ae   :  { %v6123_v46 = vpop.f32.mrf.mxu1 }
 0x2af   :  { %v6131_v51 = vpop.f32.mrf.mxu0 }
 0x2b4   :  { %v6127_v48 = vpop.f32.mrf.mxu2 }
 0x2b5   :  { %v1028_v49 = vpop.f32.mrf.mxu3 }
 0x2b6   :  { %v6129_v50 = vpop.f32.mrf.mxu1 }
 0x2b7   :  { %v6139_v55 = vpop.f32.mrf.mxu0 }
 0x2bc   :  { %v6133_v52 = vpop.f32.mrf.mxu2 }
 0x2bd   :  { %v6135_v53 = vpop.f32.mrf.mxu3 }
 0x2be   :  { %v1145_v12 = vpop.f32.mrf.mxu1 }
 0x2bf   :  { %v1146_v59 = vadd.f32 %v1145_v12, %v944_v40  ;;  %v1229_v13 = vpop.f32.mrf.mxu0  ;;  %v4252_v40 = vld [vmem:[#allocation24 + $0x1c0] sm:$0xf] }
 0x2c0   :  { %v6166_v34 = vadd.f32 %v1229_v13, %v1028_v49  ;;  %v5229_v49 = vld [vmem:[#allocation24 + $0x2cc] sm:$0xf0]  ;;  %v4508_v12 = vld [vmem:[#allocation24 + $0x3c0] sm:$0xf] }
 0x2c1   :  { %v6145_v35 = vadd.f32 %v1250_v60, %v1146_v59  ;;  %v5261_v59 = vld [vmem:[#allocation24 + $0x3cc] sm:$0xf0] }
 0x2c3   :  { %v1311_v7 = vmul.f32 %v6145_v35, %v6145_v35 }
 0x2c4   :  { %v1159_v54 = vpop.f32.mrf.mxu2 }
 0x2c5   :  { %v1160_v56 = vadd.f32 %v1159_v54, %v958_v41  ;;  %v1173_v58 = vpop.f32.mrf.mxu3  ;;  %v5197_v41 = vld [vmem:[#allocation24 + $0x1cc] sm:$0xf0] }
 0x2c6   :  { %v1147_v61 = vpop.f32.mrf.mxu1  ;;  %v1174_v62 = vadd.f32 %v1173_v58, %v972_v42 }
 0x2c7   :  { %v6143_v17 = vadd.f32 %v1251_v57, %v1160_v56  ;;  %v1148_v0 = vadd.f32 %v1147_v61, %v946_v43  ;;  %v4125_v56 = vor.u32 %v5165_v39, %v4124_v33  ;;  %v5161_v61 = vld [vmem:[#allocation24 + $0xac] sm:$0xf0] }
 0x2c8   :  { %v6158_v15 = vadd.f32 %v1252_v63, %v1174_v62  ;;  %v5189_v33 = vld [vmem:[#allocation24 + $0x18c] sm:$0xf0] }
 0x2c9   :  { %v1312_v4 = vmul.f32 %v6143_v17, %v6143_v17  ;;  %v1284_v14 = vadd.f32 %v6143_v17, %v6145_v35  ;;  %v6160_v16 = vadd.f32 %v1250_v60, %v1148_v0  ;;  %v4108_v60 = vld [vmem:[#allocation24 + $0xa0] sm:$0xf]  ;;  %3042 = vmatpush.bf16.msra.mxu2 %v4125_v56  ;;  %v4221_v56 = vor.u32 %v5189_v33, %v4220_v30 }
 0x2ca   :  { %v1313_v43 = vmul.f32 %v6158_v15, %v6158_v15  ;;  %v4109_v20 = vor.u32 %v5161_v61, %v4108_v60  ;;  %v1231_v60 = vpop.f32.mrf.mxu0 }
 0x2cb   :  { %v1327_v26 = vadd.f32 %v1312_v4, %v1311_v7  ;;  %v1285_v42 = vadd.f32 %v1284_v14, %v6158_v15  ;;  %v4236_v7 = vld [vmem:[#allocation24 + $0x1a0] sm:$0xf] }
 0x2cc   :  { %v1161_v1 = vpop.f32.mrf.mxu2 }
 0x2cd   :  { %v1175_v5 = vpop.f32.mrf.mxu3  ;;  %v1162_v8 = vadd.f32 %v1161_v1, %v960_v45  ;;  %v1328_v62 = vadd.f32 %v1327_v26, %v1313_v43  ;;  %v4092_v26 = vld [vmem:[#allocation24 + $0x80] sm:$0xf]  ;;  %v5253_v43 = vld [vmem:[#allocation24 + $0x38c] sm:$0xf0]  ;;  %3043 = vmatpush.bf16.msra.mxu2 %v4109_v20 }
 0x2ce   :  { %v1187_v9 = vpop.f32.mrf.mxu1  ;;  %v1176_v27 = vadd.f32 %v1175_v5, %v974_v28  ;;  %v4380_v28 = vld [vmem:[#allocation24 + $0x2c0] sm:$0xf]  ;;  %v4509_v5 = vor.u32 %v5261_v59, %v4508_v12 }
 0x2cf   :  { %v1188_v18 = vadd.f32 %v1187_v9, %v986_v44  ;;  %v6168_v36 = vadd.f32 %v1251_v57, %v1162_v8  ;;  %v1319_v44 = vmul.f32 %v6160_v16, %v6160_v16  ;;  %v4253_v57 = vor.u32 %v5197_v41, %v4252_v40  ;;  %v5193_v8 = vld [vmem:[#allocation24 + $0x1ac] sm:$0xf0]  ;;  %v4364_v9 = vld [vmem:[#allocation24 + $0x2a0] sm:$0xf] }
 0x2d0   :  { %v4381_v58 = vor.u32 %v5229_v49, %v4380_v28  ;;  %v6177_v0 = vadd.f32 %v1252_v63, %v1176_v27  ;;  %v5225_v63 = vld [vmem:[#allocation24 + $0x2ac] sm:$0xf0]  ;;  %v4237_v25 = vor.u32 %v5193_v8, %v4236_v7  ;;  %3084 = vmatpush.bf16.msrb.mxu1 %v4509_v5 }
 0x2d1   :  { %v6164_v29 = vadd.f32 %v1253_v6, %v1188_v18  ;;  %v1293_v13 = vadd.f32 %v6168_v36, %v6160_v16  ;;  %v1320_v14 = vmul.f32 %v6168_v36, %v6168_v36  ;;  %3056 = vmatpush.bf16.msra.mxu3 %v4253_v57  ;;  %v5157_v27 = vld [vmem:[#allocation24 + $0x8c] sm:$0xf0]  ;;  %v4365_v31 = vor.u32 %v5225_v63, %v4364_v9 }
 0x2d2   :  { %3070 = vmatpush.bf16.msra.mxu0 %v4381_v58  ;;  %v4093_v49 = vor.u32 %v5157_v27, %v4092_v26  ;;  %v1321_v12 = vmul.f32 %v6177_v0, %v6177_v0  ;;  %v4349_v57 = vor.u32 %v5221_v38, %v4348_v37 }
 0x2d3   :  { %v1314_v45 = vmul.f32 %v6164_v29, %v6164_v29  ;;  %v1336_v28 = vadd.f32 %v1320_v14, %v1319_v44  ;;  %v1294_v44 = vadd.f32 %v1293_v13, %v6177_v0 }
 0x2d4   :  { %v1201_v54 = vpop.f32.mrf.mxu2  ;;  %3085 = vmatpush.bf16.msrb.mxu1 %v4493_v32  ;;  %3044 = vmatpush.bf16.msra.mxu2 %v4093_v49  ;;  %v5185_v49 = vld [vmem:[#allocation24 + $0x16c] sm:$0xf0] }
 0x2d5   :  { %v1202_v1 = vadd.f32 %v1201_v54, %v6123_v46  ;;  %v1215_v4 = vpop.f32.mrf.mxu3  ;;  %v1286_v46 = vadd.f32 %v1285_v42, %v6164_v29  ;;  %v4476_v42 = vld [vmem:[#allocation24 + $0x380] sm:$0xf]  ;;  %3057 = vmatpush.bf16.msra.mxu3 %v4237_v25  ;;  %v1337_v5 = vadd.f32 %v1336_v28, %v1321_v12 }
 0x2d6   :  { %v1216_v18 = vadd.f32 %v1215_v4, %v6127_v48  ;;  %v1189_v19 = vpop.f32.mrf.mxu1  ;;  %v1329_v48 = vadd.f32 %v1328_v62, %v1314_v45  ;;  %v6205_v45 = vadd.f32 %v1256_v3, %v6166_v34  ;;  %3071 = vmatpush.bf16.msra.mxu0 %v4365_v31  ;;  %v4477_v34 = vor.u32 %v5253_v43, %v4476_v42  ;;  %v5153_v42 = vld [vmem:[#allocation24 + $0x6c] sm:$0xf0]  ;;  %v4204_v43 = vld [vmem:[#allocation24 + $0x160] sm:$0xf] }
 0x2d7   :  { %v6188_v23 = vadd.f32 %v1254_v10, %v1202_v1  ;;  %v1190_v24 = vadd.f32 %v1189_v19, %v6125_v47  ;;  %v1257_v4 = vperm.slane %v6137_v2, 7  ;;  %v1232_v19 = vadd.f32 %v1231_v60, %v6135_v53  ;;  %v4332_v12 = vld [vmem:[#allocation24 + $0x260] sm:$0xf] }
 0x2d8   :  { %v6196_v47 = vadd.f32 %v1255_v11, %v1216_v18  ;;  %v1317_v9 = vmul.f32 %v6205_v45, %v6205_v45  ;;  %3086 = vmatpush.bf16.msrb.mxu1 %v4477_v34  ;;  %v4060_v60 = vld [vmem:[#allocation24 + $0x40] sm:$0xf] }
 0x2d9   :  { %v1287_v39 = vadd.f32 %v1286_v46, %v6188_v23  ;;  %v1315_v40 = vmul.f32 %v6188_v23, %v6188_v23  ;;  %v6200_v41 = vadd.f32 %v1253_v6, %v1190_v24  ;;  %3058 = vmatpush.bf16.msra.mxu3 %v4221_v56  ;;  %v6242_v25 = vadd.f32 %v1256_v3, %v1232_v19  ;;  %v4044_v19 = vld [vmem:[#allocation24 + $0x20] sm:$0xf] }
 0x2da   :  { %v1316_v61 = vmul.f32 %v6196_v47, %v6196_v47  ;;  %3072 = vmatpush.bf16.msra.mxu0 %v4349_v57  ;;  %v4205_v56 = vor.u32 %v5185_v49, %v4204_v43  ;;  %v4652_v43 = vld [vmem:[#allocation24 + $0x4e0] sm:$0xf]  ;;  %v5297_v49 = vld [vmem:[#allocation24 + $0x4ec] sm:$0xf0] }
 0x2db   :  { %v1330_v54 = vadd.f32 %v1329_v48, %v1315_v40  ;;  %v1322_v6 = vmul.f32 %v6200_v41, %v6200_v41  ;;  %v1288_v59 = vadd.f32 %v1287_v39, %v6196_v47  ;;  %v1295_v14 = vadd.f32 %v1294_v44, %v6200_v41  ;;  %v5149_v44 = vld [vmem:[#allocation24 + $0x4c] sm:$0xf0] }
 0x2dc   :  { %v1203_v58 = vpop.f32.mrf.mxu2  ;;  %v1325_v2 = vmul.f32 %v6242_v25, %v6242_v25  ;;  %v5895_v40 = vmov 1024.0  }
 0x2dd   :  { %v1204_v62 = vadd.f32 %v1203_v58, %v6129_v50  ;;  %v1217_v1 = vpop.f32.mrf.mxu3  ;;  %v1331_v50 = vadd.f32 %v1330_v54, %v1316_v61  ;;  %v1338_v20 = vadd.f32 %v1337_v5, %v1322_v6  ;;  %5434 = vrcp.f32 %v5895_v40  ;;  %v5217_v54 = vld [vmem:[#allocation24 + $0x26c] sm:$0xf0]  ;;  %v4460_v6 = vld [vmem:[#allocation24 + $0x360] sm:$0xf]  ;;  %3059 = vmatpush.bf16.msra.mxu3 %v4205_v56 }
 0x2de   :  { %v1218_v7 = vadd.f32 %v1217_v1, %v6133_v52  ;;  %v1243_v8 = vpop.f32.mrf.mxu1  ;;  %v1289_v52 = vadd.f32 %v1288_v59, %v6205_v45  ;;  %v4333_v57 = vor.u32 %v5217_v54, %v4332_v12  ;;  %v5249_v58 = vld [vmem:[#allocation24 + $0x36c] sm:$0xf0]  ;;  %v4188_v61 = vld [vmem:[#allocation24 + $0x140] sm:$0xf]  ;;  %v4653_v56 = vor.u32 %v5297_v49, %v4652_v43 }
 0x2df   :  { %v6223_v13 = vadd.f32 %v1254_v10, %v1204_v62  ;;  %v1244_v18 = vadd.f32 %v1243_v8, %v6131_v51  ;;  %v1332_v46 = vadd.f32 %v1331_v50, %v1317_v9  ;;  %v4461_v59 = vor.u32 %v5249_v58, %v4460_v6  ;;  %v5181_v1 = vld [vmem:[#allocation24 + $0x14c] sm:$0xf0]  ;;  %v4444_v9 = vld [vmem:[#allocation24 + $0x340] sm:$0xf] }
 0x2e0   :  { %v6233_v10 = vadd.f32 %v1255_v11, %v1218_v7  ;;  %3073 = vmatpush.bf16.msra.mxu0 %v4333_v57  ;;  %v4061_v62 = vor.u32 %v5149_v44, %v4060_v60  ;;  %v5213_v5 = vld [vmem:[#allocation24 + $0x24c] sm:$0xf0]  ;;  %v4189_v7 = vor.u32 %v5181_v1, %v4188_v61  ;;  %v4780_v12 = vld [vmem:[#allocation24 + $0x5e0] sm:$0xf] }
 0x2e1   :  { %v1296_v63 = vadd.f32 %v1295_v14, %v6223_v13  ;;  %v1323_v21 = vmul.f32 %v6223_v13, %v6223_v13  ;;  %v6235_v22 = vadd.f32 %v1257_v4, %v1244_v18  ;;  %3087 = vmatpush.bf16.msrb.mxu1 %v4461_v59  ;;  %v5245_v14 = vld [vmem:[#allocation24 + $0x34c] sm:$0xf0]  ;;  %v4908_v6 = vld [vmem:[#allocation24 + $0x6e0] sm:$0xf] }
 0x2e2   :  { %v1324_v26 = vmul.f32 %v6233_v10, %v6233_v10  ;;  %v4445_v50 = vor.u32 %v5245_v14, %v4444_v9  ;;  %3060 = vmatpush.bf16.msra.mxu3 %v4189_v7  ;;  %v5329_v54 = vld [vmem:[#allocation24 + $0x5ec] sm:$0xf0]  ;;  %v5036_v59 = vld [vmem:[#allocation24 + $0x7e0] sm:$0xf] }
 0x2e3   :  { %v1290_v51 = vadd.f32 %v1289_v52, %v6235_v22  ;;  %v1318_v53 = vmul.f32 %v6235_v22, %v6235_v22  ;;  %v1339_v24 = vadd.f32 %v1338_v20, %v1323_v21  ;;  %v1297_v11 = vadd.f32 %v1296_v63, %v6233_v10  ;;  %v6256_v34 = vpop.eup %5434  ;;  %v5145_v20 = vld [vmem:[#allocation24 + $0x2c] sm:$0xf0]  ;;  %v4172_v52 = vld [vmem:[#allocation24 + $0x120] sm:$0xf] }
 0x2e4   :  { %v6259_v18 = vmul.f32 1024.0, %v6256_v34  ;;  %v4045_v63 = vor.u32 %v5145_v20, %v4044_v19  ;;  %v5177_v21 = vld [vmem:[#allocation24 + $0x12c] sm:$0xf0]  ;;  %v4781_v57 = vor.u32 %v5329_v54, %v4780_v12  ;;  %v4636_v61 = vld [vmem:[#allocation24 + $0x4c0] sm:$0xf]  ;;  %vm1307_vm1 = vweird.f32 %v6256_v34 }
 0x2e5   :  { %1291 = vadd.xlane.f32.xlu2 %v1290_v51  ;;  %v1333_v27 = vadd.f32 %v1332_v46, %v1318_v53  ;;  %v1340_v31 = vadd.f32 %v1339_v24, %v1324_v26  ;;  %v1298_v33 = vadd.f32 %v1297_v11, %v6242_v25  ;;  %3088 = vmatpush.bf16.msrb.mxu1 %v4445_v50  ;;  %v4300_v51 = vld [vmem:[#allocation24 + $0x220] sm:$0xf]  ;;  %v5209_v53 = vld [vmem:[#allocation24 + $0x22c] sm:$0xf0] }
 0x2e6   :  { %v1245_v30 = vpop.f32.mrf.mxu1  ;;  %v4173_v46 = vor.u32 %v5177_v21, %v4172_v52  ;;  %v4301_v24 = vor.u32 %v5209_v53, %v4300_v51  ;;  %v4428_v26 = vld [vmem:[#allocation24 + $0x320] sm:$0xf]  ;;  %v1304_v11 = vsub.f32 1.0, %v6259_v18  ;;  %v5361_v58 = vld [vmem:[#allocation24 + $0x6ec] sm:$0xf0] }
 0x2e7   :  { %v1246_v48 = vadd.f32 %v1245_v30, %v6139_v55  ;;  %1334 = vadd.xlane.f32.xlu1 %v1333_v27  ;;  %v1341_v38 = vadd.f32 %v1340_v31, %v1325_v2  ;;  %v4076_v55 = vld [vmem:[#allocation24 + $0x60] sm:$0xf]  ;;  %v5241_v27 = vld [vmem:[#allocation24 + $0x32c] sm:$0xf0]  ;;  %v4909_v60 = vor.u32 %v5361_v58, %v4908_v6 }
 0x2e8   :  { %v4077_v28 = vor.u32 %v5153_v42, %v4076_v55  ;;  %v4429_v30 = vor.u32 %v5241_v27, %v4428_v26  ;;  %3061 = vmatpush.bf16.msra.mxu3 %v4173_v46  ;;  %v5141_v31 = vld [vmem:[#allocation24 + $0xc] sm:$0xf0]  ;;  %v4412_v55 = vld [vmem:[#allocation24 + $0x300] sm:$0xf]  ;;  %v1305_v52 = vmul.f32 %v6256_v34, %v1304_v11 }
 0x2e9   :  { %v6248_v32 = vadd.f32 %v1257_v4, %v1246_v48  ;;  %v4316_v4 = vld [vmem:[#allocation24 + $0x240] sm:$0xf]  ;;  %v5237_v42 = vld [vmem:[#allocation24 + $0x30c] sm:$0xf0] }
 0x2ea   :  { %3045 = vmatpush.bf16.msra.mxu2 %v4077_v28  ;;  %v4317_v8 = vor.u32 %v5213_v5, %v4316_v4  ;;  %v4028_v48 = vld [vmem:[#allocation24] sm:$0xf]  ;;  %3089 = vmatpush.bf16.msrb.mxu1 %v4429_v30  ;;  %v4413_v28 = vor.u32 %v5237_v42, %v4412_v55  ;;  %v5393_v44 = vld [vmem:[#allocation24 + $0x7ec] sm:$0xf0] }
 0x2eb   :  { %v1299_v3 = vadd.f32 %v1298_v33, %v6248_v32  ;;  %v1326_v37 = vmul.f32 %v6248_v32, %v6248_v32  ;;  %v4156_v33 = vld [vmem:[#allocation24 + $0x100] sm:$0xf]  ;;  %v4029_v2 = vor.u32 %v5141_v31, %v4028_v48  ;;  %v5037_v1 = vor.u32 %v5393_v44, %v5036_v59  ;;  %v5325_v7 = vld [vmem:[#allocation24 + $0x5cc] sm:$0xf0] }
 0x2ec   :  { %3074 = vmatpush.bf16.msra.mxu0 %v4317_v8  ;;  %v4764_v5 = vld [vmem:[#allocation24 + $0x5c0] sm:$0xf]  ;;  %v5357_v14 = vld [vmem:[#allocation24 + $0x6cc] sm:$0xf0] }
 0x2ed   :  { %1300 = vadd.xlane.f32.xlu0 %v1299_v3  ;;  %v1342_v39 = vadd.f32 %v1341_v38, %v1326_v37  ;;  %v5173_v3 = vld [vmem:[#allocation24 + $0x10c] sm:$0xf0]  ;;  %v4284_v37 = vld [vmem:[#allocation24 + $0x200] sm:$0xf]  ;;  %v4765_v9 = vor.u32 %v5325_v7, %v4764_v5 }
 0x2ee   :  { %3046 = vmatpush.bf16.msra.mxu2 %v4061_v62  ;;  %v5205_v38 = vld [vmem:[#allocation24 + $0x20c] sm:$0xf0]  ;;  %3090 = vmatpush.bf16.msrb.mxu1 %v4413_v28  ;;  %v4892_v8 = vld [vmem:[#allocation24 + $0x6c0] sm:$0xf] }
 0x2ef   :  { %1343 = vadd.xlane.f32.xlu2 %v1342_v39  ;;  %v4157_v39 = vor.u32 %v5173_v3, %v4156_v33  ;;  %v4285_v40 = vor.u32 %v5205_v38, %v4284_v37  ;;  %v5293_v62 = vld [vmem:[#allocation24 + $0x4cc] sm:$0xf0]  ;;  %v5020_v18 = vld [vmem:[#allocation24 + $0x7c0] sm:$0xf]  ;;  %v4893_v19 = vor.u32 %v5357_v14, %v4892_v8 }
 0x2f0   :  { %3075 = vmatpush.bf16.msra.mxu0 %v4301_v24  ;;  %v4637_v4 = vor.u32 %v5293_v62, %v4636_v61  ;;  %v5389_v50 = vld [vmem:[#allocation24 + $0x7cc] sm:$0xf0]  ;;  %v4748_v51 = vld [vmem:[#allocation24 + $0x5a0] sm:$0xf] }
 0x2f1   :  { %3062 = vmatpush.bf16.msra.mxu3 %v4157_v39  ;;  %v5021_v20 = vor.u32 %v5389_v50, %v5020_v18  ;;  %v5289_v21 = vld [vmem:[#allocation24 + $0x4ac] sm:$0xf0]  ;;  %v4876_v24 = vld [vmem:[#allocation24 + $0x6a0] sm:$0xf] }
 0x2f2   :  { %3047 = vmatpush.bf16.msra.mxu2 %v4045_v63  ;;  %3139 = vmatpush.bf16.msra.mxu1 %v5037_v1  ;;  %v4620_v63 = vld [vmem:[#allocation24 + $0x4a0] sm:$0xf]  ;;  %v5321_v46 = vld [vmem:[#allocation24 + $0x5ac] sm:$0xf0] }
 0x2f3   :  { %v4621_v53 = vor.u32 %v5289_v21, %v4620_v63  ;;  %v5353_v26 = vld [vmem:[#allocation24 + $0x6ac] sm:$0xf0]  ;;  %v4749_v27 = vor.u32 %v5321_v46, %v4748_v51  ;;  %v5004_v48 = vld [vmem:[#allocation24 + $0x7a0] sm:$0xf] }
 0x2f4   :  { %3076 = vmatpush.bf16.msra.mxu0 %v4285_v40  ;;  %v4877_v30 = vor.u32 %v5353_v26, %v4876_v24  ;;  %v5385_v31 = vld [vmem:[#allocation24 + $0x7ac] sm:$0xf0]  ;;  %v4604_v3 = vld [vmem:[#allocation24 + $0x480] sm:$0xf] }
 0x2f5   :  { %3111 = vmatpush.bf16.msrb.mxu3 %v4781_v57  ;;  %v5005_v33 = vor.u32 %v5385_v31, %v5004_v48  ;;  %v5285_v11 = vld [vmem:[#allocation24 + $0x48c] sm:$0xf0]  ;;  %v4732_v37 = vld [vmem:[#allocation24 + $0x580] sm:$0xf] }
 0x2f6   :  { %3048 = vmatpush.bf16.msra.mxu2 %v4029_v2  ;;  %3140 = vmatpush.bf16.msra.mxu1 %v5021_v20  ;;  %v1306_v2 = vadd.f32 %v6256_v34, %v1305_v52  ;;  %v4605_v38 = vor.u32 %v5285_v11, %v4604_v3  ;;  %v5317_v39 = vld [vmem:[#allocation24 + $0x58c] sm:$0xf0]  ;;  %v4860_v40 = vld [vmem:[#allocation24 + $0x680] sm:$0xf] }
 0x2f7   :  { %v5349_v55 = vld [vmem:[#allocation24 + $0x68c] sm:$0xf0]  ;;  %v4733_v42 = vor.u32 %v5317_v39, %v4732_v37  ;;  %v4988_v28 = vld [vmem:[#allocation24 + $0x780] sm:$0xf] }
 0x2f8   :  { %3125 = vmatpush.bf16.msrb.mxu0 %v4909_v60  ;;  %v4861_v43 = vor.u32 %v5349_v55, %v4860_v40  ;;  %v5381_v49 = vld [vmem:[#allocation24 + $0x78c] sm:$0xf0]  ;;  %v6266_v54 = vsel %vm1307_vm1, %v6256_v34, %v1306_v2  ;;  %v4716_v6 = vld [vmem:[#allocation24 + $0x560] sm:$0xf] }
 0x2f9   :  { %3112 = vmatpush.bf16.msrb.mxu3 %v4765_v9  ;;  %v4989_v12 = vor.u32 %v5381_v49, %v4988_v28  ;;  %v5281_v57 = vld [vmem:[#allocation24 + $0x46c] sm:$0xf0]  ;;  %v4844_v60 = vld [vmem:[#allocation24 + $0x660] sm:$0xf] }
 0x2fa   :  { %3097 = vmatpush.bf16.msrb.mxu2 %v4653_v56  ;;  %3141 = vmatpush.bf16.msra.mxu1 %v5005_v33  ;;  %v4588_v56 = vld [vmem:[#allocation24 + $0x460] sm:$0xf]  ;;  %v5313_v59 = vld [vmem:[#allocation24 + $0x56c] sm:$0xf0] }
 0x2fb   :  { %v4589_v58 = vor.u32 %v5281_v57, %v4588_v56  ;;  %v5345_v44 = vld [vmem:[#allocation24 + $0x66c] sm:$0xf0]  ;;  %v4717_v62 = vor.u32 %v5313_v59, %v4716_v6  ;;  %v4572_v9 = vld [vmem:[#allocation24 + $0x440] sm:$0xf] }
 0x2fc   :  { %3126 = vmatpush.bf16.msrb.mxu0 %v4893_v19  ;;  %v4845_v1 = vor.u32 %v5345_v44, %v4844_v60  ;;  %v5377_v5 = vld [vmem:[#allocation24 + $0x76c] sm:$0xf0]  ;;  %v4700_v18 = vld [vmem:[#allocation24 + $0x540] sm:$0xf] }
 0x2fd   :  { %3113 = vmatpush.bf16.msrb.mxu3 %v4749_v27  ;;  %v5277_v14 = vld [vmem:[#allocation24 + $0x44c] sm:$0xf0]  ;;  %v4828_v63 = vld [vmem:[#allocation24 + $0x640] sm:$0xf] }
 0x2fe   :  { %3098 = vmatpush.bf16.msrb.mxu2 %v4637_v4  ;;  %v4972_v4 = vld [vmem:[#allocation24 + $0x760] sm:$0xf]  ;;  %3142 = vmatpush.bf16.msra.mxu1 %v4989_v12  ;;  %v4573_v20 = vor.u32 %v5277_v14, %v4572_v9  ;;  %v5309_v52 = vld [vmem:[#allocation24 + $0x54c] sm:$0xf0] }
 0x2ff   :  { %v4973_v34 = vor.u32 %v5377_v5, %v4972_v4  ;;  %v5341_v21 = vld [vmem:[#allocation24 + $0x64c] sm:$0xf0]  ;;  %v4701_v51 = vor.u32 %v5309_v52, %v4700_v18  ;;  %v4956_v46 = vld [vmem:[#allocation24 + $0x740] sm:$0xf]  ;;  %v6282_v52 = vld [vmem:[#allocation22] sm:$0xff] }
 0x300   :  { %3127 = vmatpush.bf16.msrb.mxu0 %v4877_v30  ;;  %v5373_v24 = vld [vmem:[#allocation24 + $0x74c] sm:$0xf0]  ;;  %v4556_v26 = vld [vmem:[#allocation24 + $0x420] sm:$0xf] }
 0x301   :  { %3114 = vmatpush.bf16.msrb.mxu3 %v4733_v42  ;;  %v4957_v30 = vor.u32 %v5373_v24, %v4956_v46  ;;  %v5273_v48 = vld [vmem:[#allocation24 + $0x42c] sm:$0xf0]  ;;  %v4684_v31 = vld [vmem:[#allocation24 + $0x520] sm:$0xf] }
 0x302   :  { %3099 = vmatpush.bf16.msrb.mxu2 %v4621_v53  ;;  %v4829_v53 = vor.u32 %v5341_v21, %v4828_v63  ;;  %3143 = vmatpush.bf16.msra.mxu1 %v4973_v34  ;;  %v5305_v33 = vld [vmem:[#allocation24 + $0x52c] sm:$0xf0]  ;;  %v4812_v2 = vld [vmem:[#allocation24 + $0x620] sm:$0xf] }
 0x303   :  { %v5337_v3 = vld [vmem:[#allocation24 + $0x62c] sm:$0xf0]  ;;  %v4940_v11 = vld [vmem:[#allocation24 + $0x720] sm:$0xf]  ;;  %v4685_v39 = vor.u32 %v5305_v33, %v4684_v31 }
 0x304   :  { %3128 = vmatpush.bf16.msrb.mxu0 %v4861_v43  ;;  %v5369_v40 = vld [vmem:[#allocation24 + $0x72c] sm:$0xf0]  ;;  %v4540_v55 = vld [vmem:[#allocation24 + $0x400] sm:$0xf]  ;;  %v4813_v43 = vor.u32 %v5337_v3, %v4812_v2 }
 0x305   :  { %3115 = vmatpush.bf16.msrb.mxu3 %v4717_v62  ;;  %v5269_v28 = vld [vmem:[#allocation24 + $0x40c] sm:$0xf0]  ;;  %v4668_v49 = vld [vmem:[#allocation24 + $0x500] sm:$0xf]  ;;  %v4941_v57 = vor.u32 %v5369_v40, %v4940_v11  ;;  %v1441_v11 = vperm.slane %v6282_v52, 2 }
 0x306   :  { %3100 = vmatpush.bf16.msrb.mxu2 %v4605_v38  ;;  %v4557_v38 = vor.u32 %v5273_v48, %v4556_v26  ;;  %v5301_v12 = vld [vmem:[#allocation24 + $0x50c] sm:$0xf0]  ;;  %3144 = vmatpush.bf16.msra.mxu1 %v4957_v30  ;;  %v4796_v6 = vld [vmem:[#allocation24 + $0x600] sm:$0xf]  ;;  %v4541_v60 = vor.u32 %v5269_v28, %v4540_v55  ;;  %v1439_v26 = vperm.slane %v6282_v52, 0 }
 0x307   :  { %v4924_v44 = vld [vmem:[#allocation24 + $0x700] sm:$0xf]  ;;  %v4669_v4 = vor.u32 %v5301_v12, %v4668_v49  ;;  %v6312_v28 = vld [vmem:[#allocation24 + $0xe4] sm:$0xf]  ;;  %v6314_v49 = vld [vmem:[#allocation24 + $0xf0] sm:$0xf0] }
 0x308   :  { %3129 = vmatpush.bf16.msrb.mxu0 %v4845_v1 }
 0x309   :  { %3116 = vmatpush.bf16.msrb.mxu3 %v4701_v51 }
 0x30a   :  { %3101 = vmatpush.bf16.msrb.mxu2 %v4589_v58  ;;  %v5333_v58 = vld [vmem:[#allocation24 + $0x60c] sm:$0xf0]  ;;  %3145 = vmatpush.bf16.msra.mxu1 %v4941_v57 }
 0x30b   :  { %v4797_v5 = vor.u32 %v5333_v58, %v4796_v6 }
 0x30c   :  { %3130 = vmatpush.bf16.msrb.mxu0 %v4829_v53 }
 0x30d   :  { %3117 = vmatpush.bf16.msrb.mxu3 %v4685_v39 }
 0x30e   :  { %3102 = vmatpush.bf16.msrb.mxu2 %v4573_v20  ;;  %v6280_v20 = vld [vmem:[#allocation21] sm:$0xff] }
 0x30f   :  { %v1406_v21 = vperm.slane %v6280_v20, 0  ;;  %v1407_v46 = vperm.slane %v6280_v20, 1  ;;  %v1408_v30 = vperm.slane %v6280_v20, 2  ;;  %v1410_v12 = vperm.slane %v6280_v20, 4 }
 0x310   :  { %3131 = vmatpush.bf16.msrb.mxu0 %v4813_v43 }
 0x311   :  { %3118 = vmatpush.bf16.msrb.mxu3 %v4669_v4 }
 0x312   :  { %3103 = vmatpush.bf16.msrb.mxu2 %v4557_v38 }
 0x314   :  { %3132 = vmatpush.bf16.msrb.mxu0 %v4797_v5 }
 0x316   :  { %3104 = vmatpush.bf16.msrb.mxu2 %v4541_v60  ;;  %v6323_v60 = vld [vmem:[#allocation24 + $0x1f0] sm:$0xf0] }
 0x358   :  { %v1292_v61 = vpop.xlane.xlu2 %1291 }
 0x359   :  { %v6269_v7 = vmul.f32 %v6266_v54, %v1292_v61  ;;  %v5365_v61 = vld [vmem:[#allocation24 + $0x70c] sm:$0xf0] }
 0x35a   :  { %v1335_v8 = vpop.xlane.xlu1 %1334 }
 0x35b   :  { %v1345_v50 = vmul.f32 %v1335_v8, %v6266_v54  ;;  %v1347_v19 = vmul.f32 %v6269_v7, %v6269_v7  ;;  %v4925_v8 = vor.u32 %v5365_v61, %v4924_v44  ;;  %v1351_v24 = vsub.f32 %v6145_v35, %v6269_v7 }
 0x35c   :  { %v1353_v33 = vsub.f32 %v6158_v15, %v6269_v7  ;;  %v1354_v2 = vsub.f32 %v6164_v29, %v6269_v7  ;;  %v1440_v35 = vperm.slane %v6282_v52, 1  ;;  %v1442_v15 = vperm.slane %v6282_v52, 3 }
 0x35d   :  { %v1349_v27 = vsub.f32 %v1345_v50, %v1347_v19  ;;  %3146 = vmatpush.bf16.msra.mxu1 %v4925_v8  ;;  %v1355_v29 = vsub.f32 %v6188_v23, %v6269_v7  ;;  %v1356_v55 = vsub.f32 %v6196_v47, %v6269_v7  ;;  %v1358_v57 = vsub.f32 %v6235_v22, %v6269_v7  ;;  %v5159_v47 = vld [vmem:[#allocation24 + $0xa4] sm:$0xf]  ;;  %v4366_v22 = vld [vmem:[#allocation24 + $0x2b0] sm:$0xf0] }
 0x35e   :  { %v1443_v44 = vperm.slane %v6282_v52, 4  ;;  %v4145_v8 = vor.u32 %v6312_v28, %v6314_v49  ;;  %v1412_v23 = vperm.slane %v6280_v20, 6 }
 0x35f   :  { %v1367_v37 = vadd.f32 1e-05, %v1349_v27  ;;  %v1352_v27 = vsub.f32 %v6143_v17, %v6269_v7 }
 0x360   :  { %v1301_v42 = vpop.xlane.xlu0 %1300 }
 0x361   :  { %5436 = vrsqrt.f32 %v1367_v37  ;;  %v6275_v56 = vmul.f32 %v6266_v54, %v1301_v42  ;;  %vm1375_vm3 = vweird.f32 %v1367_v37  ;;  %v1357_v42 = vsub.f32 %v6205_v45, %v6269_v7  ;;  %v5255_v7 = vld [vmem:[#allocation24 + $0x3a4] sm:$0xf] }
 0x362   :  { %v1344_v59 = vpop.xlane.xlu2 %1343 }
 0x363   :  { %v1348_v62 = vmul.f32 %v6275_v56, %v6275_v56  ;;  %v1346_v1 = vmul.f32 %v1344_v59, %v6266_v54  ;;  %v1359_v6 = vsub.f32 %v6160_v16, %v6275_v56  ;;  %v6321_v59 = vld [vmem:[#allocation24 + $0x1e4] sm:$0xf]  ;;  %v1360_v5 = vsub.f32 %v6168_v36, %v6275_v56 }
 0x364   :  { %v1362_v16 = vsub.f32 %v6200_v41, %v6275_v56  ;;  %v6343_v41 = vld [vmem:[#allocation24 + $0x2f0] sm:$0xf0] }
 0x365   :  { %v1350_v34 = vsub.f32 %v1346_v1, %v1348_v62 }
 0x367   :  { %v5437_v9 = vpop.eup %5436  ;;  %v1368_v14 = vadd.f32 1e-05, %v1350_v34  ;;  %v1361_v34 = vsub.f32 %v6177_v0, %v6275_v56 }
 0x368   :  { %v1370_v18 = vmul.f32 %v5437_v9, %v1367_v37  ;;  %vm1376_vm2 = vweird.f32 %v5437_v9  ;;  %v1409_v37 = vperm.slane %v6280_v20, 3 }
 0x369   :  { %5438 = vrsqrt.f32 %v1368_v14  ;;  %vm1377_vm4 = vmor %vm1375_vm3, %vm1376_vm2  ;;  %vm1385_vm6 = vweird.f32 %v1368_v14 }
 0x36a   :  { %v1371_v50 = vmul.f32 %v5437_v9, %v1370_v18  ;;  %v1363_v18 = vsub.f32 %v6223_v13, %v6275_v56 }
 0x36c   :  { %v1372_v19 = vmul.f32 0.5, %v1371_v50  ;;  %v1364_v50 = vsub.f32 %v6233_v10, %v6275_v56  ;;  %v1411_v10 = vperm.slane %v6280_v20, 5 }
 0x36e   :  { %v1373_v54 = vsub.f32 1.5, %v1372_v19 }
 0x36f   :  { %v5439_v63 = vpop.eup %5438 }
 0x370   :  { %v1374_v51 = vmul.f32 %v5437_v9, %v1373_v54  ;;  %v1380_v53 = vmul.f32 %v5439_v63, %v1368_v14  ;;  %vm1386_vm5 = vweird.f32 %v5439_v63  ;;  %v4273_v14 = vor.u32 %v6321_v59, %v6323_v60 }
 0x371   :  { %vm1387_vm7 = vmor %vm1385_vm6, %vm1386_vm5 }
 0x372   :  { %v6292_v48 = vsel %vm1377_vm4, %v5437_v9, %v1374_v51  ;;  %v1381_v31 = vmul.f32 %v5439_v63, %v1380_v53  ;;  %v6341_v51 = vld [vmem:[#allocation24 + $0x2e4] sm:$0xf] }
 0x373   :  { %v1389_v3 = vmul.f32 %v6292_v48, %v1351_v24  ;;  %v1390_v38 = vmul.f32 %v6292_v48, %v1352_v27  ;;  %v1391_v39 = vmul.f32 %v6292_v48, %v1353_v33  ;;  %v1392_v40 = vmul.f32 %v6292_v48, %v1354_v2 }
 0x374   :  { %v1382_v17 = vmul.f32 0.5, %v1381_v31  ;;  %v4401_v13 = vor.u32 %v6341_v51, %v6343_v41  ;;  %v5227_v41 = vld [vmem:[#allocation24 + $0x2c4] sm:$0xf]  ;;  %v1396_v45 = vmul.f32 %v6292_v48, %v1358_v57 }
 0x375   :  { %v1422_v58 = vmul.f32 %v1406_v21, %v1389_v3  ;;  %v1423_v62 = vmul.f32 %v1407_v46, %v1390_v38  ;;  %v1424_v1 = vmul.f32 %v1408_v30, %v1391_v39  ;;  %v1425_v4 = vmul.f32 %v1409_v37, %v1392_v40 }
 0x376   :  { %v1383_v43 = vsub.f32 1.5, %v1382_v17  ;;  %v1444_v17 = vperm.slane %v6282_v52, 5  ;;  %v1365_v38 = vsub.f32 %v6242_v25, %v6275_v56 }
 0x377   :  { %v1455_v53 = vadd.f32 %v1439_v26, %v1422_v58  ;;  %v1456_v24 = vadd.f32 %v1440_v35, %v1423_v62  ;;  %v1458_v27 = vadd.f32 %v1442_v15, %v1425_v4  ;;  %v5263_v58 = vld [vmem:[#allocation24 + $0x3e4] sm:$0xf] }
 0x378   :  { %v1384_v61 = vmul.f32 %v5439_v63, %v1383_v43 }
 0x37a   :  { %v1388_v9 = vsel %vm1387_vm7, %v5439_v63, %v1384_v61  ;;  %v1457_v63 = vadd.f32 %v1441_v11, %v1424_v1  ;;  %v1471_v61 = vmax.f32 %v1455_v53, 0.0 }
 0x37b   :  { %v1397_v36 = vmul.f32 %v1388_v9, %v1359_v6  ;;  %v1398_v19 = vmul.f32 %v1388_v9, %v1360_v5  ;;  %v1399_v54 = vmul.f32 %v1388_v9, %v1361_v34  ;;  %v1400_v0 = vmul.f32 %v1388_v9, %v1362_v16  ;;  %v5163_v34 = vld [vmem:[#allocation24 + $0xc4] sm:$0xf]  ;;  %v4126_v16 = vld [vmem:[#allocation24 + $0xd0] sm:$0xf0] }
 0x37c   :  { %v1402_v25 = vmul.f32 %v1388_v9, %v1364_v50  ;;  %v4129_v50 = vor.u32 %v5163_v34, %v4126_v16  ;;  %v5251_v16 = vld [vmem:[#allocation24 + $0x384] sm:$0xf] }
 0x37d   :  { %v1430_v31 = vmul.f32 %v1406_v21, %v1397_v36  ;;  %v1431_v33 = vmul.f32 %v1407_v46, %v1398_v19  ;;  %v1432_v2 = vmul.f32 %v1408_v30, %v1399_v54  ;;  %v1433_v3 = vmul.f32 %v1409_v37, %v1400_v0  ;;  %v4526_v37 = vld [vmem:[#allocation24 + $0x3f0] sm:$0xf0]  ;;  %v5195_v36 = vld [vmem:[#allocation24 + $0x1c4] sm:$0xf] }
 0x37e   :  { %v1472_v21 = vmax.f32 %v1456_v24, 0.0  ;;  %v1473_v46 = vmax.f32 %v1457_v63, 0.0  ;;  %v1474_v30 = vmax.f32 %v1458_v27, 0.0  ;;  %v4254_v19 = vld [vmem:[#allocation24 + $0x1d0] sm:$0xf0]  ;;  %v1401_v54 = vmul.f32 %v1388_v9, %v1363_v18 }
 0x37f   :  { %v1463_v39 = vadd.f32 %v1439_v26, %v1430_v31  ;;  %v1464_v40 = vadd.f32 %v1440_v35, %v1431_v33  ;;  %v1465_v43 = vadd.f32 %v1441_v11, %v1432_v2  ;;  %v1466_v6 = vadd.f32 %v1442_v15, %v1433_v3  ;;  %v4382_v24 = vld [vmem:[#allocation24 + $0x2d0] sm:$0xf0]  ;;  %v5259_v63 = vld [vmem:[#allocation24 + $0x3c4] sm:$0xf] }
 0x380   :  { %v1403_v26 = vmul.f32 %v1388_v9, %v1365_v38  ;;  %v1366_v35 = vsub.f32 %v6248_v32, %v6275_v56  ;;  %v4529_v53 = vor.u32 %v5263_v58, %v4526_v37  ;;  %v4510_v27 = vld [vmem:[#allocation24 + $0x3d0] sm:$0xf0]  ;;  %v1393_v18 = vmul.f32 %v6292_v48, %v1355_v29  ;;  %v5191_v38 = vld [vmem:[#allocation24 + $0x1a4] sm:$0xf] }
 0x381   :  { %v1479_v62 = vmax.f32 %v1463_v39, 0.0  ;;  %v1480_v1 = vmax.f32 %v1464_v40, 0.0  ;;  %v1481_v4 = vmax.f32 %v1465_v43, 0.0  ;;  %v1482_v5 = vmax.f32 %v1466_v6, 0.0  ;;  %v4110_v29 = vld [vmem:[#allocation24 + $0xb0] sm:$0xf0] }
 0x382   :  { %v1394_v32 = vmul.f32 %v6292_v48, %v1356_v55  ;;  %v1404_v56 = vmul.f32 %v1388_v9, %v1366_v35  ;;  %v4257_v31 = vor.u32 %v5195_v36, %v4254_v19  ;;  %v1395_v33 = vmul.f32 %v6292_v48, %v1357_v42  ;;  %v4238_v39 = vld [vmem:[#allocation24 + $0x1b0] sm:$0xf0]  ;;  %v5223_v40 = vld [vmem:[#allocation24 + $0x2a4] sm:$0xf] }
 0x383   :  { %v6353_v11 = vpack.c.bf16 %v1479_v62, %v1471_v61  ;;  %v6355_v15 = vpack.c.bf16 %v1480_v1, %v1472_v21  ;;  %v6357_v0 = vpack.c.bf16 %v1481_v4, %v1473_v46  ;;  %v6359_v51 = vpack.c.bf16 %v1482_v5, %v1474_v30  ;;  %v4494_v48 = vld [vmem:[#allocation24 + $0x3b0] sm:$0xf0]  ;;  %v5187_v46 = vld [vmem:[#allocation24 + $0x184] sm:$0xf] }
 0x384   :  { %v1434_v55 = vmul.f32 %v1410_v12, %v1401_v54  ;;  %v1435_v9 = vmul.f32 %v1411_v10, %v1402_v25  ;;  %v1413_v42 = vperm.slane %v6280_v20, 7  ;;  %v4385_v2 = vor.u32 %v5227_v41, %v4382_v24  ;;  %v4094_v21 = vld [vmem:[#allocation24 + $0x90] sm:$0xf0]  ;;  %v5219_v62 = vld [vmem:[#allocation24 + $0x284] sm:$0xf] }
 0x385   :  { %3049 = vmatmul.bf16.vlgmr.msra.gmra.mxu2 %v6353_v11  ;;  %3063 = vmatmul.bf16.vlgmr.msra.gmra.mxu3 %v6355_v15  ;;  %v4513_v3 = vor.u32 %v5259_v63, %v4510_v27  ;;  %v1436_v43 = vmul.f32 %v1412_v23, %v1403_v26  ;;  %v1426_v57 = vmul.f32 %v1410_v12, %v1393_v18  ;;  %v4222_v37 = vld [vmem:[#allocation24 + $0x190] sm:$0xf0]  ;;  %v5151_v35 = vld [vmem:[#allocation24 + $0x64] sm:$0xf] }
 0x386   :  { %3077 = vmatmul.bf16.vlgmr.msra.gmra.mxu0 %v6357_v0  ;;  %3091 = vmatmul.bf16.vlgmr.msrb.gmra.mxu1 %v6359_v51  ;;  %v1427_v28 = vmul.f32 %v1411_v10, %v1394_v32  ;;  %v1437_v49 = vmul.f32 %v1413_v42, %v1404_v56  ;;  %v4113_v59 = vor.u32 %v5159_v47, %v4110_v29  ;;  %v5155_v10 = vld [vmem:[#allocation24 + $0x84] sm:$0xf]  ;;  %v4350_v1 = vld [vmem:[#allocation24 + $0x290] sm:$0xf0] }
 0x387   :  { %3153 = vmatpush.bf16.msra.mxu2 %v4145_v8  ;;  %3167 = vmatpush.bf16.msra.mxu3 %v4273_v14  ;;  %v1428_v60 = vmul.f32 %v1412_v23, %v1395_v33  ;;  %v1445_v8 = vperm.slane %v6282_v52, 6  ;;  %v1446_v14 = vperm.slane %v6282_v52, 7  ;;  %v4241_v6 = vor.u32 %v5191_v38, %v4238_v39  ;;  %v4478_v36 = vld [vmem:[#allocation24 + $0x390] sm:$0xf0]  ;;  %v5215_v32 = vld [vmem:[#allocation24 + $0x264] sm:$0xf] }
 0x388   :  { %3181 = vmatpush.bf16.msra.mxu0 %v4401_v13  ;;  %3195 = vmatpush.bf16.msrb.mxu1 %v4529_v53  ;;  %v1467_v13 = vadd.f32 %v1443_v44, %v1434_v55  ;;  %v1468_v58 = vadd.f32 %v1444_v17, %v1435_v9  ;;  %v1429_v61 = vmul.f32 %v1413_v42, %v1396_v45  ;;  %v4078_v41 = vld [vmem:[#allocation24 + $0x70] sm:$0xf0]  ;;  %v5183_v53 = vld [vmem:[#allocation24 + $0x164] sm:$0xf] }
 0x389   :  { %v4369_v12 = vor.u32 %v5223_v40, %v4366_v22  ;;  %v4497_v20 = vor.u32 %v5255_v7, %v4494_v48  ;;  %v1469_v30 = vadd.f32 %v1445_v8, %v1436_v43  ;;  %v1459_v4 = vadd.f32 %v1443_v44, %v1426_v57  ;;  %v4206_v44 = vld [vmem:[#allocation24 + $0x170] sm:$0xf0]  ;;  %v5247_v23 = vld [vmem:[#allocation24 + $0x364] sm:$0xf] }
 0x38a   :  { %v1460_v5 = vadd.f32 %v1444_v17, %v1427_v28  ;;  %v1470_v34 = vadd.f32 %v1446_v14, %v1437_v49  ;;  %v1461_v19 = vadd.f32 %v1445_v8, %v1428_v60  ;;  %v1483_v54 = vmax.f32 %v1467_v13, 0.0  ;;  %v4462_v47 = vld [vmem:[#allocation24 + $0x370] sm:$0xf0]  ;;  %v5179_v22 = vld [vmem:[#allocation24 + $0x144] sm:$0xf] }
 0x38b   :  { %3154 = vmatpush.bf16.msra.mxu2 %v4129_v50  ;;  %3168 = vmatpush.bf16.msra.mxu3 %v4257_v31  ;;  %v1484_v25 = vmax.f32 %v1468_v58, 0.0  ;;  %v1462_v26 = vadd.f32 %v1446_v14, %v1429_v61  ;;  %v4097_v24 = vor.u32 %v5155_v10, %v4094_v21  ;;  %v4225_v63 = vor.u32 %v5187_v46, %v4222_v37  ;;  %v4334_v31 = vld [vmem:[#allocation24 + $0x270] sm:$0xf0]  ;;  %v5211_v48 = vld [vmem:[#allocation24 + $0x244] sm:$0xf] }
 0x38c   :  { %3182 = vmatpush.bf16.msra.mxu0 %v4385_v2  ;;  %3196 = vmatpush.bf16.msrb.mxu1 %v4513_v3  ;;  %v4353_v27 = vor.u32 %v5219_v62, %v4350_v1  ;;  %v1485_v18 = vmax.f32 %v1469_v30, 0.0  ;;  %v4481_v52 = vor.u32 %v5251_v16, %v4478_v36  ;;  %v1475_v17 = vmax.f32 %v1459_v4, 0.0  ;;  %v5147_v3 = vld [vmem:[#allocation24 + $0x44] sm:$0xf]  ;;  %v4062_v38 = vld [vmem:[#allocation24 + $0x50] sm:$0xf0] }
 0x38d   :  { %v1476_v56 = vmax.f32 %v1460_v5, 0.0  ;;  %v1486_v50 = vmax.f32 %v1470_v34, 0.0  ;;  %v1477_v33 = vmax.f32 %v1461_v19, 0.0  ;;  %v1478_v9 = vmax.f32 %v1462_v26, 0.0  ;;  %v4190_v7 = vld [vmem:[#allocation24 + $0x150] sm:$0xf0] }
 0x38e   :  { %v6407_v29 = vpack.c.bf16 %v1483_v54, %v1475_v17  ;;  %v4081_v42 = vor.u32 %v5151_v35, %v4078_v41  ;;  %v4209_v2 = vor.u32 %v5183_v53, %v4206_v44  ;;  %v4337_v40 = vor.u32 %v5215_v32, %v4334_v31  ;;  %v4318_v57 = vld [vmem:[#allocation24 + $0x250] sm:$0xf0]  ;;  %v5243_v28 = vld [vmem:[#allocation24 + $0x344] sm:$0xf] }
 0x38f   :  { %3155 = vmatpush.bf16.msra.mxu2 %v4113_v59  ;;  %3169 = vmatpush.bf16.msra.mxu3 %v4241_v6  ;;  %v6409_v55 = vpack.c.bf16 %v1484_v25, %v1476_v56  ;;  %v6411_v45 = vpack.c.bf16 %v1485_v18, %v1477_v33  ;;  %v6413_v39 = vpack.c.bf16 %v1486_v50, %v1478_v9  ;;  %v4446_v49 = vld [vmem:[#allocation24 + $0x350] sm:$0xf0]  ;;  %v5143_v8 = vld [vmem:[#allocation24 + $0x24] sm:$0xf] }
 0x390   :  { %3183 = vmatpush.bf16.msra.mxu0 %v4369_v12  ;;  %3197 = vmatpush.bf16.msrb.mxu1 %v4497_v20  ;;  %v4465_v43 = vor.u32 %v5247_v23, %v4462_v47  ;;  %v4065_v59 = vor.u32 %v5147_v3, %v4062_v38  ;;  %v4193_v60 = vor.u32 %v5179_v22, %v4190_v7  ;;  %v4046_v14 = vld [vmem:[#allocation24 + $0x30] sm:$0xf0]  ;;  %v5175_v58 = vld [vmem:[#allocation24 + $0x124] sm:$0xf] }
 0x391   :  { %v4321_v6 = vor.u32 %v5211_v48, %v4318_v57  ;;  %v4449_v13 = vor.u32 %v5243_v28, %v4446_v49  ;;  %v4174_v61 = vld [vmem:[#allocation24 + $0x130] sm:$0xf0]  ;;  %v5207_v12 = vld [vmem:[#allocation24 + $0x224] sm:$0xf]  ;;  %v4049_v30 = vor.u32 %v5143_v8, %v4046_v14 }
 0x392   :  { %v4302_v20 = vld [vmem:[#allocation24 + $0x230] sm:$0xf0]  ;;  %v5239_v10 = vld [vmem:[#allocation24 + $0x324] sm:$0xf]  ;;  %v4177_v37 = vor.u32 %v5175_v58, %v4174_v61 }
 0x393   :  { %3156 = vmatpush.bf16.msra.mxu2 %v4097_v24  ;;  %3170 = vmatpush.bf16.msra.mxu3 %v4225_v63  ;;  %v4430_v21 = vld [vmem:[#allocation24 + $0x330] sm:$0xf0]  ;;  %v5139_v46 = vld [vmem:[#allocation24 + $0x4] sm:$0xf]  ;;  %v4305_v5 = vor.u32 %v5207_v12, %v4302_v20 }
 0x394   :  { %3184 = vmatpush.bf16.msra.mxu0 %v4353_v27  ;;  %3198 = vmatpush.bf16.msrb.mxu1 %v4481_v52  ;;  %v4030_v62 = vld [vmem:[#allocation24 + $0x10] sm:$0xf0]  ;;  %v5171_v1 = vld [vmem:[#allocation24 + $0x104] sm:$0xf]  ;;  %v4433_v34 = vor.u32 %v5239_v10, %v4430_v21 }
 0x395   :  { %3105 = vmatmul.bf16.vlgmr.msrb.gmra.mxu2 %v6407_v29  ;;  %3119 = vmatmul.bf16.vlgmr.msrb.gmra.mxu3 %v6409_v55  ;;  %v4158_v4 = vld [vmem:[#allocation24 + $0x110] sm:$0xf0]  ;;  %v5203_v16 = vld [vmem:[#allocation24 + $0x204] sm:$0xf]  ;;  %v4033_v24 = vor.u32 %v5139_v46, %v4030_v62 }
 0x396   :  { %3133 = vmatmul.bf16.vlgmr.msrb.gmra.mxu0 %v6411_v45  ;;  %3147 = vmatmul.bf16.vlgmr.msra.gmra.mxu1 %v6413_v39  ;;  %v4286_v36 = vld [vmem:[#allocation24 + $0x210] sm:$0xf0]  ;;  %v5235_v19 = vld [vmem:[#allocation24 + $0x304] sm:$0xf]  ;;  %v4161_v63 = vor.u32 %v5171_v1, %v4158_v4 }
 0x397   :  { %3157 = vmatpush.bf16.msra.mxu2 %v4081_v42  ;;  %3171 = vmatpush.bf16.msra.mxu3 %v4209_v2  ;;  %v4414_v54 = vld [vmem:[#allocation24 + $0x310] sm:$0xf0]  ;;  %v5295_v25 = vld [vmem:[#allocation24 + $0x4e4] sm:$0xf]  ;;  %v4289_v32 = vor.u32 %v5203_v16, %v4286_v36 }
 0x398   :  { %3185 = vmatpush.bf16.msra.mxu0 %v4337_v40  ;;  %3199 = vmatpush.bf16.msrb.mxu1 %v4465_v43  ;;  %v4654_v26 = vld [vmem:[#allocation24 + $0x4f0] sm:$0xf0]  ;;  %v5327_v35 = vld [vmem:[#allocation24 + $0x5e4] sm:$0xf]  ;;  %v4417_v52 = vor.u32 %v5235_v19, %v4414_v54 }
 0x399   :  { %v4782_v41 = vld [vmem:[#allocation24 + $0x5f0] sm:$0xf0]  ;;  %v5359_v53 = vld [vmem:[#allocation24 + $0x6e4] sm:$0xf]  ;;  %v4657_v17 = vor.u32 %v5295_v25, %v4654_v26 }
 0x39a   :  { %v4910_v27 = vld [vmem:[#allocation24 + $0x6f0] sm:$0xf0]  ;;  %v5391_v18 = vld [vmem:[#allocation24 + $0x7e4] sm:$0xf]  ;;  %v4785_v56 = vor.u32 %v5327_v35, %v4782_v41 }
 0x39b   :  { %3158 = vmatpush.bf16.msra.mxu2 %v4065_v59  ;;  %3172 = vmatpush.bf16.msra.mxu3 %v4193_v60  ;;  %v5038_v44 = vld [vmem:[#allocation24 + $0x7f0] sm:$0xf0]  ;;  %v5291_v50 = vld [vmem:[#allocation24 + $0x4c4] sm:$0xf]  ;;  %v4913_v33 = vor.u32 %v5359_v53, %v4910_v27 }
 0x39c   :  { %3186 = vmatpush.bf16.msra.mxu0 %v4321_v6  ;;  %3200 = vmatpush.bf16.msrb.mxu1 %v4449_v13  ;;  %v4638_v31 = vld [vmem:[#allocation24 + $0x4d0] sm:$0xf0]  ;;  %v5041_v23 = vor.u32 %v5391_v18, %v5038_v44  ;;  %v5323_v47 = vld [vmem:[#allocation24 + $0x5c4] sm:$0xf] }
 0x39d   :  { %v4766_v9 = vld [vmem:[#allocation24 + $0x5d0] sm:$0xf0]  ;;  %v5355_v42 = vld [vmem:[#allocation24 + $0x6c4] sm:$0xf]  ;;  %v4641_v40 = vor.u32 %v5291_v50, %v4638_v31 }
 0x39e   :  { %v4894_v2 = vld [vmem:[#allocation24 + $0x6d0] sm:$0xf0]  ;;  %v5387_v3 = vld [vmem:[#allocation24 + $0x7c4] sm:$0xf]  ;;  %v4769_v43 = vor.u32 %v5323_v47, %v4766_v9 }
 0x39f   :  { %3159 = vmatpush.bf16.msra.mxu2 %v4049_v30  ;;  %3173 = vmatpush.bf16.msra.mxu3 %v4177_v37  ;;  %v5022_v38 = vld [vmem:[#allocation24 + $0x7d0] sm:$0xf0]  ;;  %v5287_v22 = vld [vmem:[#allocation24 + $0x4a4] sm:$0xf]  ;;  %v4897_v48 = vor.u32 %v5355_v42, %v4894_v2 }
 0x3a0   :  { %3187 = vmatpush.bf16.msra.mxu0 %v4305_v5  ;;  %3201 = vmatpush.bf16.msrb.mxu1 %v4433_v34  ;;  %v4622_v7 = vld [vmem:[#allocation24 + $0x4b0] sm:$0xf0]  ;;  %v5025_v57 = vor.u32 %v5387_v3, %v5022_v38  ;;  %v5319_v28 = vld [vmem:[#allocation24 + $0x5a4] sm:$0xf] }
 0x3a1   :  { %v4750_v49 = vld [vmem:[#allocation24 + $0x5b0] sm:$0xf0]  ;;  %v5351_v59 = vld [vmem:[#allocation24 + $0x6a4] sm:$0xf]  ;;  %v4625_v6 = vor.u32 %v5287_v22, %v4622_v7 }
 0x3a2   :  { %v4878_v60 = vld [vmem:[#allocation24 + $0x6b0] sm:$0xf0]  ;;  %v5383_v8 = vld [vmem:[#allocation24 + $0x7a4] sm:$0xf]  ;;  %v4753_v13 = vor.u32 %v5319_v28, %v4750_v49 }
 0x3a3   :  { %3160 = vmatpush.bf16.msra.mxu2 %v4033_v24  ;;  %3174 = vmatpush.bf16.msra.mxu3 %v4161_v63  ;;  %v5006_v14 = vld [vmem:[#allocation24 + $0x7b0] sm:$0xf0]  ;;  %v5283_v58 = vld [vmem:[#allocation24 + $0x484] sm:$0xf]  ;;  %v4881_v12 = vor.u32 %v5351_v59, %v4878_v60 }
 0x3a4   :  { %3188 = vmatpush.bf16.msra.mxu0 %v4289_v32  ;;  %3202 = vmatpush.bf16.msrb.mxu1 %v4417_v52  ;;  %v4606_v61 = vld [vmem:[#allocation24 + $0x490] sm:$0xf0]  ;;  %v5009_v20 = vor.u32 %v5383_v8, %v5006_v14  ;;  %v5315_v10 = vld [vmem:[#allocation24 + $0x584] sm:$0xf] }
 0x3a5   :  { %v4734_v21 = vld [vmem:[#allocation24 + $0x590] sm:$0xf0]  ;;  %v5347_v46 = vld [vmem:[#allocation24 + $0x684] sm:$0xf]  ;;  %v4609_v1 = vor.u32 %v5283_v58, %v4606_v61 }
 0x3a6   :  { %3161 = vmatmul.bf16.vlgmr.msra.gmra.mxu2 %v6353_v11  ;;  %3175 = vmatmul.bf16.vlgmr.msra.gmra.mxu3 %v6355_v15  ;;  %v4862_v30 = vld [vmem:[#allocation24 + $0x690] sm:$0xf0]  ;;  %v5379_v37 = vld [vmem:[#allocation24 + $0x784] sm:$0xf]  ;;  %v4737_v4 = vor.u32 %v5315_v10, %v4734_v21  ;;  %v4276_v10 = vld [vmem:[#allocation24 + $0x1e8] sm:$0xf] }
 0x3a7   :  { %3209 = vmatpush.bf16.msrb.mxu2 %v4657_v17  ;;  %3223 = vmatpush.bf16.msrb.mxu3 %v4785_v56  ;;  %v4990_v62 = vld [vmem:[#allocation24 + $0x790] sm:$0xf0]  ;;  %v5279_v5 = vld [vmem:[#allocation24 + $0x464] sm:$0xf]  ;;  %v4865_v16 = vor.u32 %v5347_v46, %v4862_v30  ;;  %v5202_v21 = vld [vmem:[#allocation24 + $0x1f4] sm:$0xf0] }
 0x3a8   :  { %3237 = vmatpush.bf16.msrb.mxu0 %v4913_v33  ;;  %3251 = vmatpush.bf16.msra.mxu1 %v5041_v23  ;;  %v4590_v34 = vld [vmem:[#allocation24 + $0x470] sm:$0xf0]  ;;  %v4993_v36 = vor.u32 %v5379_v37, %v4990_v62  ;;  %v5311_v19 = vld [vmem:[#allocation24 + $0x564] sm:$0xf]  ;;  %v4404_v46 = vld [vmem:[#allocation24 + $0x2e8] sm:$0xf] }
 0x3a9   :  { %3189 = vmatmul.bf16.vlgmr.msra.gmra.mxu0 %v6357_v0  ;;  %3203 = vmatmul.bf16.vlgmr.msrb.gmra.mxu1 %v6359_v51  ;;  %v4718_v54 = vld [vmem:[#allocation24 + $0x570] sm:$0xf0]  ;;  %v5343_v25 = vld [vmem:[#allocation24 + $0x664] sm:$0xf]  ;;  %v4593_v53 = vor.u32 %v5279_v5, %v4590_v34  ;;  %v5234_v62 = vld [vmem:[#allocation24 + $0x2f4] sm:$0xf0] }
 0x3aa   :  { %v4846_v26 = vld [vmem:[#allocation24 + $0x670] sm:$0xf0]  ;;  %v5375_v35 = vld [vmem:[#allocation24 + $0x764] sm:$0xf]  ;;  %v4721_v24 = vor.u32 %v5311_v19, %v4718_v54  ;;  %v4132_v19 = vld [vmem:[#allocation24 + $0xc8] sm:$0xf] }
 0x3ab   :  { %3210 = vmatpush.bf16.msrb.mxu2 %v4641_v40  ;;  %3224 = vmatpush.bf16.msrb.mxu3 %v4769_v43  ;;  %v4974_v41 = vld [vmem:[#allocation24 + $0x770] sm:$0xf0]  ;;  %v5275_v63 = vld [vmem:[#allocation24 + $0x444] sm:$0xf]  ;;  %v4849_v18 = vor.u32 %v5343_v25, %v4846_v26  ;;  %v5166_v54 = vld [vmem:[#allocation24 + $0xd4] sm:$0xf0]  ;;  %v4405_v25 = vor.u32 %v5234_v62, %v4404_v46 }
 0x3ac   :  { %3238 = vmatpush.bf16.msrb.mxu0 %v4897_v48  ;;  %3252 = vmatpush.bf16.msra.mxu1 %v5025_v57  ;;  %v4574_v27 = vld [vmem:[#allocation24 + $0x450] sm:$0xf0]  ;;  %v4977_v44 = vor.u32 %v5375_v35, %v4974_v41  ;;  %v5307_v32 = vld [vmem:[#allocation24 + $0x544] sm:$0xf]  ;;  %v4260_v35 = vld [vmem:[#allocation24 + $0x1c8] sm:$0xf] }
 0x3ad   :  { %v4702_v52 = vld [vmem:[#allocation24 + $0x550] sm:$0xf0]  ;;  %v5339_v17 = vld [vmem:[#allocation24 + $0x644] sm:$0xf]  ;;  %v4577_v33 = vor.u32 %v5275_v63, %v4574_v27  ;;  %v5198_v41 = vld [vmem:[#allocation24 + $0x1d4] sm:$0xf0] }
 0x3ae   :  { %v4830_v56 = vld [vmem:[#allocation24 + $0x650] sm:$0xf0]  ;;  %v5371_v50 = vld [vmem:[#allocation24 + $0x744] sm:$0xf]  ;;  %v4705_v23 = vor.u32 %v5307_v32, %v4702_v52  ;;  %v4516_v63 = vld [vmem:[#allocation24 + $0x3c8] sm:$0xf] }
 0x3af   :  { %3211 = vmatpush.bf16.msrb.mxu2 %v4625_v6  ;;  %3225 = vmatpush.bf16.msrb.mxu3 %v4753_v13  ;;  %v4958_v31 = vld [vmem:[#allocation24 + $0x750] sm:$0xf0]  ;;  %v5271_v47 = vld [vmem:[#allocation24 + $0x424] sm:$0xf]  ;;  %v4833_v42 = vor.u32 %v5339_v17, %v4830_v56  ;;  %v5262_v27 = vld [vmem:[#allocation24 + $0x3d4] sm:$0xf0] }
 0x3b0   :  { %3239 = vmatpush.bf16.msrb.mxu0 %v4881_v12  ;;  %3253 = vmatpush.bf16.msra.mxu1 %v5009_v20  ;;  %v4558_v9 = vld [vmem:[#allocation24 + $0x430] sm:$0xf0]  ;;  %v4961_v2 = vor.u32 %v5371_v50, %v4958_v31  ;;  %v5303_v3 = vld [vmem:[#allocation24 + $0x524] sm:$0xf]  ;;  %v4148_v12 = vld [vmem:[#allocation24 + $0xe8] sm:$0xf]  ;;  %v4517_v56 = vor.u32 %v5262_v27, %v4516_v63 }
 0x3b1   :  { %v4686_v38 = vld [vmem:[#allocation24 + $0x530] sm:$0xf0]  ;;  %v5335_v40 = vld [vmem:[#allocation24 + $0x624] sm:$0xf]  ;;  %v4561_v57 = vor.u32 %v5271_v47, %v4558_v9  ;;  %v5170_v20 = vld [vmem:[#allocation24 + $0xf4] sm:$0xf0] }
 0x3b2   :  { %v4814_v43 = vld [vmem:[#allocation24 + $0x630] sm:$0xf0]  ;;  %v5367_v22 = vld [vmem:[#allocation24 + $0x724] sm:$0xf]  ;;  %v4689_v28 = vor.u32 %v5303_v3, %v4686_v38  ;;  %v4116_v32 = vld [vmem:[#allocation24 + $0xa8] sm:$0xf] }
 0x3b3   :  { %3212 = vmatpush.bf16.msrb.mxu2 %v4609_v1  ;;  %3226 = vmatpush.bf16.msrb.mxu3 %v4737_v4  ;;  %v4942_v7 = vld [vmem:[#allocation24 + $0x730] sm:$0xf0]  ;;  %v5267_v48 = vld [vmem:[#allocation24 + $0x404] sm:$0xf]  ;;  %v4817_v8 = vor.u32 %v5335_v40, %v4814_v43  ;;  %v4532_v1 = vld [vmem:[#allocation24 + $0x3e8] sm:$0xf] }
 0x3b4   :  { %3240 = vmatpush.bf16.msrb.mxu0 %v4865_v16  ;;  %3254 = vmatpush.bf16.msra.mxu1 %v4993_v36  ;;  %v4542_v49 = vld [vmem:[#allocation24 + $0x410] sm:$0xf0]  ;;  %v5299_v59 = vld [vmem:[#allocation24 + $0x504] sm:$0xf]  ;;  %v4945_v14 = vor.u32 %v5367_v22, %v4942_v7  ;;  %v5266_v4 = vld [vmem:[#allocation24 + $0x3f4] sm:$0xf0]  ;;  %v4149_v16 = vor.u32 %v5170_v20, %v4148_v12  ;;  %v4277_v36 = vor.u32 %v5202_v21, %v4276_v10 }
 0x3b5   :  { %v4670_v60 = vld [vmem:[#allocation24 + $0x510] sm:$0xf0]  ;;  %v5331_v6 = vld [vmem:[#allocation24 + $0x604] sm:$0xf]  ;;  %v4545_v30 = vor.u32 %v5267_v48, %v4542_v49  ;;  %v4533_v26 = vor.u32 %v5266_v4, %v4532_v1  ;;  %v5162_v52 = vld [vmem:[#allocation24 + $0xb4] sm:$0xf0] }
 0x3b6   :  { %v4798_v13 = vld [vmem:[#allocation24 + $0x610] sm:$0xf0]  ;;  %v5363_v58 = vld [vmem:[#allocation24 + $0x704] sm:$0xf]  ;;  %v4673_v37 = vor.u32 %v5299_v59, %v4670_v60  ;;  %v4244_v50 = vld [vmem:[#allocation24 + $0x1a8] sm:$0xf] }
 0x3b7   :  { %3213 = vmatpush.bf16.msrb.mxu2 %v4593_v53  ;;  %3227 = vmatpush.bf16.msrb.mxu3 %v4721_v24  ;;  %v4926_v61 = vld [vmem:[#allocation24 + $0x710] sm:$0xf0]  ;;  %v4801_v5 = vor.u32 %v5331_v6, %v4798_v13  ;;  %v4388_v53 = vld [vmem:[#allocation24 + $0x2c8] sm:$0xf]  ;;  %v5230_v24 = vld [vmem:[#allocation24 + $0x2d4] sm:$0xf0] }
 0x3b8   :  { %3241 = vmatpush.bf16.msrb.mxu0 %v4849_v18  ;;  %3255 = vmatpush.bf16.msra.mxu1 %v4977_v44  ;;  %v4929_v34 = vor.u32 %v5363_v58, %v4926_v61  ;;  %v4133_v18 = vor.u32 %v5166_v54, %v4132_v19  ;;  %v4261_v44 = vor.u32 %v5198_v41, %v4260_v35  ;;  %v5194_v31 = vld [vmem:[#allocation24 + $0x1b4] sm:$0xf0]  ;;  %v4500_v47 = vld [vmem:[#allocation24 + $0x3a8] sm:$0xf] }
 0x3b9   :  { %v4389_v17 = vor.u32 %v5230_v24, %v4388_v53  ;;  %v5258_v9 = vld [vmem:[#allocation24 + $0x3b4] sm:$0xf0]  ;;  %v4100_v3 = vld [vmem:[#allocation24 + $0x88] sm:$0xf] }
 0x3ba   :  { %v5158_v38 = vld [vmem:[#allocation24 + $0x94] sm:$0xf0]  ;;  %v4501_v43 = vor.u32 %v5258_v9, %v4500_v47  ;;  %v4228_v22 = vld [vmem:[#allocation24 + $0x188] sm:$0xf] }
 0x3bb   :  { %3214 = vmatpush.bf16.msrb.mxu2 %v4577_v33  ;;  %3228 = vmatpush.bf16.msrb.mxu3 %v4705_v23  ;;  %v4372_v33 = vld [vmem:[#allocation24 + $0x2a8] sm:$0xf]  ;;  %v5226_v23 = vld [vmem:[#allocation24 + $0x2b4] sm:$0xf0]  ;;  %v4101_v59 = vor.u32 %v5158_v38, %v4100_v3 }
 0x3bc   :  { %3242 = vmatpush.bf16.msrb.mxu0 %v4833_v42  ;;  %3256 = vmatpush.bf16.msra.mxu1 %v4961_v2  ;;  %v4117_v42 = vor.u32 %v5162_v52, %v4116_v32  ;;  %v4245_v2 = vor.u32 %v5194_v31, %v4244_v50  ;;  %v4373_v40 = vor.u32 %v5226_v23, %v4372_v33  ;;  %v5190_v7 = vld [vmem:[#allocation24 + $0x194] sm:$0xf0]  ;;  %v4356_v48 = vld [vmem:[#allocation24 + $0x288] sm:$0xf] }
 0x3bd   :  { %v5254_v49 = vld [vmem:[#allocation24 + $0x394] sm:$0xf0]  ;;  %v4229_v60 = vor.u32 %v5190_v7, %v4228_v22  ;;  %v4212_v58 = vld [vmem:[#allocation24 + $0x168] sm:$0xf] }
 0x3be   :  { %v5186_v61 = vld [vmem:[#allocation24 + $0x174] sm:$0xf0]  ;;  %v4340_v12 = vld [vmem:[#allocation24 + $0x268] sm:$0xf] }
 0x3bf   :  { %3215 = vmatpush.bf16.msrb.mxu2 %v4561_v57  ;;  %3229 = vmatpush.bf16.msrb.mxu3 %v4689_v28  ;;  %v5222_v57 = vld [vmem:[#allocation24 + $0x294] sm:$0xf0]  ;;  %v4484_v28 = vld [vmem:[#allocation24 + $0x388] sm:$0xf] }
 0x3c0   :  { %3243 = vmatpush.bf16.msrb.mxu0 %v4817_v8  ;;  %3257 = vmatpush.bf16.msra.mxu1 %v4945_v14  ;;  %v4084_v8 = vld [vmem:[#allocation24 + $0x68] sm:$0xf]  ;;  %v5154_v14 = vld [vmem:[#allocation24 + $0x74] sm:$0xf0]  ;;  %v4357_v6 = vor.u32 %v5222_v57, %v4356_v48  ;;  %v4485_v13 = vor.u32 %v5254_v49, %v4484_v28 }
 0x3c1   :  { %v5218_v20 = vld [vmem:[#allocation24 + $0x274] sm:$0xf0]  ;;  %v4468_v10 = vld [vmem:[#allocation24 + $0x368] sm:$0xf]  ;;  %v4085_v46 = vor.u32 %v5154_v14, %v4084_v8 }
 0x3c2   :  { %v5250_v21 = vld [vmem:[#allocation24 + $0x374] sm:$0xf0]  ;;  %v4341_v1 = vor.u32 %v5218_v20, %v4340_v12  ;;  %v4452_v19 = vld [vmem:[#allocation24 + $0x348] sm:$0xf] }
 0x3c3   :  { %3216 = vmatpush.bf16.msrb.mxu2 %v4545_v30  ;;  %3230 = vmatpush.bf16.msrb.mxu3 %v4673_v37  ;;  %v4213_v30 = vor.u32 %v5186_v61, %v4212_v58  ;;  %v4068_v37 = vld [vmem:[#allocation24 + $0x48] sm:$0xf]  ;;  %v5150_v62 = vld [vmem:[#allocation24 + $0x54] sm:$0xf0]  ;;  %v4469_v4 = vor.u32 %v5250_v21, %v4468_v10 }
 0x3c4   :  { %3244 = vmatpush.bf16.msrb.mxu0 %v4801_v5  ;;  %3258 = vmatpush.bf16.msra.mxu1 %v4929_v34  ;;  %v4196_v5 = vld [vmem:[#allocation24 + $0x148] sm:$0xf]  ;;  %v5182_v34 = vld [vmem:[#allocation24 + $0x154] sm:$0xf0] }
 0x3c5   :  { %v5246_v54 = vld [vmem:[#allocation24 + $0x354] sm:$0xf0]  ;;  %v4052_v35 = vld [vmem:[#allocation24 + $0x28] sm:$0xf] }
 0x3c6   :  { %3217 = vmatmul.bf16.vlgmr.msrb.gmra.mxu2 %v6407_v29  ;;  %3231 = vmatmul.bf16.vlgmr.msrb.gmra.mxu3 %v6409_v55  ;;  %v5146_v41 = vld [vmem:[#allocation24 + $0x34] sm:$0xf0]  ;;  %v4453_v24 = vor.u32 %v5246_v54, %v4452_v19  ;;  %v4180_v63 = vld [vmem:[#allocation24 + $0x128] sm:$0xf] }
 0x3c7   :  { %3265 = vmatpush.bf16.msra.mxu2 %v4149_v16  ;;  %3279 = vmatpush.bf16.msra.mxu3 %v4277_v36  ;;  %v4324_v16 = vld [vmem:[#allocation24 + $0x248] sm:$0xf]  ;;  %v5214_v36 = vld [vmem:[#allocation24 + $0x254] sm:$0xf0] }
 0x3c8   :  { %3293 = vmatpush.bf16.msra.mxu0 %v4405_v25  ;;  %3307 = vmatpush.bf16.msrb.mxu1 %v4533_v26  ;;  %v4069_v25 = vor.u32 %v5150_v62, %v4068_v37  ;;  %v4197_v26 = vor.u32 %v5182_v34, %v4196_v5  ;;  %v4325_v53 = vor.u32 %v5214_v36, %v4324_v16  ;;  %v5178_v27 = vld [vmem:[#allocation24 + $0x134] sm:$0xf0]  ;;  %v4436_v32 = vld [vmem:[#allocation24 + $0x328] sm:$0xf] }
 0x3c9   :  { %3245 = vmatmul.bf16.vlgmr.msrb.gmra.mxu0 %v6411_v45  ;;  %3259 = vmatmul.bf16.vlgmr.msra.gmra.mxu1 %v6413_v39  ;;  %v5242_v52 = vld [vmem:[#allocation24 + $0x334] sm:$0xf0]  ;;  %v4181_v50 = vor.u32 %v5178_v27, %v4180_v63  ;;  %v4164_v33 = vld [vmem:[#allocation24 + $0x108] sm:$0xf] }
 0x3ca   :  { %v5142_v31 = vld [vmem:[#allocation24 + $0x14] sm:$0xf0]  ;;  %v4437_v9 = vor.u32 %v5242_v52, %v4436_v32  ;;  %v4420_v3 = vld [vmem:[#allocation24 + $0x308] sm:$0xf] }
 0x3cb   :  { %3266 = vmatpush.bf16.msra.mxu2 %v4133_v18  ;;  %3280 = vmatpush.bf16.msra.mxu3 %v4261_v44  ;;  %v4308_v18 = vld [vmem:[#allocation24 + $0x228] sm:$0xf]  ;;  %v5210_v44 = vld [vmem:[#allocation24 + $0x234] sm:$0xf0] }
 0x3cc   :  { %3294 = vmatpush.bf16.msra.mxu0 %v4389_v17  ;;  %3308 = vmatpush.bf16.msrb.mxu1 %v4517_v56  ;;  %v4036_v17 = vld [vmem:[#allocation24 + $0x8] sm:$0xf]  ;;  %v4053_v56 = vor.u32 %v5146_v41, %v4052_v35  ;;  %v5174_v23 = vld [vmem:[#allocation24 + $0x114] sm:$0xf0]  ;;  %v4309_v47 = vor.u32 %v5210_v44, %v4308_v18 }
 0x3cd   :  { %v5238_v38 = vld [vmem:[#allocation24 + $0x314] sm:$0xf0]  ;;  %v4788_v22 = vld [vmem:[#allocation24 + $0x5e8] sm:$0xf]  ;;  %v4037_v57 = vor.u32 %v5142_v31, %v4036_v17  ;;  %v4165_v28 = vor.u32 %v5174_v23, %v4164_v33 }
 0x3ce   :  { %v5330_v7 = vld [vmem:[#allocation24 + $0x5f4] sm:$0xf0]  ;;  %v4916_v48 = vld [vmem:[#allocation24 + $0x6e8] sm:$0xf]  ;;  %v4421_v14 = vor.u32 %v5238_v38, %v4420_v3 }
 0x3cf   :  { %3267 = vmatpush.bf16.msra.mxu2 %v4117_v42  ;;  %3281 = vmatpush.bf16.msra.mxu3 %v4245_v2  ;;  %v4292_v42 = vld [vmem:[#allocation24 + $0x208] sm:$0xf]  ;;  %v5206_v2 = vld [vmem:[#allocation24 + $0x214] sm:$0xf0] }
 0x3d0   :  { %3295 = vmatpush.bf16.msra.mxu0 %v4373_v40  ;;  %3309 = vmatpush.bf16.msrb.mxu1 %v4501_v43  ;;  %v4660_v40 = vld [vmem:[#allocation24 + $0x4e8] sm:$0xf]  ;;  %v5298_v43 = vld [vmem:[#allocation24 + $0x4f4] sm:$0xf0]  ;;  %v4293_v8 = vor.u32 %v5206_v2, %v4292_v42 }
 0x3d1   :  { %v5362_v49 = vld [vmem:[#allocation24 + $0x6f4] sm:$0xf0]  ;;  %v4644_v58 = vld [vmem:[#allocation24 + $0x4c8] sm:$0xf] }
 0x3d2   :  { %v5294_v61 = vld [vmem:[#allocation24 + $0x4d4] sm:$0xf0]  ;;  %v4917_v12 = vor.u32 %v5362_v49, %v4916_v48  ;;  %v4772_v10 = vld [vmem:[#allocation24 + $0x5c8] sm:$0xf] }
 0x3d3   :  { %3268 = vmatpush.bf16.msra.mxu2 %v4101_v59  ;;  %3282 = vmatpush.bf16.msra.mxu3 %v4229_v60  ;;  %v5044_v59 = vld [vmem:[#allocation24 + $0x7e8] sm:$0xf]  ;;  %v5394_v60 = vld [vmem:[#allocation24 + $0x7f4] sm:$0xf0] }
 0x3d4   :  { %3296 = vmatpush.bf16.msra.mxu0 %v4357_v6  ;;  %3310 = vmatpush.bf16.msrb.mxu1 %v4485_v13  ;;  %v4661_v6 = vor.u32 %v5298_v43, %v4660_v40  ;;  %v4789_v13 = vor.u32 %v5330_v7, %v4788_v22  ;;  %v5045_v20 = vor.u32 %v5394_v60, %v5044_v59  ;;  %v5326_v21 = vld [vmem:[#allocation24 + $0x5d4] sm:$0xf0]  ;;  %v5028_v37 = vld [vmem:[#allocation24 + $0x7c8] sm:$0xf] }
 0x3d5   :  { %v5390_v62 = vld [vmem:[#allocation24 + $0x7d4] sm:$0xf0]  ;;  %v4628_v5 = vld [vmem:[#allocation24 + $0x4a8] sm:$0xf] }
 0x3d6   :  { %v5290_v34 = vld [vmem:[#allocation24 + $0x4b4] sm:$0xf0]  ;;  %v5029_v36 = vor.u32 %v5390_v62, %v5028_v37  ;;  %v4756_v19 = vld [vmem:[#allocation24 + $0x5a8] sm:$0xf] }
 0x3d7   :  { %3269 = vmatpush.bf16.msra.mxu2 %v4085_v46  ;;  %3283 = vmatpush.bf16.msra.mxu3 %v4213_v30  ;;  %v4900_v46 = vld [vmem:[#allocation24 + $0x6c8] sm:$0xf]  ;;  %v5358_v30 = vld [vmem:[#allocation24 + $0x6d4] sm:$0xf0] }
 0x3d8   :  { %3297 = vmatpush.bf16.msra.mxu0 %v4341_v1  ;;  %3311 = vmatpush.bf16.msrb.mxu1 %v4469_v4  ;;  %v4645_v1 = vor.u32 %v5294_v61, %v4644_v58  ;;  %v4773_v4 = vor.u32 %v5326_v21, %v4772_v10  ;;  %v4901_v16 = vor.u32 %v5358_v30, %v4900_v46  ;;  %v5322_v54 = vld [vmem:[#allocation24 + $0x5b4] sm:$0xf0]  ;;  %v5012_v35 = vld [vmem:[#allocation24 + $0x7a8] sm:$0xf] }
 0x3d9   :  { %v5386_v41 = vld [vmem:[#allocation24 + $0x7b4] sm:$0xf0]  ;;  %v4612_v63 = vld [vmem:[#allocation24 + $0x488] sm:$0xf] }
 0x3da   :  { %v5286_v27 = vld [vmem:[#allocation24 + $0x494] sm:$0xf0]  ;;  %v5013_v44 = vor.u32 %v5386_v41, %v5012_v35  ;;  %v4740_v32 = vld [vmem:[#allocation24 + $0x588] sm:$0xf] }
 0x3db   :  { %3270 = vmatpush.bf16.msra.mxu2 %v4069_v25  ;;  %3284 = vmatpush.bf16.msra.mxu3 %v4197_v26  ;;  %v4884_v25 = vld [vmem:[#allocation24 + $0x6a8] sm:$0xf]  ;;  %v5354_v26 = vld [vmem:[#allocation24 + $0x6b4] sm:$0xf0]  ;;  %v4613_v33 = vor.u32 %v5286_v27, %v4612_v63 }
 0x3dc   :  { %3298 = vmatpush.bf16.msra.mxu0 %v4325_v53  ;;  %3312 = vmatpush.bf16.msrb.mxu1 %v4453_v24  ;;  %v4629_v53 = vor.u32 %v5290_v34, %v4628_v5  ;;  %v4757_v24 = vor.u32 %v5322_v54, %v4756_v19  ;;  %v4885_v18 = vor.u32 %v5354_v26, %v4884_v25  ;;  %v5318_v52 = vld [vmem:[#allocation24 + $0x594] sm:$0xf0]  ;;  %v4868_v17 = vld [vmem:[#allocation24 + $0x688] sm:$0xf] }
 0x3dd   :  { %v5382_v31 = vld [vmem:[#allocation24 + $0x794] sm:$0xf0]  ;;  %v4741_v23 = vor.u32 %v5318_v52, %v4740_v32  ;;  %v4724_v3 = vld [vmem:[#allocation24 + $0x568] sm:$0xf]  ;;  %v5200_v32 = vld [vmem:[#allocation24 + $0x1ec] sm:$0xf] }
 0x3de   :  { %v5314_v38 = vld [vmem:[#allocation24 + $0x574] sm:$0xf0]  ;;  %v4852_v40 = vld [vmem:[#allocation24 + $0x668] sm:$0xf]  ;;  %v4278_v52 = vld [vmem:[#allocation24 + $0x1f8] sm:$0xf0] }
 0x3df   :  { %3271 = vmatpush.bf16.msra.mxu2 %v4053_v56  ;;  %3285 = vmatpush.bf16.msra.mxu3 %v4181_v50  ;;  %v5350_v56 = vld [vmem:[#allocation24 + $0x694] sm:$0xf0]  ;;  %v4996_v50 = vld [vmem:[#allocation24 + $0x788] sm:$0xf] }
 0x3e0   :  { %3299 = vmatpush.bf16.msra.mxu0 %v4309_v47  ;;  %3313 = vmatpush.bf16.msrb.mxu1 %v4437_v9  ;;  %v4596_v47 = vld [vmem:[#allocation24 + $0x468] sm:$0xf]  ;;  %v5282_v9 = vld [vmem:[#allocation24 + $0x474] sm:$0xf0]  ;;  %v4869_v42 = vor.u32 %v5350_v56, %v4868_v17  ;;  %v4997_v2 = vor.u32 %v5382_v31, %v4996_v50  ;;  %v5232_v17 = vld [vmem:[#allocation24 + $0x2ec] sm:$0xf] }
 0x3e1   :  { %v5346_v43 = vld [vmem:[#allocation24 + $0x674] sm:$0xf0]  ;;  %v4980_v22 = vld [vmem:[#allocation24 + $0x768] sm:$0xf]  ;;  %v4597_v48 = vor.u32 %v5282_v9, %v4596_v47  ;;  %v4406_v31 = vld [vmem:[#allocation24 + $0x2f8] sm:$0xf0] }
 0x3e2   :  { %v5378_v7 = vld [vmem:[#allocation24 + $0x774] sm:$0xf0]  ;;  %v4853_v59 = vor.u32 %v5346_v43, %v4852_v40  ;;  %v4964_v58 = vld [vmem:[#allocation24 + $0x748] sm:$0xf]  ;;  %v4409_v40 = vor.u32 %v5232_v17, %v4406_v31  ;;  %v5184_v17 = vld [vmem:[#allocation24 + $0x16c] sm:$0xf] }
 0x3e3   :  { %3272 = vmatpush.bf16.msra.mxu2 %v4037_v57  ;;  %3286 = vmatpush.bf16.msra.mxu3 %v4165_v28  ;;  %v4725_v57 = vor.u32 %v5314_v38, %v4724_v3  ;;  %v4580_v28 = vld [vmem:[#allocation24 + $0x448] sm:$0xf]  ;;  %v5278_v49 = vld [vmem:[#allocation24 + $0x454] sm:$0xf0]  ;;  %v4981_v60 = vor.u32 %v5378_v7, %v4980_v22  ;;  %v5164_v3 = vld [vmem:[#allocation24 + $0xcc] sm:$0xf] }
 0x3e4   :  { %3300 = vmatpush.bf16.msra.mxu0 %v4293_v8  ;;  %3314 = vmatpush.bf16.msrb.mxu1 %v4421_v14  ;;  %v4708_v8 = vld [vmem:[#allocation24 + $0x548] sm:$0xf]  ;;  %v5310_v14 = vld [vmem:[#allocation24 + $0x554] sm:$0xf0]  ;;  %v4134_v38 = vld [vmem:[#allocation24 + $0xd8] sm:$0xf0] }
 0x3e5   :  { %v5374_v61 = vld [vmem:[#allocation24 + $0x754] sm:$0xf0]  ;;  %v4564_v10 = vld [vmem:[#allocation24 + $0x428] sm:$0xf]  ;;  %v5196_v22 = vld [vmem:[#allocation24 + $0x1cc] sm:$0xf] }
 0x3e6   :  { %3273 = vmatmul.bf16.vlgmr.msra.gmra.mxu2 %v6353_v11  ;;  %3287 = vmatmul.bf16.vlgmr.msra.gmra.mxu3 %v6355_v15  ;;  %v5274_v21 = vld [vmem:[#allocation24 + $0x434] sm:$0xf0]  ;;  %v4965_v30 = vor.u32 %v5374_v61, %v4964_v58  ;;  %v4692_v37 = vld [vmem:[#allocation24 + $0x528] sm:$0xf]  ;;  %v4262_v7 = vld [vmem:[#allocation24 + $0x1d8] sm:$0xf0] }
 0x3e7   :  { %3321 = vmatpush.bf16.msrb.mxu2 %v4661_v6  ;;  %3335 = vmatpush.bf16.msrb.mxu3 %v4789_v13  ;;  %v4836_v6 = vld [vmem:[#allocation24 + $0x648] sm:$0xf]  ;;  %v5342_v13 = vld [vmem:[#allocation24 + $0x654] sm:$0xf0]  ;;  %v5192_v58 = vld [vmem:[#allocation24 + $0x1ac] sm:$0xf] }
 0x3e8   :  { %3349 = vmatpush.bf16.msrb.mxu0 %v4917_v12  ;;  %3363 = vmatpush.bf16.msra.mxu1 %v5045_v20  ;;  %v4581_v12 = vor.u32 %v5278_v49, %v4580_v28  ;;  %v4709_v20 = vor.u32 %v5310_v14, %v4708_v8  ;;  %v4837_v46 = vor.u32 %v5342_v13, %v4836_v6  ;;  %v5306_v62 = vld [vmem:[#allocation24 + $0x534] sm:$0xf0]  ;;  %v4948_v5 = vld [vmem:[#allocation24 + $0x728] sm:$0xf]  ;;  %v5260_v28 = vld [vmem:[#allocation24 + $0x3cc] sm:$0xf] }
 0x3e9   :  { %3301 = vmatmul.bf16.vlgmr.msra.gmra.mxu0 %v6357_v0  ;;  %3315 = vmatmul.bf16.vlgmr.msrb.gmra.mxu1 %v6359_v51  ;;  %v5370_v34 = vld [vmem:[#allocation24 + $0x734] sm:$0xf0]  ;;  %v4693_v19 = vor.u32 %v5306_v62, %v4692_v37  ;;  %v4676_v25 = vld [vmem:[#allocation24 + $0x508] sm:$0xf]  ;;  %v4518_v49 = vld [vmem:[#allocation24 + $0x3d8] sm:$0xf0] }
 0x3ea   :  { %v5270_v54 = vld [vmem:[#allocation24 + $0x414] sm:$0xf0]  ;;  %v4949_v41 = vor.u32 %v5370_v34, %v4948_v5  ;;  %v4932_v63 = vld [vmem:[#allocation24 + $0x708] sm:$0xf]  ;;  %v5160_v8 = vld [vmem:[#allocation24 + $0xac] sm:$0xf]  ;;  %v4521_v13 = vor.u32 %v5260_v28, %v4518_v49 }
 0x3eb   :  { %3322 = vmatpush.bf16.msrb.mxu2 %v4645_v1  ;;  %3336 = vmatpush.bf16.msrb.mxu3 %v4773_v4  ;;  %v4820_v1 = vld [vmem:[#allocation24 + $0x628] sm:$0xf]  ;;  %v5338_v4 = vld [vmem:[#allocation24 + $0x634] sm:$0xf0]  ;;  %v4118_v14 = vld [vmem:[#allocation24 + $0xb8] sm:$0xf0] }
 0x3ec   :  { %3350 = vmatpush.bf16.msrb.mxu0 %v4901_v16  ;;  %3364 = vmatpush.bf16.msra.mxu1 %v5029_v36  ;;  %v4548_v16 = vld [vmem:[#allocation24 + $0x408] sm:$0xf]  ;;  %v4565_v36 = vor.u32 %v5274_v21, %v4564_v10  ;;  %v5302_v26 = vld [vmem:[#allocation24 + $0x514] sm:$0xf0]  ;;  %v4821_v35 = vor.u32 %v5338_v4, %v4820_v1  ;;  %v4246_v61 = vld [vmem:[#allocation24 + $0x1b8] sm:$0xf0] }
 0x3ed   :  { %v5366_v27 = vld [vmem:[#allocation24 + $0x714] sm:$0xf0]  ;;  %v4549_v56 = vor.u32 %v5270_v54, %v4548_v16  ;;  %v4677_v50 = vor.u32 %v5302_v26, %v4676_v25  ;;  %v5256_v10 = vld [vmem:[#allocation24 + $0x3ac] sm:$0xf]  ;;  %v4502_v21 = vld [vmem:[#allocation24 + $0x3b8] sm:$0xf0]  ;;  %v4249_v37 = vor.u32 %v5192_v58, %v4246_v61 }
 0x3ee   :  { %v4933_v9 = vor.u32 %v5366_v27, %v4932_v63  ;;  %v5156_v1 = vld [vmem:[#allocation24 + $0x8c] sm:$0xf]  ;;  %v4102_v4 = vld [vmem:[#allocation24 + $0x98] sm:$0xf0]  ;;  %v4505_v16 = vor.u32 %v5256_v10, %v4502_v21 }
 0x3ef   :  { %3323 = vmatpush.bf16.msrb.mxu2 %v4629_v53  ;;  %3337 = vmatpush.bf16.msrb.mxu3 %v4757_v24  ;;  %v4804_v53 = vld [vmem:[#allocation24 + $0x608] sm:$0xf]  ;;  %v5334_v24 = vld [vmem:[#allocation24 + $0x614] sm:$0xf0]  ;;  %v5188_v5 = vld [vmem:[#allocation24 + $0x18c] sm:$0xf] }
 0x3f0   :  { %3351 = vmatpush.bf16.msrb.mxu0 %v4885_v18  ;;  %3365 = vmatpush.bf16.msra.mxu1 %v5013_v44  ;;  %v5168_v18 = vld [vmem:[#allocation24 + $0xec] sm:$0xf]  ;;  %v4150_v44 = vld [vmem:[#allocation24 + $0xf8] sm:$0xf0]  ;;  %v4805_v47 = vor.u32 %v5334_v24, %v4804_v53  ;;  %v4105_v53 = vor.u32 %v5156_v1, %v4102_v4 }
 0x3f1   :  { %v4358_v54 = vld [vmem:[#allocation24 + $0x298] sm:$0xf0]  ;;  %v5252_v26 = vld [vmem:[#allocation24 + $0x38c] sm:$0xf] }
 0x3f2   :  { %v5152_v63 = vld [vmem:[#allocation24 + $0x6c] sm:$0xf]  ;;  %v4086_v27 = vld [vmem:[#allocation24 + $0x78] sm:$0xf0] }
 0x3f3   :  { %3324 = vmatpush.bf16.msrb.mxu2 %v4613_v33  ;;  %3338 = vmatpush.bf16.msrb.mxu3 %v4741_v23  ;;  %v5264_v33 = vld [vmem:[#allocation24 + $0x3ec] sm:$0xf]  ;;  %v4534_v23 = vld [vmem:[#allocation24 + $0x3f8] sm:$0xf0] }
 0x3f4   :  { %3352 = vmatpush.bf16.msrb.mxu0 %v4869_v42  ;;  %3366 = vmatpush.bf16.msra.mxu1 %v4997_v2  ;;  %v4153_v42 = vor.u32 %v5168_v18, %v4150_v44  ;;  %v4281_v2 = vor.u32 %v5200_v32, %v4278_v52  ;;  %v4537_v43 = vor.u32 %v5264_v33, %v4534_v23  ;;  %v4342_v33 = vld [vmem:[#allocation24 + $0x278] sm:$0xf0]  ;;  %v5248_v23 = vld [vmem:[#allocation24 + $0x36c] sm:$0xf] }
 0x3f5   :  { %v4326_v49 = vld [vmem:[#allocation24 + $0x258] sm:$0xf0] }
 0x3f6   :  { %v4054_v58 = vld [vmem:[#allocation24 + $0x38] sm:$0xf0] }
 0x3f7   :  { %3325 = vmatpush.bf16.msrb.mxu2 %v4597_v48  ;;  %3339 = vmatpush.bf16.msrb.mxu3 %v4725_v57  ;;  %v5228_v48 = vld [vmem:[#allocation24 + $0x2cc] sm:$0xf]  ;;  %v4390_v57 = vld [vmem:[#allocation24 + $0x2d8] sm:$0xf0] }
 0x3f8   :  { %3353 = vmatpush.bf16.msrb.mxu0 %v4853_v59  ;;  %3367 = vmatpush.bf16.msra.mxu1 %v4981_v60  ;;  %v4137_v59 = vor.u32 %v5164_v3, %v4134_v38  ;;  %v4265_v60 = vor.u32 %v5196_v22, %v4262_v7  ;;  %v4393_v6 = vor.u32 %v5228_v48, %v4390_v57  ;;  %v5148_v3 = vld [vmem:[#allocation24 + $0x4c] sm:$0xf]  ;;  %v4070_v38 = vld [vmem:[#allocation24 + $0x58] sm:$0xf0] }
 0x3f9   :  { %v5180_v22 = vld [vmem:[#allocation24 + $0x14c] sm:$0xf]  ;;  %v4198_v7 = vld [vmem:[#allocation24 + $0x158] sm:$0xf0] }
 0x3fa   :  { %v5212_v48 = vld [vmem:[#allocation24 + $0x24c] sm:$0xf]  ;;  %v4310_v4 = vld [vmem:[#allocation24 + $0x238] sm:$0xf0] }
 0x3fb   :  { %3326 = vmatpush.bf16.msrb.mxu2 %v4581_v12  ;;  %3340 = vmatpush.bf16.msrb.mxu3 %v4709_v20  ;;  %v5224_v12 = vld [vmem:[#allocation24 + $0x2ac] sm:$0xf]  ;;  %v4374_v20 = vld [vmem:[#allocation24 + $0x2b8] sm:$0xf0] }
 0x3fc   :  { %3354 = vmatpush.bf16.msrb.mxu0 %v4837_v46  ;;  %3368 = vmatpush.bf16.msra.mxu1 %v4965_v30  ;;  %v6435_v46 = vld [vmem:[#allocation25] sm:$0xf]  ;;  %v4121_v30 = vor.u32 %v5160_v8, %v4118_v14  ;;  %v4377_v34 = vor.u32 %v5224_v12, %v4374_v20  ;;  %v4073_v14 = vor.u32 %v5148_v3, %v4070_v38 }
 0x3fd   :  { %v4329_v12 = vor.u32 %v5212_v48, %v4326_v49 }
 0x3ff   :  { %3327 = vmatpush.bf16.msrb.mxu2 %v4565_v36  ;;  %3341 = vmatpush.bf16.msrb.mxu3 %v4693_v19  ;;  %v4230_v36 = vld [vmem:[#allocation24 + $0x198] sm:$0xf0]  ;;  %v5220_v19 = vld [vmem:[#allocation24 + $0x28c] sm:$0xf] }
 0x400   :  { %3355 = vmatpush.bf16.msrb.mxu0 %v4821_v35  ;;  %3369 = vmatpush.bf16.msra.mxu1 %v4949_v41  ;;  %v4486_v35 = vld [vmem:[#allocation24 + $0x398] sm:$0xf0]  ;;  %v1753_v41 = vperm.slane %v6435_v46, 0  ;;  %v4233_v24 = vor.u32 %v5188_v5, %v4230_v36  ;;  %v4361_v18 = vor.u32 %v5220_v19, %v4358_v54  ;;  %v5240_v5 = vld [vmem:[#allocation24 + $0x32c] sm:$0xf] }
 0x401   :  { %v4489_v44 = vor.u32 %v5252_v26, %v4486_v35  ;;  %v5172_v26 = vld [vmem:[#allocation24 + $0x10c] sm:$0xf]  ;;  %v4166_v35 = vld [vmem:[#allocation24 + $0x118] sm:$0xf0] }
 0x403   :  { %3328 = vmatpush.bf16.msrb.mxu2 %v4549_v56  ;;  %3342 = vmatpush.bf16.msrb.mxu3 %v4677_v50  ;;  %v3078_v62 = vpop.f32.mrf.mxu0  ;;  %v3092_v25 = vpop.f32.mrf.mxu1  ;;  %v4214_v56 = vld [vmem:[#allocation24 + $0x178] sm:$0xf0]  ;;  %v5216_v50 = vld [vmem:[#allocation24 + $0x26c] sm:$0xf] }
 0x404   :  { %3356 = vmatpush.bf16.msrb.mxu0 %v4805_v47  ;;  %3370 = vmatpush.bf16.msra.mxu1 %v4933_v9  ;;  %v4470_v47 = vld [vmem:[#allocation24 + $0x378] sm:$0xf0] }
 0x406   :  { %3329 = vmatmul.bf16.vlgmr.msrb.gmra.mxu2 %v6407_v29  ;;  %3343 = vmatmul.bf16.vlgmr.msrb.gmra.mxu3 %v6409_v55 }
 0x407   :  { %3377 = vmatpush.bf16.msra.mxu2 %v4153_v42  ;;  %3391 = vmatpush.bf16.msra.mxu3 %v4281_v2  ;;  %v4089_v42 = vor.u32 %v5152_v63, %v4086_v27  ;;  %v4217_v2 = vor.u32 %v5184_v17, %v4214_v56  ;;  %v5204_v63 = vld [vmem:[#allocation24 + $0x20c] sm:$0xf]  ;;  %v4294_v27 = vld [vmem:[#allocation24 + $0x218] sm:$0xf0] }
 0x408   :  { %3405 = vmatpush.bf16.msra.mxu0 %v4409_v40  ;;  %3419 = vmatpush.bf16.msrb.mxu1 %v4537_v43  ;;  %v3050_v32 = vpop.f32.mrf.mxu2  ;;  %v3064_v52 = vpop.f32.mrf.mxu3  ;;  %v4345_v40 = vor.u32 %v5216_v50, %v4342_v33  ;;  %v4473_v43 = vor.u32 %v5248_v23, %v4470_v47  ;;  %v5328_v17 = vld [vmem:[#allocation24 + $0x5ec] sm:$0xf]  ;;  %v4790_v56 = vld [vmem:[#allocation24 + $0x5f8] sm:$0xf0]  ;;  %v4169_v23 = vor.u32 %v5172_v26, %v4166_v35 }
 0x409   :  { %3357 = vmatmul.bf16.vlgmr.msrb.gmra.mxu0 %v6411_v45  ;;  %3371 = vmatmul.bf16.vlgmr.msra.gmra.mxu1 %v6413_v39  ;;  %v3051_v31 = vadd.f32 %v3050_v32, %v1753_v41  ;;  %v5296_v32 = vld [vmem:[#allocation24 + $0x4ec] sm:$0xf]  ;;  %v4918_v47 = vld [vmem:[#allocation24 + $0x6f8] sm:$0xf0]  ;;  %v4297_v3 = vor.u32 %v5204_v63, %v4294_v27 }
 0x40a   :  { %v5360_v50 = vld [vmem:[#allocation24 + $0x6ec] sm:$0xf]  ;;  %v4614_v27 = vld [vmem:[#allocation24 + $0x498] sm:$0xf0] }
 0x40b   :  { %3378 = vmatpush.bf16.msra.mxu2 %v4137_v59  ;;  %3392 = vmatpush.bf16.msra.mxu3 %v4265_v60  ;;  %v3065_v9 = vadd.f32 %v3064_v52, %v3051_v31  ;;  %v3080_v28 = vpop.f32.mrf.mxu0  ;;  %v5244_v59 = vld [vmem:[#allocation24 + $0x34c] sm:$0xf]  ;;  %v4454_v60 = vld [vmem:[#allocation24 + $0x358] sm:$0xf0]  ;;  %v3094_v8 = vpop.f32.mrf.mxu1 }
 0x40c   :  { %3406 = vmatpush.bf16.msra.mxu0 %v4393_v6  ;;  %3420 = vmatpush.bf16.msrb.mxu1 %v4521_v13  ;;  %v4201_v6 = vor.u32 %v5180_v22, %v4198_v7  ;;  %v5144_v13 = vld [vmem:[#allocation24 + $0x2c] sm:$0xf]  ;;  %v4457_v20 = vor.u32 %v5244_v59, %v4454_v60  ;;  %v4662_v52 = vld [vmem:[#allocation24 + $0x4f8] sm:$0xf0]  ;;  %v4793_v7 = vor.u32 %v5328_v17, %v4790_v56 }
 0x40d   :  { %v3079_v57 = vadd.f32 %v3078_v62, %v3065_v9  ;;  %v5208_v62 = vld [vmem:[#allocation24 + $0x22c] sm:$0xf]  ;;  %v4057_v19 = vor.u32 %v5144_v13, %v4054_v58  ;;  %v4665_v22 = vor.u32 %v5296_v32, %v4662_v52  ;;  %v4921_v59 = vor.u32 %v5360_v50, %v4918_v47  ;;  %v4902_v58 = vld [vmem:[#allocation24 + $0x6d8] sm:$0xf0] }
 0x40e   :  { %v5392_v9 = vld [vmem:[#allocation24 + $0x7ec] sm:$0xf]  ;;  %v4870_v52 = vld [vmem:[#allocation24 + $0x698] sm:$0xf0] }
 0x40f   :  { %3379 = vmatpush.bf16.msra.mxu2 %v4121_v30  ;;  %3393 = vmatpush.bf16.msra.mxu3 %v4249_v37  ;;  %v3093_v61 = vadd.f32 %v3092_v25, %v3079_v57  ;;  %v5176_v30 = vld [vmem:[#allocation24 + $0x12c] sm:$0xf]  ;;  %v4182_v37 = vld [vmem:[#allocation24 + $0x138] sm:$0xf0] }
 0x410   :  { %3407 = vmatpush.bf16.msra.mxu0 %v4377_v34  ;;  %3421 = vmatpush.bf16.msrb.mxu1 %v4505_v16  ;;  %v3052_v10 = vpop.f32.mrf.mxu2  ;;  %v3066_v21 = vpop.f32.mrf.mxu3  ;;  %v4438_v34 = vld [vmem:[#allocation24 + $0x338] sm:$0xf0]  ;;  %v5140_v16 = vld [vmem:[#allocation24 + $0xc] sm:$0xf]  ;;  %v4185_v54 = vor.u32 %v5176_v30, %v4182_v37 }
 0x411   :  { %v3053_v1 = vadd.f32 %v3052_v10, %v1753_v41  ;;  %v4038_v25 = vld [vmem:[#allocation24 + $0x18] sm:$0xf0]  ;;  %v5292_v57 = vld [vmem:[#allocation24 + $0x4cc] sm:$0xf] }
 0x412   :  { %v4041_v33 = vor.u32 %v5140_v16, %v4038_v25  ;;  %v5356_v13 = vld [vmem:[#allocation24 + $0x6cc] sm:$0xf]  ;;  %v4630_v37 = vld [vmem:[#allocation24 + $0x4b8] sm:$0xf0] }
 0x413   :  { %3380 = vmatpush.bf16.msra.mxu2 %v4105_v53  ;;  %3394 = vmatpush.bf16.msra.mxu3 %v4233_v24  ;;  %v3067_v36 = vadd.f32 %v3066_v21, %v3053_v1  ;;  %v4313_v53 = vor.u32 %v5208_v62, %v4310_v4  ;;  %v4441_v24 = vor.u32 %v5240_v5, %v4438_v34  ;;  %v3134_v31 = vpop.f32.mrf.mxu0  ;;  %v3148_v49 = vpop.f32.mrf.mxu1  ;;  %v5288_v30 = vld [vmem:[#allocation24 + $0x4ac] sm:$0xf]  ;;  %v4758_v5 = vld [vmem:[#allocation24 + $0x5b8] sm:$0xf0] }
 0x414   :  { %3408 = vmatpush.bf16.msra.mxu0 %v4361_v18  ;;  %3422 = vmatpush.bf16.msrb.mxu1 %v4489_v44  ;;  %v5236_v18 = vld [vmem:[#allocation24 + $0x30c] sm:$0xf]  ;;  %v4422_v44 = vld [vmem:[#allocation24 + $0x318] sm:$0xf0]  ;;  %v4905_v62 = vor.u32 %v5356_v13, %v4902_v58  ;;  %v4633_v35 = vor.u32 %v5288_v30, %v4630_v37 }
 0x415   :  { %v3081_v41 = vadd.f32 %v3080_v28, %v3067_v36  ;;  %v4425_v38 = vor.u32 %v5236_v18, %v4422_v44  ;;  %v4646_v28 = vld [vmem:[#allocation24 + $0x4d8] sm:$0xf0]  ;;  %v5320_v4 = vld [vmem:[#allocation24 + $0x5ac] sm:$0xf] }
 0x416   :  { %v5352_v34 = vld [vmem:[#allocation24 + $0x6ac] sm:$0xf]  ;;  %v4886_v36 = vld [vmem:[#allocation24 + $0x6b8] sm:$0xf0] }
 0x417   :  { %3381 = vmatpush.bf16.msra.mxu2 %v4089_v42  ;;  %3395 = vmatpush.bf16.msra.mxu3 %v4217_v2  ;;  %v5046_v42 = vld [vmem:[#allocation24 + $0x7f8] sm:$0xf0]  ;;  %v3095_v2 = vadd.f32 %v3094_v8, %v3081_v41  ;;  %v5284_v63 = vld [vmem:[#allocation24 + $0x48c] sm:$0xf] }
 0x418   :  { %3409 = vmatpush.bf16.msra.mxu0 %v4345_v40  ;;  %3423 = vmatpush.bf16.msrb.mxu1 %v4473_v43  ;;  %v3106_v40 = vpop.f32.mrf.mxu2  ;;  %v3120_v43 = vpop.f32.mrf.mxu3  ;;  %v5049_v60 = vor.u32 %v5392_v9, %v5046_v42  ;;  %v5316_v41 = vld [vmem:[#allocation24 + $0x58c] sm:$0xf]  ;;  %v4742_v44 = vld [vmem:[#allocation24 + $0x598] sm:$0xf0] }
 0x419   :  { %v3107_v48 = vadd.f32 %v3106_v40, %v3093_v61  ;;  %v4649_v61 = vor.u32 %v5292_v57, %v4646_v28  ;;  %v5348_v32 = vld [vmem:[#allocation24 + $0x68c] sm:$0xf]  ;;  %v4998_v17 = vld [vmem:[#allocation24 + $0x798] sm:$0xf0] }
 0x41a   :  { %v4598_v47 = vld [vmem:[#allocation24 + $0x478] sm:$0xf0]  ;;  %v5312_v9 = vld [vmem:[#allocation24 + $0x56c] sm:$0xf]  ;;  %v4873_v42 = vor.u32 %v5348_v32, %v4870_v52 }
 0x41b   :  { %3382 = vmatpush.bf16.msra.mxu2 %v4073_v14  ;;  %3396 = vmatpush.bf16.msra.mxu3 %v4201_v6  ;;  %v5324_v14 = vld [vmem:[#allocation24 + $0x5cc] sm:$0xf]  ;;  %v4774_v6 = vld [vmem:[#allocation24 + $0x5d8] sm:$0xf0]  ;;  %v3121_v8 = vadd.f32 %v3120_v43, %v3107_v48  ;;  %v3136_v18 = vpop.f32.mrf.mxu0  ;;  %v3150_v56 = vpop.f32.mrf.mxu1  ;;  %v1754_v48 = vperm.slane %v6435_v46, 1 }
 0x41c   :  { %3410 = vmatpush.bf16.msra.mxu0 %v4329_v12  ;;  %3424 = vmatpush.bf16.msrb.mxu1 %v4457_v20  ;;  %v5388_v12 = vld [vmem:[#allocation24 + $0x7cc] sm:$0xf]  ;;  %v5030_v20 = vld [vmem:[#allocation24 + $0x7d8] sm:$0xf0]  ;;  %v4777_v21 = vor.u32 %v5324_v14, %v4774_v6 }
 0x41d   :  { %v3135_v10 = vadd.f32 %v3134_v31, %v3121_v8  ;;  %v5033_v1 = vor.u32 %v5388_v12, %v5030_v20  ;;  %v4617_v31 = vor.u32 %v5284_v63, %v4614_v27  ;;  %v4854_v40 = vld [vmem:[#allocation24 + $0x678] sm:$0xf0]  ;;  %v5308_v8 = vld [vmem:[#allocation24 + $0x54c] sm:$0xf] }
 0x41e   :  { %v4710_v58 = vld [vmem:[#allocation24 + $0x558] sm:$0xf0]  ;;  %v5340_v12 = vld [vmem:[#allocation24 + $0x64c] sm:$0xf] }
 0x41f   :  { %3383 = vmatpush.bf16.msra.mxu2 %v4057_v19  ;;  %3397 = vmatpush.bf16.msra.mxu3 %v4185_v54  ;;  %v6438_v16 = vadd.f32 %v3148_v49, %v3135_v10  ;;  %v5384_v19 = vld [vmem:[#allocation24 + $0x7ac] sm:$0xf]  ;;  %v5014_v54 = vld [vmem:[#allocation24 + $0x7b8] sm:$0xf0] }
 0x420   :  { %3411 = vmatpush.bf16.msra.mxu0 %v4313_v53  ;;  %3425 = vmatpush.bf16.msrb.mxu1 %v4441_v24  ;;  %v3108_v25 = vpop.f32.mrf.mxu2  ;;  %v3122_v26 = vpop.f32.mrf.mxu3  ;;  %v4761_v53 = vor.u32 %v5320_v4, %v4758_v5  ;;  %v5276_v49 = vld [vmem:[#allocation24 + $0x44c] sm:$0xf]  ;;  %v4838_v10 = vld [vmem:[#allocation24 + $0x658] sm:$0xf0] }
 0x421   :  { %v3109_v24 = vadd.f32 %v3108_v25, %v3095_v2  ;;  %v5272_v4 = vld [vmem:[#allocation24 + $0x42c] sm:$0xf]  ;;  %v4566_v5 = vld [vmem:[#allocation24 + $0x438] sm:$0xf0] }
 0x422   :  { %v4694_v25 = vld [vmem:[#allocation24 + $0x538] sm:$0xf0]  ;;  %v4569_v27 = vor.u32 %v5272_v4, %v4566_v5  ;;  %v5300_v52 = vld [vmem:[#allocation24 + $0x50c] sm:$0xf] }
 0x423   :  { %3384 = vmatpush.bf16.msra.mxu2 %v4041_v33  ;;  %3398 = vmatpush.bf16.msra.mxu3 %v4169_v23  ;;  %v4745_v33 = vor.u32 %v5316_v41, %v4742_v44  ;;  %v5280_v23 = vld [vmem:[#allocation24 + $0x46c] sm:$0xf]  ;;  %v4950_v63 = vld [vmem:[#allocation24 + $0x738] sm:$0xf0] }
 0x424   :  { %3412 = vmatpush.bf16.msra.mxu0 %v4297_v3  ;;  %3426 = vmatpush.bf16.msrb.mxu1 %v4425_v38  ;;  %v4726_v3 = vld [vmem:[#allocation24 + $0x578] sm:$0xf0]  ;;  %v5344_v38 = vld [vmem:[#allocation24 + $0x66c] sm:$0xf]  ;;  %v4601_v57 = vor.u32 %v5280_v23, %v4598_v47 }
 0x425   :  { %v4729_v28 = vor.u32 %v5312_v9, %v4726_v3 }
 0x426   :  { %3385 = vmatmul.bf16.vlgmr.msra.gmra.mxu2 %v6353_v11  ;;  %3399 = vmatmul.bf16.vlgmr.msra.gmra.mxu3 %v6355_v15  ;;  %v4889_v11 = vor.u32 %v5352_v34, %v4886_v36  ;;  %v5017_v15 = vor.u32 %v5384_v19, %v5014_v54  ;;  %v3190_v30 = vpop.f32.mrf.mxu0  ;;  %v3204_v34 = vpop.f32.mrf.mxu1  ;;  %v4841_v36 = vor.u32 %v5340_v12, %v4838_v10  ;;  %v5304_v54 = vld [vmem:[#allocation24 + $0x52c] sm:$0xf] }
 0x427   :  { %3433 = vmatpush.bf16.msrb.mxu2 %v4665_v22  ;;  %3447 = vmatpush.bf16.msrb.mxu3 %v4793_v7  ;;  %v5376_v22 = vld [vmem:[#allocation24 + $0x76c] sm:$0xf]  ;;  %v4982_v7 = vld [vmem:[#allocation24 + $0x778] sm:$0xf0] }
 0x428   :  { %3461 = vmatpush.bf16.msrb.mxu0 %v4921_v59  ;;  %3475 = vmatpush.bf16.msra.mxu1 %v5049_v60  ;;  %v4582_v59 = vld [vmem:[#allocation24 + $0x458] sm:$0xf0]  ;;  %v4857_v60 = vor.u32 %v5344_v38, %v4854_v40  ;;  %v4985_v14 = vor.u32 %v5376_v22, %v4982_v7 }
 0x429   :  { %3413 = vmatmul.bf16.vlgmr.msra.gmra.mxu0 %v6357_v0  ;;  %3427 = vmatmul.bf16.vlgmr.msrb.gmra.mxu1 %v6359_v51  ;;  %v3123_v0 = vadd.f32 %v3122_v26, %v3109_v24  ;;  %v5380_v51 = vld [vmem:[#allocation24 + $0x78c] sm:$0xf]  ;;  %v3162_v6 = vpop.f32.mrf.mxu2  ;;  %v3176_v13 = vpop.f32.mrf.mxu3 }
 0x42a   :  { %v5001_v2 = vor.u32 %v5380_v51, %v4998_v17  ;;  %v3163_v20 = vadd.f32 %v3162_v6, %v1754_v48  ;;  %v5336_v26 = vld [vmem:[#allocation24 + $0x62c] sm:$0xf]  ;;  %v4678_v51 = vld [vmem:[#allocation24 + $0x518] sm:$0xf0] }
 0x42b   :  { %3434 = vmatpush.bf16.msrb.mxu2 %v4649_v61  ;;  %3448 = vmatpush.bf16.msrb.mxu3 %v4777_v21  ;;  %v3137_v50 = vadd.f32 %v3136_v18, %v3123_v0  ;;  %v5372_v61 = vld [vmem:[#allocation24 + $0x74c] sm:$0xf]  ;;  %v4966_v21 = vld [vmem:[#allocation24 + $0x758] sm:$0xf0]  ;;  %v4697_v18 = vor.u32 %v5304_v54, %v4694_v25 }
 0x42c   :  { %3462 = vmatpush.bf16.msrb.mxu0 %v4905_v62  ;;  %3476 = vmatpush.bf16.msra.mxu1 %v5033_v1  ;;  %v3177_v37 = vadd.f32 %v3176_v13, %v3163_v20  ;;  %v4585_v62 = vor.u32 %v5276_v49, %v4582_v59  ;;  %v4713_v1 = vor.u32 %v5308_v8, %v4710_v58  ;;  %v5368_v24 = vld [vmem:[#allocation24 + $0x72c] sm:$0xf] }
 0x42d   :  { %v6444_v43 = vadd.f32 %v3150_v56, %v3137_v50  ;;  %v4969_v19 = vor.u32 %v5372_v61, %v4966_v21  ;;  %v4953_v32 = vor.u32 %v5368_v24, %v4950_v63  ;;  %v5332_v17 = vld [vmem:[#allocation24 + $0x60c] sm:$0xf]  ;;  %v4806_v50 = vld [vmem:[#allocation24 + $0x618] sm:$0xf0] }
 0x42e   :  { %v4809_v3 = vor.u32 %v5332_v17, %v4806_v50  ;;  %v3206_v22 = vpop.f32.mrf.mxu1 }
 0x42f   :  { %3435 = vmatpush.bf16.msrb.mxu2 %v4633_v35  ;;  %3449 = vmatpush.bf16.msrb.mxu3 %v4761_v53  ;;  %v3191_v35 = vadd.f32 %v3190_v30, %v3177_v37  ;;  %v4822_v53 = vld [vmem:[#allocation24 + $0x638] sm:$0xf0]  ;;  %v1755_v30 = vperm.slane %v6435_v46, 2 }
 0x430   :  { %3463 = vmatpush.bf16.msrb.mxu0 %v4889_v11  ;;  %3477 = vmatpush.bf16.msra.mxu1 %v5017_v15  ;;  %v5268_v11 = vld [vmem:[#allocation24 + $0x40c] sm:$0xf]  ;;  %v4550_v15 = vld [vmem:[#allocation24 + $0x418] sm:$0xf0]  ;;  %v4825_v44 = vor.u32 %v5336_v26, %v4822_v53  ;;  %v1756_v26 = vperm.slane %v6435_v46, 3 }
 0x431   :  { %v6447_v41 = vadd.f32 %v3204_v34, %v3191_v35  ;;  %v3164_v0 = vpop.f32.mrf.mxu2  ;;  %v3178_v23 = vpop.f32.mrf.mxu3  ;;  %v4553_v9 = vor.u32 %v5268_v11, %v4550_v15 }
 0x432   :  { %v3165_v56 = vadd.f32 %v3164_v0, %v1754_v48 }
 0x433   :  { %3436 = vmatpush.bf16.msrb.mxu2 %v4617_v31  ;;  %3450 = vmatpush.bf16.msrb.mxu3 %v4745_v33  ;;  %v5364_v31 = vld [vmem:[#allocation24 + $0x70c] sm:$0xf]  ;;  %v4934_v33 = vld [vmem:[#allocation24 + $0x718] sm:$0xf0] }
 0x434   :  { %3464 = vmatpush.bf16.msrb.mxu0 %v4873_v42  ;;  %3478 = vmatpush.bf16.msra.mxu1 %v5001_v2  ;;  %v3179_v47 = vadd.f32 %v3178_v23, %v3165_v56  ;;  %v4681_v42 = vor.u32 %v5300_v52, %v4678_v51  ;;  %v3192_v2 = vpop.f32.mrf.mxu0  ;;  %v4937_v38 = vor.u32 %v5364_v31, %v4934_v33 }
 0x436   :  { %v3193_v40 = vadd.f32 %v3192_v2, %v3179_v47 }
 0x437   :  { %3437 = vmatpush.bf16.msrb.mxu2 %v4601_v57  ;;  %3451 = vmatpush.bf16.msrb.mxu3 %v4729_v28 }
 0x438   :  { %3465 = vmatpush.bf16.msrb.mxu0 %v4857_v60  ;;  %3479 = vmatpush.bf16.msra.mxu1 %v4985_v14  ;;  %v3207_v7 = vadd.f32 %v3206_v22, %v3193_v40 }
 0x43b   :  { %3438 = vmatpush.bf16.msrb.mxu2 %v4585_v62  ;;  %3452 = vmatpush.bf16.msrb.mxu3 %v4713_v1 }
 0x43c   :  { %3466 = vmatpush.bf16.msrb.mxu0 %v4841_v36  ;;  %3480 = vmatpush.bf16.msra.mxu1 %v4969_v19 }
 0x43f   :  { %3439 = vmatpush.bf16.msrb.mxu2 %v4569_v27  ;;  %3453 = vmatpush.bf16.msrb.mxu3 %v4697_v18 }
 0x440   :  { %3467 = vmatpush.bf16.msrb.mxu0 %v4825_v44  ;;  %3481 = vmatpush.bf16.msra.mxu1 %v4953_v32 }
 0x443   :  { %3440 = vmatpush.bf16.msrb.mxu2 %v4553_v9  ;;  %3454 = vmatpush.bf16.msrb.mxu3 %v4681_v42 }
 0x444   :  { %3468 = vmatpush.bf16.msrb.mxu0 %v4809_v3  ;;  %3482 = vmatpush.bf16.msra.mxu1 %v4937_v38 }
 0x446   :  { %3441 = vmatmul.bf16.vlgmr.msrb.gmra.mxu2 %v6407_v29  ;;  %3455 = vmatmul.bf16.vlgmr.msrb.gmra.mxu3 %v6409_v55  ;;  %v3246_v28 = vpop.f32.mrf.mxu0  ;;  %v3260_v49 = vpop.f32.mrf.mxu1 }
 0x447   :  { %3469 = vmatmul.bf16.vlgmr.msrb.gmra.mxu0 %v6411_v45  ;;  %3483 = vmatmul.bf16.vlgmr.msra.gmra.mxu1 %v6413_v39 }
 0x449   :  { %v3218_v48 = vpop.f32.mrf.mxu2  ;;  %v3232_v57 = vpop.f32.mrf.mxu3 }
 0x44a   :  { %v3219_v53 = vadd.f32 %v3218_v48, %v6447_v41 }
 0x44c   :  { %v3233_v15 = vadd.f32 %v3232_v57, %v3219_v53 }
 0x44e   :  { %v3248_v14 = vpop.f32.mrf.mxu0  ;;  %v6453_v6 = vpop.f32.mrf.mxu1  ;;  %v3247_v17 = vadd.f32 %v3246_v28, %v3233_v15 }
 0x450   :  { %v6458_v9 = vadd.f32 %v3260_v49, %v3247_v17  ;;  %v3510_v49 = vmul.f32 %v6438_v16, %v6438_v16 }
 0x451   :  { %v3220_v59 = vpop.f32.mrf.mxu2  ;;  %v3234_v60 = vpop.f32.mrf.mxu3 }
 0x452   :  { %v3221_v50 = vadd.f32 %v3220_v59, %v3207_v7  ;;  %v3511_v7 = vmul.f32 %v6458_v9, %v6458_v9 }
 0x454   :  { %v3235_v42 = vadd.f32 %v3234_v60, %v3221_v50 }
 0x456   :  { %v3249_v59 = vadd.f32 %v3248_v14, %v3235_v42 }
 0x466   :  { %v3302_v58 = vpop.f32.mrf.mxu0  ;;  %v3316_v12 = vpop.f32.mrf.mxu1 }
 0x469   :  { %v3274_v13 = vpop.f32.mrf.mxu2  ;;  %v3288_v8 = vpop.f32.mrf.mxu3 }
 0x46a   :  { %v3275_v37 = vadd.f32 %v3274_v13, %v1755_v30 }
 0x46c   :  { %v3289_v5 = vadd.f32 %v3288_v8, %v3275_v37 }
 0x46e   :  { %v3304_v55 = vpop.f32.mrf.mxu0  ;;  %v3318_v10 = vpop.f32.mrf.mxu1  ;;  %v3303_v36 = vadd.f32 %v3302_v58, %v3289_v5 }
 0x470   :  { %v3317_v24 = vadd.f32 %v3316_v12, %v3303_v36 }
 0x471   :  { %v3276_v29 = vpop.f32.mrf.mxu2  ;;  %v3290_v20 = vpop.f32.mrf.mxu3 }
 0x472   :  { %v3277_v25 = vadd.f32 %v3276_v29, %v1755_v30 }
 0x474   :  { %v3291_v27 = vadd.f32 %v3290_v20, %v3277_v25  ;;  %v3491_v20 = vadd.f32 %v6458_v9, %v6438_v16  ;;  %v3514_v25 = vmul.f32 %v6444_v43, %v6444_v43 }
 0x476   :  { %v3305_v44 = vadd.f32 %v3304_v55, %v3291_v27  ;;  %v3518_v55 = vadd.f32 %v3511_v7, %v3510_v49 }
 0x478   :  { %v3319_v31 = vadd.f32 %v3318_v10, %v3305_v44  ;;  %v6471_v10 = vadd.f32 %v6453_v6, %v3249_v59  ;;  %v5896_v44 = vmov 512.0  }
 0x479   :  { %5440 = vrcp.f32 %v5896_v44 }
 0x47a   :  { %v3515_v36 = vmul.f32 %v6471_v10, %v6471_v10 }
 0x486   :  { %v3358_v39 = vpop.f32.mrf.mxu0  ;;  %v3372_v21 = vpop.f32.mrf.mxu1 }
 0x489   :  { %v3330_v45 = vpop.f32.mrf.mxu2  ;;  %v3344_v61 = vpop.f32.mrf.mxu3 }
 0x48a   :  { %v3331_v11 = vadd.f32 %v3330_v45, %v3317_v24 }
 0x48c   :  { %v3345_v0 = vadd.f32 %v3344_v61, %v3331_v11 }
 0x48e   :  { %v3360_v4 = vpop.f32.mrf.mxu0  ;;  %v3374_v34 = vpop.f32.mrf.mxu1  ;;  %v3359_v23 = vadd.f32 %v3358_v39, %v3345_v0 }
 0x490   :  { %v6460_v38 = vadd.f32 %v3372_v21, %v3359_v23 }
 0x491   :  { %v3332_v62 = vpop.f32.mrf.mxu2  ;;  %v3346_v1 = vpop.f32.mrf.mxu3 }
 0x492   :  { %v3333_v41 = vadd.f32 %v3332_v62, %v3319_v31  ;;  %v3512_v60 = vmul.f32 %v6460_v38, %v6460_v38  ;;  %v3492_v61 = vadd.f32 %v3491_v20, %v6460_v38 }
 0x494   :  { %v3347_v48 = vadd.f32 %v3346_v1, %v3333_v41  ;;  %v3519_v21 = vadd.f32 %v3518_v55, %v3512_v60  ;;  %v6502_v60 = vld [vmem:[#allocation28] sm:$0xf] }
 0x496   :  { %v3361_v12 = vadd.f32 %v3360_v4, %v3347_v48 }
 0x498   :  { %v6476_v30 = vadd.f32 %v3374_v34, %v3361_v12  ;;  %v3496_v34 = vadd.f32 %v6471_v10, %v6444_v43 }
 0x49a   :  { %v3497_v24 = vadd.f32 %v3496_v34, %v6476_v30 }
 0x4a6   :  { %v3414_v35 = vpop.f32.mrf.mxu0  ;;  %v3428_v63 = vpop.f32.mrf.mxu1 }
 0x4a9   :  { %v3386_v19 = vpop.f32.mrf.mxu2  ;;  %v3400_v54 = vpop.f32.mrf.mxu3 }
 0x4aa   :  { %v3387_v18 = vadd.f32 %v3386_v19, %v1756_v26 }
 0x4ac   :  { %v3401_v32 = vadd.f32 %v3400_v54, %v3387_v18 }
 0x4ae   :  { %v3416_v56 = vpop.f32.mrf.mxu0  ;;  %v3415_v33 = vadd.f32 %v3414_v35, %v3401_v32  ;;  %v3430_v47 = vpop.f32.mrf.mxu1 }
 0x4af   :  { %v5441_v32 = vpop.eup %5440 }
 0x4b0   :  { %v3429_v3 = vadd.f32 %v3428_v63, %v3415_v33  ;;  %v3523_v63 = vadd.f32 %v3515_v36, %v3514_v25  ;;  %v3502_v0 = vmul.f32 512.0, %v5441_v32  ;;  %vm3506_vm8 = vweird.f32 %v5441_v32 }
 0x4b1   :  { %v3388_v52 = vpop.f32.mrf.mxu2  ;;  %v3402_v51 = vpop.f32.mrf.mxu3 }
 0x4b2   :  { %v3389_v46 = vadd.f32 %v3388_v52, %v1756_v26  ;;  %v3516_v26 = vmul.f32 %v6476_v30, %v6476_v30  ;;  %v3503_v52 = vsub.f32 1.0, %v3502_v0 }
 0x4b4   :  { %v3403_v2 = vadd.f32 %v3402_v51, %v3389_v46  ;;  %v3524_v11 = vadd.f32 %v3523_v63, %v3516_v26  ;;  %v3504_v51 = vmul.f32 %v5441_v32, %v3503_v52 }
 0x4b6   :  { %v3417_v13 = vadd.f32 %v3416_v56, %v3403_v2  ;;  %v3505_v17 = vadd.f32 %v5441_v32, %v3504_v51 }
 0x4b8   :  { %v3431_v14 = vadd.f32 %v3430_v47, %v3417_v13  ;;  %v3507_v56 = vsel %vm3506_vm8, %v5441_v32, %v3505_v17 }
 0x4c4   :  { %v3470_v28 = vpop.f32.mrf.mxu0  ;;  %v3484_v58 = vpop.f32.mrf.mxu1 }
 0x4c9   :  { %v3442_v40 = vpop.f32.mrf.mxu2  ;;  %v3456_v22 = vpop.f32.mrf.mxu3 }
 0x4ca   :  { %v3443_v57 = vadd.f32 %v3442_v40, %v3429_v3 }
 0x4cc   :  { %v3457_v8 = vadd.f32 %v3456_v22, %v3443_v57  ;;  %v3472_v19 = vpop.f32.mrf.mxu0  ;;  %v3486_v35 = vpop.f32.mrf.mxu1 }
 0x4ce   :  { %v3471_v29 = vadd.f32 %v3470_v28, %v3457_v8  ;;  %v6499_v8 = vld [vmem:[#allocation27] sm:$0xf] }
 0x4d0   :  { %v6473_v45 = vadd.f32 %v3484_v58, %v3471_v29 }
 0x4d1   :  { %v3444_v39 = vpop.f32.mrf.mxu2  ;;  %v3458_v4 = vpop.f32.mrf.mxu3 }
 0x4d2   :  { %v3445_v37 = vadd.f32 %v3444_v39, %v3431_v14  ;;  %v3493_v62 = vadd.f32 %v3492_v61, %v6473_v45  ;;  %v3513_v1 = vmul.f32 %v6473_v45, %v6473_v45  ;;  %v3573_v14 = vperm.slane %v6499_v8, 0 }
 0x4d4   :  { %v3459_v5 = vadd.f32 %v3458_v4, %v3445_v37  ;;  %3494 = vadd.xlane.f32.xlu0 %v3493_v62  ;;  %v3520_v6 = vadd.f32 %v3519_v21, %v3513_v1  ;;  %v3574_v21 = vperm.slane %v6499_v8, 1  ;;  %v3576_v37 = vperm.slane %v6499_v8, 3 }
 0x4d5   :  { %v3590_v62 = vperm.slane %v6502_v60, 0  ;;  %v3593_v4 = vperm.slane %v6502_v60, 3 }
 0x4d6   :  { %v3473_v54 = vadd.f32 %v3472_v19, %v3459_v5  ;;  %3521 = vadd.xlane.f32.xlu2 %v3520_v6 }
 0x4d8   :  { %v6489_v53 = vadd.f32 %v3486_v35, %v3473_v54  ;;  %v3614_v54 = vld [vmem:[#allocation30] sm:$0xf] }
 0x4d9   :  { %v3618_v52 = vperm.slane %v3614_v54, 2 }
 0x4da   :  { %v3498_v27 = vadd.f32 %v3497_v24, %v6489_v53  ;;  %v3517_v18 = vmul.f32 %v6489_v53, %v6489_v53 }
 0x4dc   :  { %3499 = vadd.xlane.f32.xlu1 %v3498_v27  ;;  %v3525_v15 = vadd.f32 %v3524_v11, %v3517_v18  ;;  %v3616_v27 = vperm.slane %v3614_v54, 0  ;;  %v3617_v18 = vperm.slane %v3614_v54, 1 }
 0x4de   :  { %3526 = vadd.xlane.f32.xlu0 %v3525_v15 }
 0x547   :  { %v3495_v50 = vpop.xlane.xlu0 %3494 }
 0x548   :  { %v3508_v31 = vmul.f32 %v3507_v56, %v3495_v50 }
 0x549   :  { %v3522_v33 = vpop.xlane.xlu2 %3521 }
 0x54a   :  { %v3528_v46 = vmul.f32 %v3522_v33, %v3507_v56  ;;  %v3530_v23 = vmul.f32 %v3508_v31, %v3508_v31  ;;  %v3534_v58 = vsub.f32 %v6438_v16, %v3508_v31  ;;  %v3535_v29 = vsub.f32 %v6458_v9, %v3508_v31 }
 0x54b   :  { %v3536_v20 = vsub.f32 %v6460_v38, %v3508_v31  ;;  %v3537_v55 = vsub.f32 %v6473_v45, %v3508_v31  ;;  %v3575_v16 = vperm.slane %v6499_v8, 2  ;;  %v3591_v9 = vperm.slane %v6502_v60, 1 }
 0x54c   :  { %v3532_v47 = vsub.f32 %v3528_v46, %v3530_v23  ;;  %v3592_v45 = vperm.slane %v6502_v60, 2 }
 0x54e   :  { %v3542_v41 = vadd.f32 1e-05, %v3532_v47 }
 0x54f   :  { %v3500_v42 = vpop.xlane.xlu1 %3499 }
 0x550   :  { %v6495_v2 = vmul.f32 %v3507_v56, %v3500_v42  ;;  %5442 = vrsqrt.f32 %v3542_v41  ;;  %vm3550_vm10 = vweird.f32 %v3542_v41 }
 0x551   :  { %v3527_v3 = vpop.xlane.xlu0 %3526 }
 0x552   :  { %v3531_v40 = vmul.f32 %v6495_v2, %v6495_v2  ;;  %v3529_v22 = vmul.f32 %v3527_v3, %v3507_v56  ;;  %v3538_v51 = vsub.f32 %v6444_v43, %v6495_v2  ;;  %v3539_v31 = vsub.f32 %v6471_v10, %v6495_v2 }
 0x553   :  { %v3540_v33 = vsub.f32 %v6476_v30, %v6495_v2  ;;  %v3541_v23 = vsub.f32 %v6489_v53, %v6495_v2 }
 0x554   :  { %v3533_v48 = vsub.f32 %v3529_v22, %v3531_v40 }
 0x556   :  { %v5443_v57 = vpop.eup %5442  ;;  %v3543_v28 = vadd.f32 1e-05, %v3533_v48 }
 0x557   :  { %v3545_v7 = vmul.f32 %v5443_v57, %v3542_v41  ;;  %vm3551_vm9 = vweird.f32 %v5443_v57  ;;  %v3619_v41 = vperm.slane %v3614_v54, 3 }
 0x558   :  { %5444 = vrsqrt.f32 %v3543_v28  ;;  %vm3552_vm11 = vmor %vm3550_vm10, %vm3551_vm9  ;;  %vm3560_vm13 = vweird.f32 %v3543_v28 }
 0x559   :  { %v3546_v59 = vmul.f32 %v5443_v57, %v3545_v7 }
 0x55b   :  { %v3547_v13 = vmul.f32 0.5, %v3546_v59 }
 0x55d   :  { %v3548_v49 = vsub.f32 1.5, %v3547_v13 }
 0x55e   :  { %v5445_v12 = vpop.eup %5444 }
 0x55f   :  { %v3549_v61 = vmul.f32 %v5443_v57, %v3548_v49  ;;  %v3555_v39 = vmul.f32 %v5445_v12, %v3543_v28  ;;  %vm3561_vm12 = vweird.f32 %v5445_v12 }
 0x560   :  { %vm3562_vm14 = vmor %vm3560_vm13, %vm3561_vm12 }
 0x561   :  { %v3553_v1 = vsel %vm3552_vm11, %v5443_v57, %v3549_v61  ;;  %v3556_v38 = vmul.f32 %v5445_v12, %v3555_v39 }
 0x562   :  { %v3564_v5 = vmul.f32 %v3553_v1, %v3534_v58  ;;  %v3565_v6 = vmul.f32 %v3553_v1, %v3535_v29  ;;  %v3566_v36 = vmul.f32 %v3553_v1, %v3536_v20  ;;  %v3567_v19 = vmul.f32 %v3553_v1, %v3537_v55 }
 0x563   :  { %v3557_v34 = vmul.f32 0.5, %v3556_v38 }
 0x564   :  { %v3581_v25 = vmul.f32 %v3573_v14, %v3564_v5  ;;  %v3582_v26 = vmul.f32 %v3574_v21, %v3565_v6  ;;  %v3583_v35 = vmul.f32 %v3575_v16, %v3566_v36  ;;  %v3584_v24 = vmul.f32 %v3576_v37, %v3567_v19 }
 0x565   :  { %v3558_v63 = vsub.f32 1.5, %v3557_v34 }
 0x566   :  { %v3598_v11 = vadd.f32 %v3590_v62, %v3581_v25  ;;  %v3599_v15 = vadd.f32 %v3591_v9, %v3582_v26  ;;  %v3600_v44 = vadd.f32 %v3592_v45, %v3583_v35  ;;  %v3601_v32 = vadd.f32 %v3593_v4, %v3584_v24 }
 0x567   :  { %v3559_v0 = vmul.f32 %v5445_v12, %v3558_v63 }
 0x568   :  { %v3606_v17 = vmax.f32 %v3598_v11, 0.0  ;;  %v3607_v56 = vmax.f32 %v3599_v15, 0.0  ;;  %v3608_v50 = vmax.f32 %v3600_v44, 0.0  ;;  %v3609_v47 = vmax.f32 %v3601_v32, 0.0 }
 0x569   :  { %v3563_v46 = vsel %vm3562_vm14, %v5445_v12, %v3559_v0 }
 0x56a   :  { %v3624_v42 = vmul.f32 %v3616_v27, %v3606_v17  ;;  %v3625_v3 = vmul.f32 %v3617_v18, %v3607_v56  ;;  %v3568_v40 = vmul.f32 %v3563_v46, %v3538_v51  ;;  %v3569_v43 = vmul.f32 %v3563_v46, %v3539_v31 }
 0x56b   :  { %v3570_v22 = vmul.f32 %v3563_v46, %v3540_v33  ;;  %v3571_v48 = vmul.f32 %v3563_v46, %v3541_v23  ;;  %v3626_v57 = vmul.f32 %v3618_v52, %v3608_v50  ;;  %v3627_v8 = vmul.f32 %v3619_v41, %v3609_v47 }
 0x56c   :  { %v3632_v28 = vadd.f32 %v3625_v3, %v3624_v42  ;;  %v3585_v7 = vmul.f32 %v3573_v14, %v3568_v40  ;;  %v3586_v59 = vmul.f32 %v3574_v21, %v3569_v43 }
 0x56d   :  { %v3587_v10 = vmul.f32 %v3575_v16, %v3570_v22  ;;  %v3588_v13 = vmul.f32 %v3576_v37, %v3571_v48  ;;  %v3643_v37 = vstv %s6571_s13 }
 0x56e   :  { %v3633_v30 = vadd.f32 %v3632_v28, %v3626_v57  ;;  %v3602_v58 = vadd.f32 %v3590_v62, %v3585_v7  ;;  %v3603_v49 = vadd.f32 %v3591_v9, %v3586_v59 }
 0x56f   :  { %v3604_v60 = vadd.f32 %v3592_v45, %v3587_v10  ;;  %v3605_v53 = vadd.f32 %v3593_v4, %v3588_v13 }
 0x570   :  { %v3634_v2 = vadd.f32 %v3633_v30, %v3627_v8  ;;  %v3610_v12 = vmax.f32 %v3602_v58, 0.0  ;;  %v3611_v29 = vmax.f32 %v3603_v49, 0.0 }
 0x571   :  { %v3612_v20 = vmax.f32 %v3604_v60, 0.0  ;;  %v3613_v55 = vmax.f32 %v3605_v53, 0.0 }
 0x572   :  { %3635 = vadd.xlane.f32.xlu1 %v3634_v2  ;;  %v3628_v61 = vmul.f32 %v3616_v27, %v3610_v12  ;;  %v3629_v39 = vmul.f32 %v3617_v18, %v3611_v29 }
 0x573   :  { %v3630_v1 = vmul.f32 %v3618_v52, %v3612_v20  ;;  %v3631_v14 = vmul.f32 %v3619_v41, %v3613_v55 }
 0x574   :  { %v3637_v38 = vadd.f32 %v3629_v39, %v3628_v61 }
 0x576   :  { %v3638_v21 = vadd.f32 %v3637_v38, %v3630_v1 }
 0x578   :  { %v3639_v16 = vadd.f32 %v3638_v21, %v3631_v14 }
 0x57a   :  { %3640 = vadd.xlane.f32.xlu2 %v3639_v16 }
 0x5e5   :  { %v3636_v62 = vpop.xlane.xlu1 %3635 }
 0x5e6   :  { %v3644_v9 = vadd.f32 %v3643_v37, %v3636_v62 }
 0x5e8   :  { %3647 = vst.msk [vmem:[%s6572_s15] sm:$0xff] %vm3646_vm15, %v3644_v9 }
 0x5ed   :  { %v3641_v45 = vpop.xlane.xlu2 %3640 }
 0x5ee   :  { %v3645_v4 = vadd.f32 %v3643_v37, %v3641_v45 }
 0x5f0   :  { %3648 = vst.msk [vmem:[%s6572_s15 + $0x8] sm:$0xff] %vm3646_vm15, %v3645_v4 }
 0x5f1   :  { %3653 = vsyncpa [#allocation6], 1 }
 0x5f2   :  { %3654 = vsyncpa [#allocation8], 1 }
 0x5f3   :  { %3655 = vsyncpa [#allocation11], 1 }
 0x5f4   :  { %3656 = vsyncpa [#allocation14], 1 }
 0x5f5   :  { %3657 = vsyncpa [#allocation17], 1 }
 0x5f6   :  { %3658 = vsyncpa [#allocation20], 1 }
 0x5f7   :  { %3659 = vsyncpa [#allocation23], 1 }
 0x5f8   :  { %3660 = vsyncpa [#allocation26], 1 }
 0x5f9   :  { %3661 = vsyncpa [#allocation29], 1 }

</bundles_post_ra>
